<compile_context>
chip_gen: v6e
topology: v6e:2x2x1
jax: 0.10.0
libtpu: 0.0.40
codegen_flags: <defaults>
</compile_context>

<pallas_src>
import math

import jax
import jax.numpy as jnp
from jax import lax
from jax.experimental import pallas as pl
from jax.experimental.pallas import tpu as pltpu


def _round_up(x, m):
    return (x + m - 1) // m * m


# ----------------------------------------------------------------------------
# Pass 1: conv (im2col, padded to clean 128 tiles) + BN partial statistics
# ----------------------------------------------------------------------------
def _make_conv_stats_kernel(K, pad, Cin, H, W, contr_pad):
    def kernel(x_ref, w_ref, conv_ref, part_ref, patch_ref):
        """One image per grid step.

        x_ref     : (1, H, W, Cin)        bf16
        w_ref     : (contr_pad, Cout_pad) bf16  zero-padded im2col weight slab
        conv_ref  : (H*W, Cout_pad)       f32   lane-dense conv output slab
        part_ref  : (1, 2, Cout_pad)      f32   [sum ; sum-of-squares] partials
        patch_ref : (H, W, contr_pad)     bf16  VMEM im2col scratch
        """
        M = H * W

        # Zero the patch once: covers the halo taps AND the padded
        # contraction columns. Every valid tap element below is written
        # exactly once (no interior double-write).
        patch_ref[...] = jnp.zeros_like(patch_ref)

        x = x_ref[0]                                        # (H, W, Cin)
        for dy in range(K):
            for dx in range(K):
                t = dy * K + dx
                h0, h1 = max(0, pad - dy), min(H, H + pad - dy)
                w0, w1 = max(0, pad - dx), min(W, W + pad - dx)
                patch_ref[h0:h1, w0:w1, t * Cin:(t + 1) * Cin] = (
                    x[h0 + dy - pad:h1 + dy - pad,
                      w0 + dx - pad:w1 + dx - pad, :])

        # Single MXU matmul on (M,128) x (128,128) tiles, f32 accumulation.
        acc = jnp.dot(patch_ref[...].reshape(M, contr_pad), w_ref[...],
                      preferred_element_type=jnp.float32)   # (M, Cout_pad)
        conv_ref[...] = acc                                 # unmasked stores

        # BN partial statistics for this tile; reduced in the wrapper.
        s1 = jnp.sum(acc, axis=0, keepdims=True)            # (1, Cout_pad)
        s2 = jnp.sum(acc * acc, axis=0, keepdims=True)      # (1, Cout_pad)
        part_ref[...] = jnp.concatenate([s1, s2], axis=0)[None]

    return kernel


# ----------------------------------------------------------------------------
# Pass 2: lane-dense scale/shift + ReLU apply
# ----------------------------------------------------------------------------
def _bn_relu_kernel(conv_ref, scale_ref, shift_ref, o_ref):
    # conv_ref: (TM, Cout_pad) f32; scale/shift: (1, Cout_pad) f32
    o_ref[...] = jnp.maximum(
        conv_ref[...] * scale_ref[...] + shift_ref[...], 0.0)


# ----------------------------------------------------------------------------
# Wrapper: PyTorch-semantics ConvBatchNormReLU forward
# ----------------------------------------------------------------------------
def conv_bn_relu_pallas(x_nchw, weight, bias, gamma, beta, *,
                        padding=1, eps=1e-5):
    """x_nchw : (N, Cin, H, W)   weight : (Cout, Cin, K, K)   bias : (Cout,)
    gamma, beta : (Cout,)        returns (N, Cout, H, W)

    `bias` is accepted for nn.Conv2d API parity but unused: the batch-mean
    subtraction of the training-mode BatchNorm cancels a constant per-channel
    bias exactly.
    """
    del bias
    N, Cin, H, W = x_nchw.shape
    Cout, _, K, _ = weight.shape
    pad = padding

    M = N * H * W
    MT = H * W                                   # im2col rows per grid step
    assert MT % 8 == 0, "H*W must be a multiple of 8 for (8,128) tiling"
    contr = K * K * Cin
    contr_pad = _round_up(max(contr, 128), 128)  # padded contraction dim
    cout_pad = _round_up(max(Cout, 128), 128)    # padded (lane-dense) Cout

    # TODO(synk): keep activations NHWC end-to-end in the network so these two
    # full-activation relayouts disappear; kept here only for NCHW API parity.
    x = jnp.transpose(x_nchw, (0, 2, 3, 1)).astype(jnp.bfloat16)  # (N,H,W,Cin)

    # im2col weight slab, zero-padded to a clean (128, 128k) tile.
    wk = jnp.transpose(weight, (2, 3, 1, 0)).reshape(contr, Cout)
    wk = jnp.pad(wk, ((0, contr_pad - contr), (0, cout_pad - Cout)))
    wk = wk.astype(jnp.bfloat16)

    # ---- pass 1: conv + partial BN stats --------------------------------
    flops1 = 2 * M * contr_pad * cout_pad + 3 * M * cout_pad
    bytes1 = (x.size * 2 + wk.size * 2
              + M * cout_pad * 4 + N * 2 * cout_pad * 4)
    conv_flat, part = pl.pallas_call(
        _make_conv_stats_kernel(K, pad, Cin, H, W, contr_pad),
        out_shape=(jax.ShapeDtypeStruct((M, cout_pad), jnp.float32),
                   jax.ShapeDtypeStruct((N, 2, cout_pad), jnp.float32)),
        grid=(N,),
        in_specs=[
            pl.BlockSpec((1, H, W, Cin), lambda i: (i, 0, 0, 0)),
            pl.BlockSpec((contr_pad, cout_pad), lambda i: (0, 0)),
        ],
        out_specs=(pl.BlockSpec((MT, cout_pad), lambda i: (i, 0)),
                   pl.BlockSpec((1, 2, cout_pad), lambda i: (i, 0, 0))),
        scratch_shapes=[pltpu.VMEM((H, W, contr_pad), jnp.bfloat16)],
        compiler_params=pltpu.CompilerParams(
            dimension_semantics=("parallel",),
            vmem_limit_bytes=32 * 1024 * 1024),
        cost_estimate=pl.CostEstimate(flops=flops1, transcendentals=0,
                                      bytes_accessed=bytes1),
    )(x, wk)

    # BN batch statistics (biased variance) from per-tile partials (tiny).
    total = jnp.sum(part, axis=0)                        # (2, cout_pad)
    mean = total[0] / M
    var = jnp.maximum(total[1] / M - mean * mean, 0.0)
    gamma_p = jnp.pad(gamma.astype(jnp.float32), (0, cout_pad - Cout))
    beta_p = jnp.pad(beta.astype(jnp.float32), (0, cout_pad - Cout))
    scale = gamma_p * lax.rsqrt(var + eps)               # 0 on padded lanes
    shift = beta_p - mean * scale
    scale = scale.reshape(1, cout_pad)
    shift = shift.reshape(1, cout_pad)

    # ---- pass 2: scale/shift + ReLU apply (lane-dense) -------------------
    flops2 = 3 * M * cout_pad
    bytes2 = 2 * M * cout_pad * 4 + 2 * cout_pad * 4
    out_flat = pl.pallas_call(
        _bn_relu_kernel,
        out_shape=jax.ShapeDtypeStruct((M, cout_pad), jnp.float32),
        grid=(M // MT,),
        in_specs=[
            pl.BlockSpec((MT, cout_pad), lambda i: (i, 0)),
            pl.BlockSpec((1, cout_pad), lambda i: (0, 0)),
            pl.BlockSpec((1, cout_pad), lambda i: (0, 0)),
        ],
        out_specs=pl.BlockSpec((MT, cout_pad), lambda i: (i, 0)),
        compiler_params=pltpu.CompilerParams(
            dimension_semantics=("parallel",),
            vmem_limit_bytes=32 * 1024 * 1024),
        cost_estimate=pl.CostEstimate(flops=flops2, transcendentals=0,
                                      bytes_accessed=bytes2),
    )(conv_flat, scale, shift)

    y = out_flat[:, :Cout].reshape(N, H, W, Cout)   # drop the padded lanes
    return jnp.transpose(y, (0, 3, 1, 2))           # back to NCHW


# ----------------------------------------------------------------------------
# Pure-JAX reference (matches the PyTorch module in train mode)
# ----------------------------------------------------------------------------
def _reference(x, weight, bias, gamma, beta, *, padding=1, eps=1e-5):
    y = lax.conv_general_dilated(
        x, weight, window_strides=(1, 1),
        padding=((padding, padding), (padding, padding)),
        dimension_numbers=("NCHW", "OIHW", "NCHW"))
    y = y + bias.reshape(1, -1, 1, 1)
    mean = jnp.mean(y, axis=(0, 2, 3), keepdims=True)
    var = jnp.mean((y - mean) ** 2, axis=(0, 2, 3), keepdims=True)
    yn = (y - mean) * lax.rsqrt(var + eps)
    yn = yn * gamma.reshape(1, -1, 1, 1) + beta.reshape(1, -1, 1, 1)
    return jnp.maximum(yn, 0.0)


# ----------------------------------------------------------------------------
if __name__ == "__main__":
    in_channels, out_channels = 4, 16
    N, H, W = 2, 16, 16
    K = 3

    key = jax.random.PRNGKey(0)
    kx, kw, kb, kg, kbe = jax.random.split(key, 5)
    x = jax.random.normal(kx, (N, in_channels, H, W), jnp.float32)
    bound = 1.0 / math.sqrt(in_channels * K * K)
    weight = jax.random.uniform(kw, (out_channels, in_channels, K, K),
                                jnp.float32, -bound, bound)
    bias = jax.random.uniform(kb, (out_channels,), jnp.float32, -bound, bound)
    gamma = jax.random.uniform(kg, (out_channels,), jnp.float32, 0.5, 1.5)
    beta = 0.1 * jax.random.normal(kbe, (out_channels,), jnp.float32)

    fwd = jax.jit(lambda xx: conv_bn_relu_pallas(xx, weight, bias, gamma, beta))
    y = fwd(x)
    jax.block_until_ready(y)

    assert y.shape == (N, out_channels, H, W), y.shape
    assert bool(jnp.all(jnp.isfinite(y)))

    # correctness vs f32 reference (kernel uses bf16 matmul inputs, f32 acc;
    # BN statistics are derived from the same f32-accumulated conv values)
    y_ref = _reference(x, weight, bias, gamma, beta)
    assert bool(jnp.allclose(y, y_ref, atol=2e-2, rtol=0.0)), (
        float(jnp.max(jnp.abs(y - y_ref))))

    print("KERNEL_OK")
</pallas_src>

<mosaic_0001>
module attributes {stable_mosaic.version = 11 : i64} {
  func.func @kernel(%arg0: i32, %arg1: memref<1x16x16x4xbf16, #tpu.memory_space<vmem>>, %arg2: memref<128x128xbf16, #tpu.memory_space<vmem>>, %arg3: memref<256x128xf32, #tpu.memory_space<vmem>>, %arg4: memref<1x2x128xf32, #tpu.memory_space<vmem>>, %arg5: memref<16x16x128xbf16, #tpu.memory_space<vmem>>) attributes {dimension_semantics = [#tpu.dimension_semantics<parallel>], iteration_bounds = array<i64: 2>, scalar_prefetch = 0 : i64, scratch_operands = 1 : i64, tpu.core_type = #tpu.core_type<tc>, window_params = [{transform_indices = @transform_0, window_bounds = array<i64: 1, 16, 16, 4>}, {pipeline_mode = #tpu.pipeline_mode<synchronous>, transform_indices = @transform_1, window_bounds = array<i64: 128, 128>}, {transform_indices = @transform_2, window_bounds = array<i64: 256, 128>}, {transform_indices = @transform_3, window_bounds = array<i64: 1, 2, 128>}]} {
    %cst = arith.constant 0.000000e+00 : bf16
    %0 = vector.broadcast %cst : bf16 to vector<16x16x128xbf16>
    %c0 = arith.constant 0 : index
    %c0_0 = arith.constant 0 : index
    %c0_1 = arith.constant 0 : index
    %1 = vector.load %arg5[%c0, %c0_0, %c0_1] : memref<16x16x128xbf16, #tpu.memory_space<vmem>>, vector<16x16x128xbf16>
    tpu.vector_store %arg5[%c0, %c0_0, %c0_1], %0 {strides = array<i32>} : memref<16x16x128xbf16, #tpu.memory_space<vmem>>, vector<16x16x128xbf16>,
    %c0_2 = arith.constant 0 : index
    %c0_3 = arith.constant 0 : index
    %c0_4 = arith.constant 0 : index
    %c0_5 = arith.constant 0 : index
    %2 = vector.load %arg1[%c0_2, %c0_3, %c0_4, %c0_5] : memref<1x16x16x4xbf16, #tpu.memory_space<vmem>>, vector<1x16x16x4xbf16>
    %3 = vector.shape_cast %2 : vector<1x16x16x4xbf16> to vector<16x16x4xbf16>
    %4 = vector.extract_strided_slice %3 {offsets = [0, 0, 0], sizes = [15, 15, 4], strides = [1, 1, 1]} : vector<16x16x4xbf16> to vector<15x15x4xbf16>
    %c1 = arith.constant 1 : index
    %c1_6 = arith.constant 1 : index
    %c0_7 = arith.constant 0 : index
    %5 = vector.load %arg5[%c1, %c1_6, %c0_7] : memref<16x16x128xbf16, #tpu.memory_space<vmem>>, vector<15x15x4xbf16>
    tpu.vector_store %arg5[%c1, %c1_6, %c0_7], %4 {strides = array<i32>} : memref<16x16x128xbf16, #tpu.memory_space<vmem>>, vector<15x15x4xbf16>,
    %6 = vector.extract_strided_slice %3 {offsets = [0, 0, 0], sizes = [15, 16, 4], strides = [1, 1, 1]} : vector<16x16x4xbf16> to vector<15x16x4xbf16>
    %c1_8 = arith.constant 1 : index
    %c0_9 = arith.constant 0 : index
    %c4 = arith.constant 4 : index
    %7 = vector.load %arg5[%c1_8, %c0_9, %c4] : memref<16x16x128xbf16, #tpu.memory_space<vmem>>, vector<15x16x4xbf16>
    tpu.vector_store %arg5[%c1_8, %c0_9, %c4], %6 {strides = array<i32>} : memref<16x16x128xbf16, #tpu.memory_space<vmem>>, vector<15x16x4xbf16>,
    %8 = vector.extract_strided_slice %3 {offsets = [0, 1, 0], sizes = [15, 15, 4], strides = [1, 1, 1]} : vector<16x16x4xbf16> to vector<15x15x4xbf16>
    %c1_10 = arith.constant 1 : index
    %c0_11 = arith.constant 0 : index
    %c8 = arith.constant 8 : index
    %9 = vector.load %arg5[%c1_10, %c0_11, %c8] : memref<16x16x128xbf16, #tpu.memory_space<vmem>>, vector<15x15x4xbf16>
    tpu.vector_store %arg5[%c1_10, %c0_11, %c8], %8 {strides = array<i32>} : memref<16x16x128xbf16, #tpu.memory_space<vmem>>, vector<15x15x4xbf16>,
    %10 = vector.extract_strided_slice %3 {offsets = [0, 0, 0], sizes = [16, 15, 4], strides = [1, 1, 1]} : vector<16x16x4xbf16> to vector<16x15x4xbf16>
    %c0_12 = arith.constant 0 : index
    %c1_13 = arith.constant 1 : index
    %c12 = arith.constant 12 : index
    %11 = vector.load %arg5[%c0_12, %c1_13, %c12] : memref<16x16x128xbf16, #tpu.memory_space<vmem>>, vector<16x15x4xbf16>
    tpu.vector_store %arg5[%c0_12, %c1_13, %c12], %10 {strides = array<i32>} : memref<16x16x128xbf16, #tpu.memory_space<vmem>>, vector<16x15x4xbf16>,
    %c0_14 = arith.constant 0 : index
    %c0_15 = arith.constant 0 : index
    %c16 = arith.constant 16 : index
    %12 = vector.load %arg5[%c0_14, %c0_15, %c16] : memref<16x16x128xbf16, #tpu.memory_space<vmem>>, vector<16x16x4xbf16>
    tpu.vector_store %arg5[%c0_14, %c0_15, %c16], %3 {strides = array<i32>} : memref<16x16x128xbf16, #tpu.memory_space<vmem>>, vector<16x16x4xbf16>,
    %13 = vector.extract_strided_slice %3 {offsets = [0, 1, 0], sizes = [16, 15, 4], strides = [1, 1, 1]} : vector<16x16x4xbf16> to vector<16x15x4xbf16>
    %c0_16 = arith.constant 0 : index
    %c0_17 = arith.constant 0 : index
    %c20 = arith.constant 20 : index
    %14 = vector.load %arg5[%c0_16, %c0_17, %c20] : memref<16x16x128xbf16, #tpu.memory_space<vmem>>, vector<16x15x4xbf16>
    tpu.vector_store %arg5[%c0_16, %c0_17, %c20], %13 {strides = array<i32>} : memref<16x16x128xbf16, #tpu.memory_space<vmem>>, vector<16x15x4xbf16>,
    %15 = vector.extract_strided_slice %3 {offsets = [1, 0, 0], sizes = [15, 15, 4], strides = [1, 1, 1]} : vector<16x16x4xbf16> to vector<15x15x4xbf16>
    %c0_18 = arith.constant 0 : index
    %c1_19 = arith.constant 1 : index
    %c24 = arith.constant 24 : index
    %16 = vector.load %arg5[%c0_18, %c1_19, %c24] : memref<16x16x128xbf16, #tpu.memory_space<vmem>>, vector<15x15x4xbf16>
    tpu.vector_store %arg5[%c0_18, %c1_19, %c24], %15 {strides = array<i32>} : memref<16x16x128xbf16, #tpu.memory_space<vmem>>, vector<15x15x4xbf16>,
    %17 = vector.extract_strided_slice %3 {offsets = [1, 0, 0], sizes = [15, 16, 4], strides = [1, 1, 1]} : vector<16x16x4xbf16> to vector<15x16x4xbf16>
    %c0_20 = arith.constant 0 : index
    %c0_21 = arith.constant 0 : index
    %c28 = arith.constant 28 : index
    %18 = vector.load %arg5[%c0_20, %c0_21, %c28] : memref<16x16x128xbf16, #tpu.memory_space<vmem>>, vector<15x16x4xbf16>
    tpu.vector_store %arg5[%c0_20, %c0_21, %c28], %17 {strides = array<i32>} : memref<16x16x128xbf16, #tpu.memory_space<vmem>>, vector<15x16x4xbf16>,
    %19 = vector.extract_strided_slice %3 {offsets = [1, 1, 0], sizes = [15, 15, 4], strides = [1, 1, 1]} : vector<16x16x4xbf16> to vector<15x15x4xbf16>
    %c0_22 = arith.constant 0 : index
    %c0_23 = arith.constant 0 : index
    %c32 = arith.constant 32 : index
    %20 = vector.load %arg5[%c0_22, %c0_23, %c32] : memref<16x16x128xbf16, #tpu.memory_space<vmem>>, vector<15x15x4xbf16>
    tpu.vector_store %arg5[%c0_22, %c0_23, %c32], %19 {strides = array<i32>} : memref<16x16x128xbf16, #tpu.memory_space<vmem>>, vector<15x15x4xbf16>,
    %c0_24 = arith.constant 0 : index
    %c0_25 = arith.constant 0 : index
    %c0_26 = arith.constant 0 : index
    %21 = vector.load %arg5[%c0_24, %c0_25, %c0_26] : memref<16x16x128xbf16, #tpu.memory_space<vmem>>, vector<16x16x128xbf16>
    %22 = vector.shape_cast %21 : vector<16x16x128xbf16> to vector<256x128xbf16>
    %c0_27 = arith.constant 0 : index
    %c0_28 = arith.constant 0 : index
    %23 = vector.load %arg2[%c0_27, %c0_28] : memref<128x128xbf16, #tpu.memory_space<vmem>>, vector<128x128xbf16>
    %cst_29 = arith.constant dense<0.000000e+00> : vector<256x128xf32>
    %24 = tpu.matmul %22, %23, %cst_29 {dimension_numbers = #tpu.dot_dimension_numbers<[1], [0], [0], [1], [0, 0, 1, 1], [], []>} : vector<256x128xbf16>, vector<128x128xbf16>, vector<256x128xf32> -> vector<256x128xf32>
    %c0_30 = arith.constant 0 : index
    %c0_31 = arith.constant 0 : index
    %25 = vector.load %arg3[%c0_30, %c0_31] : memref<256x128xf32, #tpu.memory_space<vmem>>, vector<256x128xf32>
    tpu.vector_store %arg3[%c0_30, %c0_31], %24 {strides = array<i32>} : memref<256x128xf32, #tpu.memory_space<vmem>>, vector<256x128xf32>,
    %cst_32 = arith.constant dense<0.000000e+00> : vector<128xf32>
    %26 = vector.multi_reduction <add>, %24, %cst_32 [0] : vector<256x128xf32> to vector<128xf32>
    %27 = vector.shape_cast %26 : vector<128xf32> to vector<1x128xf32>
    %28 = arith.mulf %24, %24 : vector<256x128xf32>
    %cst_33 = arith.constant dense<0.000000e+00> : vector<128xf32>
    %29 = vector.multi_reduction <add>, %28, %cst_33 [0] : vector<256x128xf32> to vector<128xf32>
    %30 = vector.shape_cast %29 : vector<128xf32> to vector<1x128xf32>
    %31 = tpu.concatenate %27, %30 in 0 : vector<1x128xf32>, vector<1x128xf32> -> vector<2x128xf32>
    %32 = vector.shape_cast %31 : vector<2x128xf32> to vector<1x2x128xf32>
    %c0_34 = arith.constant 0 : index
    %c0_35 = arith.constant 0 : index
    %c0_36 = arith.constant 0 : index
    %33 = vector.load %arg4[%c0_34, %c0_35, %c0_36] : memref<1x2x128xf32, #tpu.memory_space<vmem>>, vector<1x2x128xf32>
    tpu.vector_store %arg4[%c0_34, %c0_35, %c0_36], %32 {strides = array<i32>} : memref<1x2x128xf32, #tpu.memory_space<vmem>>, vector<1x2x128xf32>,
    return
  }
  func.func @transform_0(%arg0: i32) -> (i32, i32, i32, i32) {
    %c0_i32 = arith.constant 0 : i32
    %c0_i32_0 = arith.constant 0 : i32
    %c0_i32_1 = arith.constant 0 : i32
    %c0_i32_2 = arith.constant 0 : i32
    return %arg0, %c0_i32, %c0_i32_0, %c0_i32_1 : i32, i32, i32, i32
  }
  func.func @transform_1(%arg0: i32) -> (i32, i32) {
    %c0_i32 = arith.constant 0 : i32
    %c0_i32_0 = arith.constant 0 : i32
    %c0_i32_1 = arith.constant 0 : i32
    return %c0_i32, %c0_i32_0 : i32, i32
  }
  func.func @transform_2(%arg0: i32) -> (i32, i32) {
    %c0_i32 = arith.constant 0 : i32
    %c0_i32_0 = arith.constant 0 : i32
    return %arg0, %c0_i32 : i32, i32
  }
  func.func @transform_3(%arg0: i32) -> (i32, i32, i32) {
    %c0_i32 = arith.constant 0 : i32
    %c0_i32_0 = arith.constant 0 : i32
    %c0_i32_1 = arith.constant 0 : i32
    return %arg0, %c0_i32, %c0_i32_0 : i32, i32, i32
  }
}

module attributes {stable_mosaic.version = 11 : i64} {
  func.func @_bn_relu_kernel(%arg0: i32, %arg1: memref<256x128xf32, #tpu.memory_space<vmem>>, %arg2: memref<1x128xf32, #tpu.memory_space<vmem>>, %arg3: memref<1x128xf32, #tpu.memory_space<vmem>>, %arg4: memref<256x128xf32, #tpu.memory_space<vmem>>) attributes {dimension_semantics = [#tpu.dimension_semantics<parallel>], iteration_bounds = array<i64: 2>, scalar_prefetch = 0 : i64, scratch_operands = 0 : i64, tpu.core_type = #tpu.core_type<tc>, window_params = [{transform_indices = @transform_0, window_bounds = array<i64: 256, 128>}, {pipeline_mode = #tpu.pipeline_mode<synchronous>, transform_indices = @transform_1, window_bounds = array<i64: 1, 128>}, {pipeline_mode = #tpu.pipeline_mode<synchronous>, transform_indices = @transform_2, window_bounds = array<i64: 1, 128>}, {transform_indices = @transform_3, window_bounds = array<i64: 256, 128>}]} {
    %c0 = arith.constant 0 : index
    %c0_0 = arith.constant 0 : index
    %0 = vector.load %arg1[%c0, %c0_0] : memref<256x128xf32, #tpu.memory_space<vmem>>, vector<256x128xf32>
    %c0_1 = arith.constant 0 : index
    %c0_2 = arith.constant 0 : index
    %1 = vector.load %arg2[%c0_1, %c0_2] : memref<1x128xf32, #tpu.memory_space<vmem>>, vector<1x128xf32>
    %2 = vector.broadcast %1 : vector<1x128xf32> to vector<256x128xf32>
    %3 = arith.mulf %0, %2 : vector<256x128xf32>
    %c0_3 = arith.constant 0 : index
    %c0_4 = arith.constant 0 : index
    %4 = vector.load %arg3[%c0_3, %c0_4] : memref<1x128xf32, #tpu.memory_space<vmem>>, vector<1x128xf32>
    %5 = vector.broadcast %4 : vector<1x128xf32> to vector<256x128xf32>
    %6 = arith.addf %3, %5 : vector<256x128xf32>
    %cst = arith.constant 0.000000e+00 : f32
    %7 = vector.broadcast %cst : f32 to vector<256x128xf32>
    %8 = arith.maximumf %6, %7 : vector<256x128xf32>
    %c0_5 = arith.constant 0 : index
    %c0_6 = arith.constant 0 : index
    %9 = vector.load %arg4[%c0_5, %c0_6] : memref<256x128xf32, #tpu.memory_space<vmem>>, vector<256x128xf32>
    tpu.vector_store %arg4[%c0_5, %c0_6], %8 {strides = array<i32>} : memref<256x128xf32, #tpu.memory_space<vmem>>, vector<256x128xf32>,
    return
  }
  func.func @transform_0(%arg0: i32) -> (i32, i32) {
    %c0_i32 = arith.constant 0 : i32
    %c0_i32_0 = arith.constant 0 : i32
    return %arg0, %c0_i32 : i32, i32
  }
  func.func @transform_1(%arg0: i32) -> (i32, i32) {
    %c0_i32 = arith.constant 0 : i32
    %c0_i32_0 = arith.constant 0 : i32
    %c0_i32_1 = arith.constant 0 : i32
    return %c0_i32, %c0_i32_0 : i32, i32
  }
  func.func @transform_2(%arg0: i32) -> (i32, i32) {
    %c0_i32 = arith.constant 0 : i32
    %c0_i32_0 = arith.constant 0 : i32
    %c0_i32_1 = arith.constant 0 : i32
    return %c0_i32, %c0_i32_0 : i32, i32
  }
  func.func @transform_3(%arg0: i32) -> (i32, i32) {
    %c0_i32 = arith.constant 0 : i32
    %c0_i32_0 = arith.constant 0 : i32
    return %arg0, %c0_i32 : i32, i32
  }
}

</mosaic_0001>

<bundles_post_ra>
// kernel: _lambda_.3
= control target key start
LH: loop header
LB: loop body
LE: loop exit
PB: predicated region body
PF: predicated region fallthrough
CT: control target
= control target key end

     0   :  { %s453_s12 = smov 0   ;;  %s612_s0 = inlined_call_operand.vmem [shape: f32[512,128], index: 0, kind: input, shape index: {}]   ;;  %s613_s1 = inlined_call_operand.vmem [shape: f32[1,128], index: 1, kind: input, shape index: {}]   ;;  %s614_s2 = inlined_call_operand.vmem [shape: f32[1,128], index: 2, kind: input, shape index: {}]   ;;  %s615_s3 = inlined_call_operand.vmem [shape: f32[512,128], index: 3, kind: output, shape index: {}]  }
   0x1 LB: > { %s404_s13 = sadd.s32 4294967295, %s431_s12   ;;  %p408_p0 = scmp.ge.s32.totalorder %s431_s12, 1  ;;  %s431_s12 = sphi %s453_s12, %s13_s12  }
   0x2   : > { %p138_p1 = scmp.lt.s32.totalorder %s431_s12, 3 }
   0x4   : > { %p139_p2 = pnand %p408_p0, %p138_p1 }
   0x5   : > { %s409_s14 = sshll.u32 (!%p139_p2), %s404_s13, 5 }
   0x6   : > { %142 = sbr.rel (%p139_p2) target bundleno = 44 (0x2c), region = 32  ;;  %p163_p3 = scmp.lt.s32.totalorder (!%p139_p2), %s409_s14, 63 }
   0xb   : > { %s617_s14 = smov (!%p163_p3, %s409_s14), 63  ;;  %v464_v0 = vld [vmem:[%s613_s1] ss:$0 sm:$0xff] }
   0xc   : > { %s410_s15 = sshll.u32 %s617_s14, 3  ;;  %v474_v1 = vld [vmem:[%s614_s2] ss:$0 sm:$0xff] }
   0xd   : > { %s469_s20 = scalar_lea.vmem %s612_s0, %s410_s15  ;;  %s497_s25 = scalar_lea.vmem %s615_s3, %s410_s15 }
   0xe   : > { %v174_v2 = vld [vmem:[%s469_s20] sm:$0xff]  ;;  %v175_v3 = vld [vmem:[%s469_s20 + $0x8] sm:$0xff]  ;;  %v176_v4 = vld [vmem:[%s469_s20 + $0x10] sm:$0xff] }
   0xf   : > { %v213_v5 = vmul.f32 %v464_v0, %v174_v2  ;;  %v214_v6 = vmul.f32 %v464_v0, %v175_v3  ;;  %v215_v7 = vmul.f32 %v464_v0, %v176_v4  ;;  %v177_v8 = vld [vmem:[%s469_s20 + $0x18] sm:$0xff]  ;;  %v178_v9 = vld [vmem:[%s469_s20 + $0x20] sm:$0xff]  ;;  %v179_v10 = vld [vmem:[%s469_s20 + $0x28] sm:$0xff] }
  0x10   : > { %v216_v11 = vmul.f32 %v464_v0, %v177_v8  ;;  %v217_v12 = vmul.f32 %v464_v0, %v178_v9  ;;  %v218_v13 = vmul.f32 %v464_v0, %v179_v10  ;;  %v180_v14 = vld [vmem:[%s469_s20 + $0x30] sm:$0xff]  ;;  %v181_v15 = vld [vmem:[%s469_s20 + $0x38] sm:$0xff]  ;;  %v182_v24 = vld [vmem:[%s469_s20 + $0x40] sm:$0xff] }
  0x11   : > { %v252_v16 = vadd.f32 %v474_v1, %v213_v5  ;;  %v253_v17 = vadd.f32 %v474_v1, %v214_v6  ;;  %v254_v18 = vadd.f32 %v474_v1, %v215_v7  ;;  %v219_v19 = vmul.f32 %v464_v0, %v180_v14  ;;  %v183_v25 = vld [vmem:[%s469_s20 + $0x48] sm:$0xff]  ;;  %v184_v26 = vld [vmem:[%s469_s20 + $0x50] sm:$0xff]  ;;  %v185_v31 = vld [vmem:[%s469_s20 + $0x58] sm:$0xff] }
  0x12   : > { %v255_v20 = vadd.f32 %v474_v1, %v216_v11  ;;  %v256_v21 = vadd.f32 %v474_v1, %v217_v12  ;;  %v257_v22 = vadd.f32 %v474_v1, %v218_v13  ;;  %v220_v23 = vmul.f32 %v464_v0, %v181_v15  ;;  %v186_v32 = vld [vmem:[%s469_s20 + $0x60] sm:$0xff]  ;;  %v187_v33 = vld [vmem:[%s469_s20 + $0x68] sm:$0xff]  ;;  %v188_v38 = vld [vmem:[%s469_s20 + $0x70] sm:$0xff] }
  0x13   : > { %v284_v27 = vmax.f32 %v252_v16, 0.0  ;;  %v285_v28 = vmax.f32 %v253_v17, 0.0  ;;  %v286_v29 = vmax.f32 %v254_v18, 0.0  ;;  %v258_v30 = vadd.f32 %v474_v1, %v219_v19  ;;  %v189_v43 = vld [vmem:[%s469_s20 + $0x78] sm:$0xff]  ;;  %v190_v56 = vld [vmem:[%s469_s20 + $0x80] sm:$0xff]  ;;  %v191_v57 = vld [vmem:[%s469_s20 + $0x88] sm:$0xff] }
  0x14   : > { %v287_v34 = vmax.f32 %v255_v20, 0.0  ;;  %v288_v35 = vmax.f32 %v256_v21, 0.0  ;;  %v289_v36 = vmax.f32 %v257_v22, 0.0  ;;  %v259_v37 = vadd.f32 %v474_v1, %v220_v23  ;;  %v192_v58 = vld [vmem:[%s469_s20 + $0x90] sm:$0xff]  ;;  %v193_v63 = vld [vmem:[%s469_s20 + $0x98] sm:$0xff]  ;;  %v194_v2 = vld [vmem:[%s469_s20 + $0xa0] sm:$0xff] }
  0x15   : > { %316 = vst [vmem:[%s497_s25] sm:$0xff] %v284_v27  ;;  %317 = vst [vmem:[%s497_s25 + $0x8] sm:$0xff] %v285_v28  ;;  %v290_v39 = vmax.f32 %v258_v30, 0.0  ;;  %v221_v40 = vmul.f32 %v464_v0, %v182_v24  ;;  %v222_v41 = vmul.f32 %v464_v0, %v183_v25  ;;  %v223_v42 = vmul.f32 %v464_v0, %v184_v26  ;;  %v195_v3 = vld [vmem:[%s469_s20 + $0xa8] sm:$0xff]  ;;  %v196_v8 = vld [vmem:[%s469_s20 + $0xb0] sm:$0xff] }
  0x16   : > { %318 = vst [vmem:[%s497_s25 + $0x10] sm:$0xff] %v286_v29  ;;  %319 = vst [vmem:[%s497_s25 + $0x18] sm:$0xff] %v287_v34  ;;  %v291_v44 = vmax.f32 %v259_v37, 0.0  ;;  %v224_v45 = vmul.f32 %v464_v0, %v185_v31  ;;  %v225_v46 = vmul.f32 %v464_v0, %v186_v32  ;;  %v226_v47 = vmul.f32 %v464_v0, %v187_v33  ;;  %v197_v13 = vld [vmem:[%s469_s20 + $0xb8] sm:$0xff]  ;;  %v198_v26 = vld [vmem:[%s469_s20 + $0xc0] sm:$0xff] }
  0x17   : > { %320 = vst [vmem:[%s497_s25 + $0x20] sm:$0xff] %v288_v35  ;;  %321 = vst [vmem:[%s497_s25 + $0x28] sm:$0xff] %v289_v36  ;;  %v260_v48 = vadd.f32 %v474_v1, %v221_v40  ;;  %v261_v49 = vadd.f32 %v474_v1, %v222_v41  ;;  %v262_v50 = vadd.f32 %v474_v1, %v223_v42  ;;  %v199_v27 = vld [vmem:[%s469_s20 + $0xc8] sm:$0xff]  ;;  %v200_v28 = vld [vmem:[%s469_s20 + $0xd0] sm:$0xff] }
  0x18   : > { %322 = vst [vmem:[%s497_s25 + $0x30] sm:$0xff] %v290_v39  ;;  %v227_v51 = vmul.f32 %v464_v0, %v188_v38  ;;  %323 = vst [vmem:[%s497_s25 + $0x38] sm:$0xff] %v291_v44  ;;  %v263_v52 = vadd.f32 %v474_v1, %v224_v45  ;;  %v264_v53 = vadd.f32 %v474_v1, %v225_v46  ;;  %v201_v33 = vld [vmem:[%s469_s20 + $0xd8] sm:$0xff]  ;;  %v202_v34 = vld [vmem:[%s469_s20 + $0xe0] sm:$0xff] }
  0x19   : > { %v265_v54 = vadd.f32 %v474_v1, %v226_v47  ;;  %v228_v55 = vmul.f32 %v464_v0, %v189_v43  ;;  %v292_v59 = vmax.f32 %v260_v48, 0.0  ;;  %v293_v60 = vmax.f32 %v261_v49, 0.0  ;;  %v203_v35 = vld [vmem:[%s469_s20 + $0xe8] sm:$0xff]  ;;  %v204_v40 = vld [vmem:[%s469_s20 + $0xf0] sm:$0xff]  ;;  %v205_v45 = vld [vmem:[%s469_s20 + $0xf8] sm:$0xff] }
  0x1a   : > { %v294_v61 = vmax.f32 %v262_v50, 0.0  ;;  %v266_v62 = vadd.f32 %v474_v1, %v227_v51  ;;  %v295_v4 = vmax.f32 %v263_v52, 0.0  ;;  %v296_v5 = vmax.f32 %v264_v53, 0.0 }
  0x1b   : > { %v297_v6 = vmax.f32 %v265_v54, 0.0  ;;  %v267_v7 = vadd.f32 %v474_v1, %v228_v55  ;;  %324 = vst [vmem:[%s497_s25 + $0x40] sm:$0xff] %v292_v59  ;;  %325 = vst [vmem:[%s497_s25 + $0x48] sm:$0xff] %v293_v60  ;;  %v229_v10 = vmul.f32 %v464_v0, %v190_v56  ;;  %v230_v11 = vmul.f32 %v464_v0, %v191_v57 }
  0x1c   : > { %326 = vst [vmem:[%s497_s25 + $0x50] sm:$0xff] %v294_v61  ;;  %v298_v9 = vmax.f32 %v266_v62, 0.0  ;;  %v231_v12 = vmul.f32 %v464_v0, %v192_v58  ;;  %327 = vst [vmem:[%s497_s25 + $0x58] sm:$0xff] %v295_v4  ;;  %v232_v15 = vmul.f32 %v464_v0, %v193_v63  ;;  %v233_v16 = vmul.f32 %v464_v0, %v194_v2 }
  0x1d   : > { %328 = vst [vmem:[%s497_s25 + $0x60] sm:$0xff] %v296_v5  ;;  %329 = vst [vmem:[%s497_s25 + $0x68] sm:$0xff] %v297_v6  ;;  %v299_v14 = vmax.f32 %v267_v7, 0.0  ;;  %v234_v17 = vmul.f32 %v464_v0, %v195_v3  ;;  %v268_v18 = vadd.f32 %v474_v1, %v229_v10  ;;  %v269_v19 = vadd.f32 %v474_v1, %v230_v11 }
  0x1e   : > { %330 = vst [vmem:[%s497_s25 + $0x70] sm:$0xff] %v298_v9  ;;  %v270_v20 = vadd.f32 %v474_v1, %v231_v12  ;;  %v235_v21 = vmul.f32 %v464_v0, %v196_v8  ;;  %v271_v22 = vadd.f32 %v474_v1, %v232_v15  ;;  %v272_v23 = vadd.f32 %v474_v1, %v233_v16 }
  0x1f   : > { %331 = vst [vmem:[%s497_s25 + $0x78] sm:$0xff] %v299_v14  ;;  %v273_v24 = vadd.f32 %v474_v1, %v234_v17  ;;  %v236_v25 = vmul.f32 %v464_v0, %v197_v13  ;;  %v300_v29 = vmax.f32 %v268_v18, 0.0  ;;  %v301_v30 = vmax.f32 %v269_v19, 0.0 }
  0x20   : > { %v302_v31 = vmax.f32 %v270_v20, 0.0  ;;  %v274_v32 = vadd.f32 %v474_v1, %v235_v21  ;;  %v303_v36 = vmax.f32 %v271_v22, 0.0  ;;  %v304_v37 = vmax.f32 %v272_v23, 0.0 }
  0x21   : > { %v305_v38 = vmax.f32 %v273_v24, 0.0  ;;  %v275_v39 = vadd.f32 %v474_v1, %v236_v25  ;;  %332 = vst [vmem:[%s497_s25 + $0x80] sm:$0xff] %v300_v29  ;;  %333 = vst [vmem:[%s497_s25 + $0x88] sm:$0xff] %v301_v30  ;;  %v237_v42 = vmul.f32 %v464_v0, %v198_v26  ;;  %v238_v43 = vmul.f32 %v464_v0, %v199_v27 }
  0x22   : > { %334 = vst [vmem:[%s497_s25 + $0x90] sm:$0xff] %v302_v31  ;;  %v306_v41 = vmax.f32 %v274_v32, 0.0  ;;  %v239_v44 = vmul.f32 %v464_v0, %v200_v28  ;;  %335 = vst [vmem:[%s497_s25 + $0x98] sm:$0xff] %v303_v36  ;;  %v240_v47 = vmul.f32 %v464_v0, %v201_v33  ;;  %v241_v48 = vmul.f32 %v464_v0, %v202_v34 }
  0x23   : > { %336 = vst [vmem:[%s497_s25 + $0xa0] sm:$0xff] %v304_v37  ;;  %337 = vst [vmem:[%s497_s25 + $0xa8] sm:$0xff] %v305_v38  ;;  %v307_v46 = vmax.f32 %v275_v39, 0.0  ;;  %v242_v49 = vmul.f32 %v464_v0, %v203_v35  ;;  %v276_v50 = vadd.f32 %v474_v1, %v237_v42  ;;  %v277_v51 = vadd.f32 %v474_v1, %v238_v43 }
  0x24   : > { %338 = vst [vmem:[%s497_s25 + $0xb0] sm:$0xff] %v306_v41  ;;  %v278_v52 = vadd.f32 %v474_v1, %v239_v44  ;;  %v243_v53 = vmul.f32 %v464_v0, %v204_v40  ;;  %v279_v54 = vadd.f32 %v474_v1, %v240_v47  ;;  %v280_v55 = vadd.f32 %v474_v1, %v241_v48 }
  0x25   : > { %339 = vst [vmem:[%s497_s25 + $0xb8] sm:$0xff] %v307_v46  ;;  %v281_v56 = vadd.f32 %v474_v1, %v242_v49  ;;  %v244_v57 = vmul.f32 %v464_v0, %v205_v45  ;;  %v308_v58 = vmax.f32 %v276_v50, 0.0  ;;  %v309_v59 = vmax.f32 %v277_v51, 0.0 }
  0x26   : > { %v310_v60 = vmax.f32 %v278_v52, 0.0  ;;  %v282_v61 = vadd.f32 %v474_v1, %v243_v53  ;;  %v311_v62 = vmax.f32 %v279_v54, 0.0  ;;  %v312_v63 = vmax.f32 %v280_v55, 0.0 }
  0x27   : > { %v313_v2 = vmax.f32 %v281_v56, 0.0  ;;  %v283_v3 = vadd.f32 %v474_v1, %v244_v57  ;;  %340 = vst [vmem:[%s497_s25 + $0xc0] sm:$0xff] %v308_v58  ;;  %341 = vst [vmem:[%s497_s25 + $0xc8] sm:$0xff] %v309_v59 }
  0x28   : > { %342 = vst [vmem:[%s497_s25 + $0xd0] sm:$0xff] %v310_v60  ;;  %v314_v4 = vmax.f32 %v282_v61, 0.0  ;;  %343 = vst [vmem:[%s497_s25 + $0xd8] sm:$0xff] %v311_v62 }
  0x29   : > { %344 = vst [vmem:[%s497_s25 + $0xe0] sm:$0xff] %v312_v63  ;;  %345 = vst [vmem:[%s497_s25 + $0xe8] sm:$0xff] %v313_v2  ;;  %v315_v0 = vmax.f32 %v283_v3, 0.0 }
  0x2a   : > { %346 = vst [vmem:[%s497_s25 + $0xf0] sm:$0xff] %v314_v4 }
  0x2b   : > { %347 = vst [vmem:[%s497_s25 + $0xf8] sm:$0xff] %v315_v0 }
  0x2c PF: > { %s13_s12 = sadd.s32 1, %s431_s12  }
  0x2d   : > { %p10_p4 = scmp.ge.s32.totalorder %s13_s12, 4  }
  0x2f   :  { %12 = sbr.rel (!%p10_p4) target bundleno = 1 (0x1), region = 62 }

// kernel: _lambda_.2
= control target key start
LH: loop header
LB: loop body
LE: loop exit
PB: predicated region body
PF: predicated region fallthrough
CT: control target
= control target key end

     0   :  { %s2749_s12 = smov 0   ;;  %s4518_s0 = inlined_call_operand.vmem [shape: bf16[2,16,16,4], index: 0, kind: input, shape index: {}]   ;;  %s4519_s1 = inlined_call_operand.vmem [shape: bf16[128,128], index: 1, kind: input, shape index: {}]   ;;  %s4520_s2 = inlined_call_operand.vmem [shape: f32[512,128], index: 2, kind: output, shape index: {0}]   ;;  %s4521_s3 = inlined_call_operand.vmem [shape: f32[2,2,128], index: 3, kind: output, shape index: {1}]  }
   0x1 LB: > { %s2755_s13 = sadd.s32 4294967295, %s2718_s12   ;;  %p2522_p0 = scmp.ge.s32.totalorder %s2718_s12, 1  ;;  %s2718_s12 = sphi %s2749_s12, %s14_s12  }
   0x2   : > { %p140_p1 = scmp.lt.s32.totalorder %s2718_s12, 3 }
   0x4   : > { %p141_p2 = pnand %p2522_p0, %p140_p1 }
   0x6   : > { %144 = sbr.rel (%p141_p2) target bundleno = 856 (0x358), region = 28 }
   0xb   : > { %p168_p3 = scmp.lt.s32.totalorder %s2755_s13, 1  ;;  %v2720_v0 = vmov 0   ;;  %s2721_s19 = smov 4   ;;  %vm737_vm0 = vsmask.f32 3328  ;;  %vm522_vm2 = vcmask 27648  }
   0xc   : > { %188 = vst [vmem:[#allocation2 + $0x10] sm:$0xf] %v2720_v0  ;;  %184 = vst [vmem:[#allocation2] sm:$0xf] %v2720_v0  ;;  %vm738_vm1 = vsmask.f32 7440 }
   0xd   : > { %s2761_s14 = scalar_select %p168_p3, %s2755_s13, 1  ;;  %185 = vst [vmem:[#allocation2 + $0x4] sm:$0xf] %v2720_v0  ;;  %186 = vst [vmem:[#allocation2 + $0x8] sm:$0xf] %v2720_v0  ;;  %vm706_vm9 = vcmask 60448  }
   0xe   : > { %187 = vst [vmem:[#allocation2 + $0xc] sm:$0xf] %v2720_v0  ;;  %189 = vst [vmem:[#allocation2 + $0x14] sm:$0xf] %v2720_v0  ;;  %vm523_vm3 = vsmask.f32 7938 }
   0xf   : > { %190 = vst [vmem:[#allocation2 + $0x18] sm:$0xf] %v2720_v0  ;;  %191 = vst [vmem:[#allocation2 + $0x1c] sm:$0xf] %v2720_v0  ;;  %s2554_s15 = sshll.u32 %s2761_s14, 7  ;;  %s2722_s20 = smov 8  }
  0x10   : > { %192 = vst [vmem:[#allocation2 + $0x20] sm:$0xf] %v2720_v0  ;;  %193 = vst [vmem:[#allocation2 + $0x24] sm:$0xf] %v2720_v0  ;;  %s2767_s18 = scalar_lea.vmem %s4518_s0, %s2554_s15  ;;  %vm248_vm5 = vsmask.f32 256 }
  0x11   : > { %194 = vst [vmem:[#allocation2 + $0x28] sm:$0xf] %v2720_v0  ;;  %195 = vst [vmem:[#allocation2 + $0x2c] sm:$0xf] %v2720_v0  ;;  %v2770_v1 = vld [vmem:[%s2767_s18 + $0x8] sm:$0xf] }
  0x12   : > { %196 = vst [vmem:[#allocation2 + $0x30] sm:$0xf] %v2720_v0  ;;  %197 = vst [vmem:[#allocation2 + $0x34] sm:$0xf] %v2720_v0  ;;  %v2773_v2 = vld [vmem:[%s2767_s18] sm:$0xf]  ;;  %620 = vrot.lane.b32.xlu1 %v2770_v1, %s2721_s19 }
  0x13   : > { %198 = vst [vmem:[#allocation2 + $0x38] sm:$0xf] %v2720_v0  ;;  %199 = vst [vmem:[#allocation2 + $0x3c] sm:$0xf] %v2720_v0  ;;  %616 = vrot.lane.b32.xlu0 %v2773_v2, %s2721_s19  ;;  %v2780_v3 = vld [vmem:[%s2767_s18 + $0xc] sm:$0xf] }
  0x14   : > { %200 = vst [vmem:[#allocation2 + $0x40] sm:$0xf] %v2720_v0  ;;  %201 = vst [vmem:[#allocation2 + $0x44] sm:$0xf] %v2720_v0  ;;  %v2783_v4 = vld [vmem:[%s2767_s18 + $0x4] sm:$0xf] }
  0x15   : > { %202 = vst [vmem:[#allocation2 + $0x48] sm:$0xf] %v2720_v0  ;;  %203 = vst [vmem:[#allocation2 + $0x4c] sm:$0xf] %v2720_v0  ;;  %v2790_v5 = vld [vmem:[%s2767_s18 + $0x14] sm:$0xf] }
  0x16   : > { %204 = vst [vmem:[#allocation2 + $0x50] sm:$0xf] %v2720_v0  ;;  %205 = vst [vmem:[#allocation2 + $0x54] sm:$0xf] %v2720_v0  ;;  %622 = vrot.lane.b32.xlu1 %v2780_v3, %s2721_s19  ;;  %v2793_v6 = vld [vmem:[%s2767_s18 + $0x10] sm:$0xf] }
  0x17   : > { %206 = vst [vmem:[#allocation2 + $0x58] sm:$0xf] %v2720_v0  ;;  %207 = vst [vmem:[#allocation2 + $0x5c] sm:$0xf] %v2720_v0  ;;  %618 = vrot.lane.b32.xlu0 %v2783_v4, %s2721_s19  ;;  %v2800_v7 = vld [vmem:[%s2767_s18 + $0x1c] sm:$0xf] }
  0x18   : > { %208 = vst [vmem:[#allocation2 + $0x60] sm:$0xf] %v2720_v0  ;;  %209 = vst [vmem:[#allocation2 + $0x64] sm:$0xf] %v2720_v0  ;;  %v2803_v8 = vld [vmem:[%s2767_s18 + $0x18] sm:$0xf] }
  0x19   : > { %210 = vst [vmem:[#allocation2 + $0x68] sm:$0xf] %v2720_v0  ;;  %211 = vst [vmem:[#allocation2 + $0x6c] sm:$0xf] %v2720_v0  ;;  %v2810_v9 = vld [vmem:[%s2767_s18 + $0x24] sm:$0xf] }
  0x1a   : > { %212 = vst [vmem:[#allocation2 + $0x70] sm:$0xf] %v2720_v0  ;;  %213 = vst [vmem:[#allocation2 + $0x74] sm:$0xf] %v2720_v0  ;;  %626 = vrot.lane.b32.xlu1 %v2790_v5, %s2721_s19  ;;  %v2813_v10 = vld [vmem:[%s2767_s18 + $0x20] sm:$0xf] }
  0x1b   : > { %214 = vst [vmem:[#allocation2 + $0x78] sm:$0xf] %v2720_v0  ;;  %215 = vst [vmem:[#allocation2 + $0x7c] sm:$0xf] %v2720_v0  ;;  %624 = vrot.lane.b32.xlu0 %v2793_v6, %s2721_s19  ;;  %v260_v11 = vshrl.u32 %v2783_v4, 16  ;;  %v263_v12 = vshll.u32 %v2783_v4, 16 }
  0x1c   : > { %4606 = vst [vmem:[#allocation3_spill] sm:$0xff] %v2770_v1  ;;  %4607 = vst [vmem:[#allocation4_spill] sm:$0xff] %v2773_v2  ;;  %v2822_v13 = vld [vmem:[%s2767_s18 + $0x2c] sm:$0xf]  ;;  %v2825_v14 = vld [vmem:[%s2767_s18 + $0x28] sm:$0xf] }
  0x1d   : > { %4608 = vst [vmem:[#allocation5_spill] sm:$0xff] %v2783_v4  ;;  %v268_v15 = vshrl.u32 %v2770_v1, 16  ;;  %v252_v16 = vshrl.u32 %v2773_v2, 16  ;;  %v255_v17 = vshll.u32 %v2773_v2, 16  ;;  %v2838_v19 = vrot.slane %v263_v12, 5  ;;  %vm3095_vm4 = vmor %vm737_vm0, %vm738_vm1  ;;  %s2723_s21 = smov 12  }
  0x1e   : > { %630 = vrot.lane.b32.xlu1 %v2800_v7, %s2721_s19  ;;  %v746_v20 = vrot.slane %v260_v11, 4  ;;  %v4543_v21 = vshrl.u32 %v2780_v3, 16  ;;  %v4538_v22 = vshrl.u32 %v2813_v10, 16  ;;  %v4535_v23 = vshrl.u32 %v2825_v14, 16  ;;  %v2844_v24 = vld [vmem:[%s2767_s18 + $0x34] sm:$0xf]  ;;  %vm3199_vm7 = vmand %vm522_vm2, %vm523_vm3 }
  0x1f   : > { %628 = vrot.lane.b32.xlu0 %v2803_v8, %s2721_s19  ;;  %v2832_v18 = vrot.slane %v268_v15, 7  ;;  %v2847_v25 = vld [vmem:[%s2767_s18 + $0x30] sm:$0xf]  ;;  %v2849_v26 = vrot.slane %v252_v16, 7  ;;  %v262_v27 = vrot.slane %v260_v11, 7  ;;  %v4537_v28 = vshll.u32 %v2813_v10, 16 }
  0x20   : > { %v4532_v29 = vshrl.u32 %v2847_v25, 16  ;;  %v2855_v30 = vrot.slane %v4538_v22, 7  ;;  %v2859_v31 = vrot.slane %v4535_v23, 7  ;;  %v4533_v32 = vshll.u32 %v2825_v14, 16  ;;  %v2864_v34 = vld [vmem:[%s2767_s18 + $0x38] sm:$0xf] }
  0x21   : > { %v4529_v33 = vshll.u32 %v2847_v25, 16  ;;  %v2875_v36 = vld [vmem:[%s2767_s18 + $0x40] sm:$0xf]  ;;  %v2878_v37 = vld [vmem:[%s2767_s18 + $0x48] sm:$0xf]  ;;  %v747_v38 = vor.u32 %v746_v20, %v2838_v19  ;;  %v2881_v39 = vrot.slane %v252_v16, 4  ;;  %v2924_v56 = vor.u32 %v255_v17, %v2849_v26 }
  0x22   : > { %634 = vrot.lane.b32.xlu1 %v2810_v9, %s2721_s19  ;;  %v2870_v35 = vrot.slane %v4532_v29, 7  ;;  %4609 = vst [vmem:[#allocation6_spill] sm:$0xff] %v2878_v37  ;;  %v2884_v40 = vld [vmem:[%s2767_s18 + $0x3c] sm:$0xf]  ;;  %v4527_v41 = vshrl.u32 %v2864_v34, 16  ;;  %v4526_v42 = vshll.u32 %v2864_v34, 16  ;;  %v2926_v57 = vor.u32 %v263_v12, %v262_v27 }
  0x23   : > { %632 = vrot.lane.b32.xlu0 %v2813_v10, %s2721_s19  ;;  %v4525_v43 = vshrl.u32 %v2875_v36, 16  ;;  %v4524_v44 = vshrl.u32 %v2878_v37, 16  ;;  %v2891_v45 = vld [vmem:[%s2767_s18 + $0x50] sm:$0xf]  ;;  %v2894_v46 = vld [vmem:[%s2767_s18 + $0x58] sm:$0xf]  ;;  %v2942_v61 = vor.u32 %v4537_v28, %v2855_v30  ;;  %v2947_v62 = vor.u32 %v4533_v32, %v2859_v31 }
  0x24   : > { %4610 = vst [vmem:[#allocation7_spill] sm:$0xff] %v2891_v45  ;;  %4611 = vst [vmem:[#allocation8_spill] sm:$0xff] %v2894_v46  ;;  %v2898_v47 = vrot.slane %v4527_v41, 7  ;;  %v4530_v48 = vshll.u32 %v2875_v36, 16  ;;  %v4523_v49 = vshrl.u32 %v2891_v45, 16  ;;  %v4522_v50 = vshrl.u32 %v2894_v46, 16 }
  0x25   : > { %v2908_v51 = vld [vmem:[%s2767_s18 + $0x44] sm:$0xf]  ;;  %v2912_v52 = vrot.slane %v4525_v43, 7  ;;  %v2916_v53 = vrot.slane %v4524_v44, 7  ;;  %v4531_v54 = vshll.u32 %v2878_v37, 16  ;;  %v2919_v55 = vrot.slane %v747_v38, 4 }
  0x26   : > { %638 = vrot.lane.b32.xlu1 %v2822_v13, %s2721_s19  ;;  %4615 = vst [vmem:[#allocation12_spill] sm:$0xff] %v2924_v56  ;;  %v2930_v58 = vrot.slane %v4523_v49, 7  ;;  %v2934_v59 = vrot.slane %v4522_v50, 7  ;;  %v2937_v60 = vld [vmem:[%s2767_s18 + $0x60] sm:$0xf]  ;;  %4619 = vst [vmem:[#allocation16_spill] sm:$0xff] %v2942_v61  ;;  %v2954_v11 = vor.u32 %v4529_v33, %v2870_v35  ;;  %v2959_v12 = vor.u32 %v4526_v42, %v2898_v47 }
  0x27   : > { %636 = vrot.lane.b32.xlu0 %v2825_v14, %s2721_s19  ;;  %4612 = vst [vmem:[#allocation9_spill] sm:$0xff] %v2912_v52  ;;  %4613 = vst [vmem:[#allocation10_spill] sm:$0xff] %v2916_v53  ;;  %v4534_v63 = vshll.u32 %v2891_v45, 16  ;;  %v4528_v0 = vshrl.u32 %v2937_v60, 16  ;;  %v4536_v16 = vshll.u32 %v2894_v46, 16  ;;  %v4539_v20 = vshll.u32 %v2937_v60, 16 }
  0x28   : > { %4614 = vst [vmem:[#allocation11_spill] sm:$0xff] %v2919_v55  ;;  %4616 = vst [vmem:[#allocation13_spill] sm:$0xff] %v2930_v58  ;;  %v2964_v27 = vld [vmem:[%s2767_s18 + $0x68] sm:$0xf]  ;;  %v2971_v38 = vld [vmem:[%s2767_s18 + $0x4c] sm:$0xf]  ;;  %v2984_v42 = vor.u32 %v4530_v48, %v2912_v52  ;;  %v2989_v41 = vor.u32 %v4531_v54, %v2916_v53 }
  0x29   : > { %4617 = vst [vmem:[#allocation14_spill] sm:$0xff] %v2934_v59  ;;  %4618 = vst [vmem:[#allocation15_spill] sm:$0xff] %v2937_v60  ;;  %v2975_v50 = vrot.slane %v4528_v0, 7  ;;  %v4540_v49 = vshrl.u32 %v2964_v27, 16  ;;  %v741_v43 = vrot.slane %v255_v17, 5  ;;  %v2994_v0 = vor.u32 %v4534_v63, %v2930_v58  ;;  %s2724_s22 = smov 16  }
  0x2a   : > { %642 = vrot.lane.b32.xlu1 %v2844_v24, %s2721_s19  ;;  %4620 = vst [vmem:[#allocation17_spill] sm:$0xff] %v2959_v12  ;;  %4621 = vst [vmem:[#allocation18_spill] sm:$0xff] %v2964_v27  ;;  %v2999_v33 = vor.u32 %v4536_v16, %v2934_v59  ;;  %v3002_v17 = vld [vmem:[%s2767_s18 + $0x70] sm:$0xf]  ;;  %v4548_v48 = vshll.u32 %v2780_v3, 16  ;;  %v4549_v54 = vshll.u32 %v2770_v1, 16 }
  0x2b   : > { %640 = vrot.lane.b32.xlu0 %v2847_v25, %s2721_s19  ;;  %4622 = vst [vmem:[#allocation19_spill] sm:$0xff] %v2975_v50  ;;  %4623 = vst [vmem:[#allocation20_spill] sm:$0xff] %v2984_v42  ;;  %v4541_v63 = vshrl.u32 %v3002_v17, 16  ;;  %v3019_v28 = vor.u32 %v4539_v20, %v2975_v50  ;;  %v742_v22 = vor.u32 %v741_v43, %v2881_v39  ;;  %v3025_v16 = vld [vmem:[%s2767_s18 + $0x54] sm:$0xf]  ;;  %v3029_v44 = vrot.slane %v4540_v49, 7 }
  0x2c   : > { %4624 = vst [vmem:[#allocation21_spill] sm:$0xff] %v2989_v41  ;;  %4625 = vst [vmem:[#allocation22_spill] sm:$0xff] %v2994_v0  ;;  %v755_v20 = vrot.slane %v4543_v21, 4  ;;  %v749_v39 = vrot.slane %v268_v15, 4  ;;  %v3041_v43 = vrot.slane %v4548_v48, 5  ;;  %v750_v23 = vrot.slane %v4549_v54, 5 }
  0x2d   : > { %4626 = vst [vmem:[#allocation23_spill] sm:$0xff] %v2999_v33  ;;  %4627 = vst [vmem:[#allocation24_spill] sm:$0xff] %v3002_v17  ;;  %v3033_v32 = vrot.slane %v4541_v63, 7  ;;  %v4631_v49 = vshll.u32 %v2790_v5, 16  ;;  %v4632_v63 = vshrl.u32 %v2790_v5, 16  ;;  %v4633_v21 = vshrl.u32 %v2793_v6, 16 }
  0x2e   : > { %646 = vrot.lane.b32.xlu1 %v2884_v40, %s2721_s19  ;;  %4628 = vst [vmem:[#allocation25_spill] sm:$0xff] %v3019_v28  ;;  %4629 = vst [vmem:[#allocation26_spill] sm:$0xff] %v3029_v44  ;;  %v3068_v33 = vld [vmem:[%s2767_s18 + $0x5c] sm:$0xf]  ;;  %v4637_v28 = vshrl.u32 %v2813_v10, 16  ;;  %v4638_v59 = vshll.u32 %v2813_v10, 16  ;;  %v756_v10 = vor.u32 %v755_v20, %v3041_v43 }
  0x2f   : > { %644 = vrot.lane.b32.xlu0 %v2864_v34, %s2721_s19  ;;  %4630 = vst [vmem:[#allocation27_spill] sm:$0xff] %v3033_v32  ;;  %v3047_v29 = vrot.slane %v4631_v49, 5  ;;  %v764_v2 = vrot.slane %v4632_v63, 4  ;;  %v758_v4 = vrot.slane %v4633_v21, 4  ;;  %v4635_v49 = vshrl.u32 %v2803_v8, 16  ;;  %s2725_s23 = smov 20  }
  0x30   : > { %v4636_v63 = vshll.u32 %v2803_v8, 16  ;;  %v776_v48 = vrot.slane %v4637_v28, 4  ;;  %v777_v0 = vrot.slane %v4638_v59, 5  ;;  %v743_v21 = vrot.slane %v742_v22, 4  ;;  %s2726_s24 = smov 24   ;;  %s2727_s25 = smov 28  }
  0x31   : > { %v767_v54 = vrot.slane %v4635_v49, 4  ;;  %v4639_v49 = vshll.u32 %v2964_v27, 16  ;;  %v4642_v53 = vshll.u32 %v2825_v14, 16  ;;  %v751_v59 = vor.u32 %v750_v23, %v749_v39  ;;  %v3104_v39 = vld [vmem:[%s2767_s18 + $0x64] sm:$0xf]  ;;  %s2728_s16 = smov 32  }
  0x32   : > { %650 = vrot.lane.b32.xlu1 %v2908_v51, %s2721_s19  ;;  %v768_v50 = vrot.slane %v4636_v63, 5  ;;  %v4643_v58 = vshll.u32 %v2800_v7, 16  ;;  %v4651_v52 = vshrl.u32 %v2822_v13, 16  ;;  %vm249_vm6 = vsmask.f32 4368 }
  0x33   : > { %648 = vrot.lane.b32.xlu0 %v2875_v36, %s2721_s19  ;;  %v3079_v63 = vor.u32 %v4639_v49, %v3029_v44  ;;  %v786_v28 = vrot.slane %v4642_v53, 5  ;;  %vm3272_vm8 = vmor %vm248_vm5, %vm249_vm6  ;;  %vm965_vm10 = vcmask 93248   ;;  %vm1140_vm12 = vcmask 126048  }
  0x34   : > { %v771_v42 = vrot.slane %v4643_v58, 5  ;;  %v769_v53 = vor.u32 %v768_v50, %v767_v54  ;;  %v4648_v58 = vshrl.u32 %v2810_v9, 16  ;;  %vm3767_vm11 = vmand %vm965_vm10, %vm737_vm0  ;;  %vm1305_vm14 = vcmask 158848  }
  0x35   : > { %4640 = vst [vmem:[#allocation28_spill] sm:$0xff] %v3079_v63  ;;  %v4650_v63 = vshll.u32 %v2822_v13, 16  ;;  %vm3908_vm13 = vmand %vm1140_vm12, %vm523_vm3  ;;  %vm1443_vm15 = vcmask 191648   ;;  %vm1753_vm5 = vcmask 257248  }
  0x36   : > { %654 = vrot.lane.b32.xlu1 %v2971_v38, %s2721_s19  ;;  %v782_v20 = vrot.slane %v4648_v58, 4  ;;  %v770_v58 = vrot.slane %v769_v53, 4  ;;  %vm3946_vm1 = vmand %vm1443_vm15, %vm737_vm0 }
  0x37   : > { %652 = vrot.lane.b32.xlu0 %v2878_v37, %s2721_s19  ;;  %v4634_v37 = vshll.u32 %v2793_v6, 16  ;;  %v789_v44 = vrot.slane %v4650_v63, 5  ;;  %v4656_v63 = vshrl.u32 %v2847_v25, 16 }
  0x39   : > { %v759_v15 = vrot.slane %v4634_v37, 5  ;;  %v4641_v37 = vshrl.u32 %v2825_v14, 16  ;;  %v4644_v14 = vmov 0 }
  0x3a   : > { %658 = vrot.lane.b32.xlu1 %v3025_v16, %s2721_s19  ;;  %v4645_v14 = vsel %vm3095_vm4, 4294967295, %v4644_v14 }
  0x3b   : > { %656 = vrot.lane.b32.xlu0 %v2891_v45, %s2721_s19  ;;  %v785_v41 = vrot.slane %v4641_v37, 4  ;;  %v765_v45 = vor.u32 %v764_v2, %v3047_v29  ;;  %4646 = vst [vmem:[#allocation29_spill] sm:$0xff] %v4645_v14  ;;  %v760_v22 = vor.u32 %v759_v15, %v758_v4  ;;  %v4647_v2 = vshrl.u32 %v2800_v7, 16  ;;  %v534_v14 = vld [vmem:[#allocation2 + $0x18] sm:$0xf] }
  0x3c   : > { %v4649_v37 = vshll.u32 %v2810_v9, 16  ;;  %v791_v4 = vrot.slane %v4651_v52, 4  ;;  %v4652_v15 = vshll.u32 %v3002_v17, 16  ;;  %v794_v52 = vrot.slane %v4656_v63, 4 }
  0x3d   : > { %v773_v23 = vrot.slane %v4647_v2, 4  ;;  %v787_v54 = vor.u32 %v786_v28, %v785_v41  ;;  %v356_v2 = vshrl.u32 %v2844_v24, 16  ;;  %v752_v41 = vrot.slane %v751_v59, 4 }
  0x3e   : > { %662 = vrot.lane.b32.xlu1 %v3068_v33, %s2721_s19  ;;  %v780_v49 = vrot.slane %v4649_v37, 5  ;;  %v3115_v50 = vor.u32 %v4652_v15, %v3033_v32  ;;  %v4657_v37 = vshll.u32 %v2847_v25, 16  ;;  %v761_v28 = vrot.slane %v760_v22, 4 }
  0x3f   : > { %660 = vrot.lane.b32.xlu0 %v2894_v46, %s2721_s19  ;;  %v778_v46 = vor.u32 %v777_v0, %v776_v48  ;;  %v3122_v48 = vsel %vm3095_vm4, %v743_v21, %v2838_v19  ;;  %v3124_v0 = vrot.slane %v756_v10, 4  ;;  %v774_v15 = vor.u32 %v773_v23, %v771_v42  ;;  %v3135_v19 = vld [vmem:[%s2767_s18 + $0x6c] sm:$0xf] }
  0x40   : > { %4653 = vst [vmem:[#allocation30_spill] sm:$0xff] %v3115_v50  ;;  %4654 = vst [vmem:[#allocation31_spill] sm:$0xff] %v3122_v48  ;;  %v795_v12 = vrot.slane %v4657_v37, 5  ;;  %v3137_v21 = vrot.slane %v765_v45, 4  ;;  %v783_v10 = vor.u32 %v782_v20, %v780_v49  ;;  %v792_v63 = vor.u32 %v791_v4, %v789_v44 }
  0x41   : > { %4655 = vst [vmem:[#allocation32_spill] sm:$0xff] %v3124_v0  ;;  %v779_v50 = vrot.slane %v778_v46, 4  ;;  %v788_v25 = vrot.slane %v787_v54, 4  ;;  %v4658_v37 = vshll.u32 %v2844_v24, 16  ;;  %v372_v59 = vshrl.u32 %v2884_v40, 16 }
  0x42   : > { %666 = vrot.lane.b32.xlu1 %v3104_v39, %s2721_s19  ;;  %v796_v22 = vor.u32 %v795_v12, %v794_v52  ;;  %v4570_v23 = vshll.u32 %v2884_v40, 16  ;;  %v4659_v45 = vshrl.u32 %v2864_v34, 16  ;;  %v4661_v46 = vshll.u32 %v2864_v34, 16  ;;  %v3176_v52 = vld [vmem:[%s2767_s18 + $0x74] sm:$0xf] }
  0x43   : > { %664 = vrot.lane.b32.xlu0 %v2937_v60, %s2721_s19  ;;  %v3141_v32 = vrot.slane %v4658_v37, 5  ;;  %v3143_v60 = vrot.slane %v356_v2, 4  ;;  %v3162_v12 = vsel %vm3095_vm4, %v752_v41, %v3041_v43  ;;  %v3167_v4 = vsel %vm3095_vm4, %v761_v28, %v3047_v29 }
  0x44   : > { %v3149_v53 = vrot.slane %v4659_v45, 4  ;;  %v3153_v20 = vrot.slane %v4661_v46, 5  ;;  %4663 = vst [vmem:[#allocation35_spill] sm:$0xff] %v3162_v12  ;;  %v3169_v54 = vrot.slane %v774_v15, 4  ;;  %v3173_v34 = vsel %vm3095_vm4, %v770_v58, %v771_v42 }
  0x45   : > { %v3178_v37 = vrot.slane %v783_v10, 4  ;;  %v3182_v45 = vsel %vm3095_vm4, %v779_v50, %v780_v49  ;;  %v3184_v43 = vrot.slane %v792_v63, 4  ;;  %v3186_v41 = vrot.slane %v356_v2, 7  ;;  %v525_v50 = vld [vmem:[#allocation2 + $0x8] sm:$0xf] }
  0x46   : > { %4660 = vst [vmem:[#allocation33_spill] sm:$0xff] %v3149_v53  ;;  %4662 = vst [vmem:[#allocation34_spill] sm:$0xff] %v3153_v20  ;;  %670 = vrot.lane.b32.xlu1 %v3135_v19, %s2721_s19  ;;  %v3190_v29 = vsel %vm3095_vm4, %v788_v25, %v789_v44  ;;  %v3194_v58 = vrot.slane %v372_v59, 7  ;;  %v4575_v28 = vshrl.u32 %v2908_v51, 16  ;;  %v3203_v2 = vrot.slane %v796_v22, 4 }
  0x47   : > { %668 = vrot.lane.b32.xlu0 %v2964_v27, %s2721_s19  ;;  %v3207_v44 = vrot.slane %v4570_v23, 5  ;;  %v3209_v15 = vrot.slane %v372_v59, 4  ;;  %v530_v63 = vld [vmem:[#allocation2 + $0x10] sm:$0xf]  ;;  %v4667_v46 = vshrl.u32 %v2875_v36, 16  ;;  %v4669_v10 = vshll.u32 %v2770_v1, 16 }
  0x48   : > { %4666 = vst [vmem:[#allocation36_spill] sm:$0xff] %v3203_v2  ;;  %v3219_v25 = vrot.slane %v4575_v28, 7  ;;  %v4671_v23 = vshll.u32 %v2875_v36, 16  ;;  %v4577_v28 = vshrl.u32 %v3025_v16, 16  ;;  %v526_v22 = vsel %vm3199_vm7, %v2924_v56, %v525_v50 }
  0x49   : > { %v3224_v59 = vrot.slane %v4667_v46, 4  ;;  %v3229_v42 = vor.u32 %v4669_v10, %v2832_v18  ;;  %v4581_v1 = vshrl.u32 %v3104_v39, 16  ;;  %527 = vst [vmem:[#allocation2 + $0x8] sm:$0xf] %v526_v22  ;;  %v4676_v46 = vshrl.u32 %v2780_v3, 16 }
  0x4a   : > { %674 = vrot.lane.b32.xlu1 %v3176_v52, %s2721_s19  ;;  %v3233_v27 = vrot.slane %v4671_v23, 5  ;;  %v3252_v10 = vrot.slane %v4577_v28, 7  ;;  %v4678_v56 = vshrl.u32 %v2790_v5, 16  ;;  %v4679_v2 = vshrl.u32 %v2803_v8, 16 }
  0x4b   : > { %672 = vrot.lane.b32.xlu0 %v3002_v17, %s2721_s19  ;;  %4668 = vst [vmem:[#allocation37_spill] sm:$0xff] %v3224_v59  ;;  %4670 = vst [vmem:[#allocation38_spill] sm:$0xff] %v3229_v42  ;;  %v4578_v17 = vshrl.u32 %v2971_v38, 16  ;;  %v4579_v59 = vshrl.u32 %v3068_v33, 16  ;;  %v531_v36 = vsel %vm3199_vm7, %v3229_v42, %v530_v63  ;;  %v3266_v22 = vrot.slane %v4581_v1, 7 }
  0x4c   : > { %4672 = vst [vmem:[#allocation39_spill] sm:$0xff] %v3233_v27  ;;  %532 = vst [vmem:[#allocation2 + $0x10] sm:$0xf] %v531_v36  ;;  %v4673_v36 = vmov 0  ;;  %v278_v50 = vrot.slane %v4676_v46, 7  ;;  %v4677_v1 = vshrl.u32 %v2793_v6, 16  ;;  %v4720_v49 = vor.u32 %v3143_v60, %v3141_v32 }
  0x4d   : > { %v3248_v23 = vrot.slane %v4578_v17, 7  ;;  %v3262_v63 = vrot.slane %v4579_v59, 7  ;;  %v4589_v17 = vshrl.u32 %v3135_v19, 16  ;;  %v4674_v36 = vsel %vm3272_vm8, 4294967295, %v4673_v36  ;;  %v538_v42 = vld [vmem:[#allocation2 + $0x20] sm:$0xf] }
  0x4e   : > { %877 = vrot.lane.b32.xlu1 %v2919_v55, %s2722_s20  ;;  %4675 = vst [vmem:[#allocation40_spill] sm:$0xff] %v4674_v36  ;;  %v274_v59 = vrot.slane %v2832_v18, 4  ;;  %v286_v55 = vrot.slane %v4677_v1, 7  ;;  %v294_v27 = vrot.slane %v4678_v56, 7  ;;  %v302_v46 = vrot.slane %v4679_v2, 7 }
  0x4f   : > { %875 = vrot.lane.b32.xlu0 %v3122_v48, %s2722_s20  ;;  %v258_v48 = vrot.slane %v2849_v26, 4  ;;  %v3284_v28 = vrot.slane %v4589_v17, 7  ;;  %v4680_v18 = vshll.u32 %v2780_v3, 16  ;;  %v4681_v17 = vshll.u32 %v2793_v6, 16 }
  0x50   : > { %v290_v26 = vrot.slane %v286_v55, 4  ;;  %v306_v6 = vrot.slane %v302_v46, 4  ;;  %v4684_v2 = vshll.u32 %v2803_v8, 16 }
  0x51   : > { %v281_v53 = vor.u32 %v4680_v18, %v278_v50  ;;  %v3296_v1 = vsel %vm3272_vm8, %v258_v48, %v2926_v57  ;;  %v3300_v20 = vor.u32 %v4681_v17, %v286_v55  ;;  %v4682_v57 = vshll.u32 %v2790_v5, 16  ;;  %v542_v55 = vld [vmem:[#allocation2 + $0x28] sm:$0xf] }
  0x52   : > { %881 = vrot.lane.b32.xlu1 %v3124_v0, %s2722_s20  ;;  %529 = vst.msk [vmem:[#allocation2 + $0xc] sm:$0xf] %vm522_vm2, %v3296_v1  ;;  %v4683_v18 = vshrl.u32 %v2800_v7, 16  ;;  %v546_v0 = vld [vmem:[#allocation2 + $0x30] sm:$0xf] }
  0x53   : > { %879 = vrot.lane.b32.xlu0 %v3162_v12, %s2722_s20  ;;  %v297_v48 = vor.u32 %v4682_v57, %v294_v27  ;;  %v3314_v17 = vsel %vm3272_vm8, %v274_v59, %v281_v53  ;;  %v535_v50 = vsel %vm3199_vm7, %v3300_v20, %v534_v14  ;;  %v3323_v12 = vor.u32 %v4684_v2, %v302_v46  ;;  %v550_v46 = vld [vmem:[#allocation2 + $0x38] sm:$0xf]  ;;  %v4727_v60 = vld [vmem:[#allocation39_spill] sm:$0xff] }
  0x54   : > { %v310_v56 = vrot.slane %v4683_v18, 7  ;;  %v4685_v27 = vshrl.u32 %v3176_v52, 16  ;;  %533 = vst.msk [vmem:[#allocation2 + $0x14] sm:$0xf] %vm522_vm2, %v3314_v17  ;;  %536 = vst [vmem:[#allocation2 + $0x18] sm:$0xf] %v535_v50 }
  0x55   : > { %v3333_v53 = vsel %vm3272_vm8, %v290_v26, %v297_v48  ;;  %v322_v14 = vrot.slane %v2855_v30, 4  ;;  %v4686_v59 = vshrl.u32 %v2810_v9, 16  ;;  %v4687_v2 = vshll.u32 %v2800_v7, 16  ;;  %v554_v48 = vld [vmem:[#allocation2 + $0x40] sm:$0xf] }
  0x56   : > { %v3327_v57 = vrot.slane %v4685_v27, 7  ;;  %537 = vst.msk [vmem:[#allocation2 + $0x1c] sm:$0xf] %vm522_vm2, %v3333_v53  ;;  %v539_v27 = vsel %vm3199_vm7, %v3323_v12, %v538_v42  ;;  %v543_v26 = vsel %vm3199_vm7, %v2942_v61, %v542_v55  ;;  %v338_v30 = vrot.slane %v2859_v31, 4  ;;  %885 = vrot.lane.b32.xlu1 %v3137_v21, %s2722_s20 }
  0x57   : > { %v326_v8 = vrot.slane %v4686_v59, 7  ;;  %v313_v18 = vor.u32 %v4687_v2, %v310_v56  ;;  %883 = vrot.lane.b32.xlu0 %v3167_v4, %s2722_s20  ;;  %540 = vst [vmem:[#allocation2 + $0x20] sm:$0xf] %v539_v27  ;;  %v4688_v56 = vshll.u32 %v2810_v9, 16  ;;  %544 = vst [vmem:[#allocation2 + $0x28] sm:$0xf] %v543_v26  ;;  %v547_v55 = vsel %vm3199_vm7, %v2947_v62, %v546_v0 }
  0x58   : > { %v4689_v42 = vshrl.u32 %v2822_v13, 16  ;;  %v354_v31 = vrot.slane %v2870_v35, 4  ;;  %v558_v2 = vld [vmem:[#allocation2 + $0x48] sm:$0xf]  ;;  %548 = vst [vmem:[#allocation2 + $0x30] sm:$0xf] %v547_v55  ;;  %v551_v27 = vsel %vm3199_vm7, %v2954_v11, %v550_v46 }
  0x59   : > { %v329_v50 = vor.u32 %v4688_v56, %v326_v8  ;;  %v3363_v61 = vsel %vm3272_vm8, %v306_v6, %v313_v18  ;;  %v4690_v9 = vshll.u32 %v2844_v24, 16  ;;  %v370_v26 = vrot.slane %v2898_v47, 4  ;;  %552 = vst [vmem:[#allocation2 + $0x38] sm:$0xf] %v551_v27  ;;  %v4693_v18 = vld [vmem:[#allocation17_spill] sm:$0xff]  ;;  %v4697_v55 = vld [vmem:[#allocation10_spill] sm:$0xff] }
  0x5a   : > { %v342_v59 = vrot.slane %v4689_v42, 7  ;;  %541 = vst.msk [vmem:[#allocation2 + $0x24] sm:$0xf] %vm522_vm2, %v3363_v61  ;;  %v4691_v0 = vshll.u32 %v2822_v13, 16  ;;  %v4692_v24 = vshll.u32 %v2884_v40, 16  ;;  %v555_v46 = vsel %vm3199_vm7, %v4693_v18, %v554_v48  ;;  %v4694_v13 = vld [vmem:[#allocation9_spill] sm:$0xff]  ;;  %889 = vrot.lane.b32.xlu1 %v3169_v54, %s2722_s20 }
  0x5b   : > { %v361_v8 = vor.u32 %v4690_v9, %v3186_v41  ;;  %v3376_v35 = vsel %vm3272_vm8, %v322_v14, %v329_v50  ;;  %v562_v47 = vld [vmem:[#allocation2 + $0x50] sm:$0xf]  ;;  %556 = vst [vmem:[#allocation2 + $0x40] sm:$0xf] %v555_v46  ;;  %v386_v56 = vrot.slane %v4694_v13, 4  ;;  %v4695_v50 = vshll.u32 %v2908_v51, 16  ;;  %887 = vrot.lane.b32.xlu0 %v3173_v34, %s2722_s20 }
  0x5c   : > { %v345_v6 = vor.u32 %v4691_v0, %v342_v59  ;;  %v377_v41 = vor.u32 %v4692_v24, %v3194_v58  ;;  %545 = vst.msk [vmem:[#allocation2 + $0x2c] sm:$0xf] %vm522_vm2, %v3376_v35  ;;  %v4696_v58 = vld [vmem:[#allocation20_spill] sm:$0xff]  ;;  %v566_v48 = vld [vmem:[#allocation2 + $0x58] sm:$0xf]  ;;  %v4699_v27 = vld [vmem:[#allocation21_spill] sm:$0xff] }
  0x5d   : > { %v3390_v14 = vsel %vm3272_vm8, %v354_v31, %v361_v8  ;;  %v393_v40 = vor.u32 %v4695_v50, %v3219_v25  ;;  %v559_v42 = vsel %vm3199_vm7, %v4696_v58, %v558_v2  ;;  %v402_v31 = vrot.slane %v4697_v55, 4  ;;  %v570_v8 = vld [vmem:[#allocation2 + $0x60] sm:$0xf]  ;;  %v4700_v0 = vld [vmem:[#allocation13_spill] sm:$0xff]  ;;  %v4702_v13 = vld [vmem:[#allocation22_spill] sm:$0xff] }
  0x5e   : > { %v3405_v59 = vsel %vm3272_vm8, %v338_v30, %v345_v6  ;;  %553 = vst.msk [vmem:[#allocation2 + $0x3c] sm:$0xf] %vm522_vm2, %v3390_v14  ;;  %v3411_v25 = vsel %vm3272_vm8, %v370_v26, %v377_v41  ;;  %560 = vst [vmem:[#allocation2 + $0x48] sm:$0xf] %v559_v42  ;;  %v4698_v2 = vshll.u32 %v2971_v38, 16  ;;  %v563_v26 = vsel %vm3199_vm7, %v4699_v27, %v562_v47  ;;  %v4703_v47 = vld [vmem:[#allocation14_spill] sm:$0xff] }
  0x5f   : > { %549 = vst.msk [vmem:[#allocation2 + $0x34] sm:$0xf] %vm522_vm2, %v3405_v59  ;;  %557 = vst.msk [vmem:[#allocation2 + $0x44] sm:$0xf] %vm522_vm2, %v3411_v25  ;;  %v3423_v30 = vsel %vm3272_vm8, %v386_v56, %v393_v40  ;;  %v418_v6 = vrot.slane %v4700_v0, 4  ;;  %v567_v56 = vsel %vm3199_vm7, %v4702_v13, %v566_v48  ;;  %v434_v50 = vrot.slane %v4703_v47, 4  ;;  %893 = vrot.lane.b32.xlu1 %v3178_v37, %s2722_s20 }
  0x60   : > { %v409_v9 = vor.u32 %v4698_v2, %v3248_v23  ;;  %v4701_v23 = vshll.u32 %v3025_v16, 16  ;;  %v574_v41 = vld [vmem:[#allocation2 + $0x68] sm:$0xf]  ;;  %561 = vst.msk [vmem:[#allocation2 + $0x4c] sm:$0xf] %vm522_vm2, %v3423_v30  ;;  %v4704_v40 = vshll.u32 %v3068_v33, 16  ;;  %891 = vrot.lane.b32.xlu0 %v3182_v45, %s2722_s20 }
  0x61   : > { %564 = vst [vmem:[#allocation2 + $0x50] sm:$0xf] %v563_v26  ;;  %568 = vst [vmem:[#allocation2 + $0x58] sm:$0xf] %v567_v56  ;;  %v4706_v48 = vld [vmem:[#allocation19_spill] sm:$0xff]  ;;  %v4707_v26 = vshll.u32 %v3104_v39, 16 }
  0x62   : > { %v425_v24 = vor.u32 %v4701_v23, %v3252_v10  ;;  %v3436_v46 = vsel %vm3272_vm8, %v402_v31, %v409_v9  ;;  %v441_v42 = vor.u32 %v4704_v40, %v3262_v63  ;;  %v578_v10 = vld [vmem:[#allocation2 + $0x70] sm:$0xf]  ;;  %v4705_v31 = vld [vmem:[#allocation23_spill] sm:$0xff]  ;;  %v450_v9 = vrot.slane %v4706_v48, 4  ;;  %v582_v63 = vld [vmem:[#allocation2 + $0x78] sm:$0xf] }
  0x63   : > { %565 = vst.msk [vmem:[#allocation2 + $0x54] sm:$0xf] %vm522_vm2, %v3436_v46  ;;  %v571_v2 = vsel %vm3199_vm7, %v4705_v31, %v570_v8  ;;  %v457_v0 = vor.u32 %v4707_v26, %v3266_v22  ;;  %v4708_v8 = vld [vmem:[#allocation25_spill] sm:$0xff]  ;;  %v4709_v22 = vld [vmem:[#allocation26_spill] sm:$0xff]  ;;  %v4710_v56 = vshll.u32 %v3135_v19, 16  ;;  %v4714_v48 = vshll.u32 %v3176_v52, 16  ;;  %897 = vrot.lane.b32.xlu1 %v3184_v43, %s2722_s20 }
  0x64   : > { %v3449_v55 = vsel %vm3272_vm8, %v418_v6, %v425_v24  ;;  %v3466_v6 = vsel %vm3272_vm8, %v434_v50, %v441_v42  ;;  %572 = vst [vmem:[#allocation2 + $0x60] sm:$0xf] %v571_v2  ;;  %v575_v23 = vsel %vm3199_vm7, %v4708_v8, %v574_v41  ;;  %v466_v24 = vrot.slane %v4709_v22, 4  ;;  %v4712_v50 = vld [vmem:[#allocation28_spill] sm:$0xff]  ;;  %v4713_v2 = vld [vmem:[#allocation27_spill] sm:$0xff]  ;;  %895 = vrot.lane.b32.xlu0 %v3190_v29, %s2722_s20 }
  0x65   : > { %569 = vst.msk [vmem:[#allocation2 + $0x5c] sm:$0xf] %vm522_vm2, %v3449_v55  ;;  %v473_v47 = vor.u32 %v4710_v56, %v3284_v28  ;;  %573 = vst.msk [vmem:[#allocation2 + $0x64] sm:$0xf] %vm522_vm2, %v3466_v6  ;;  %v3479_v40 = vsel %vm3272_vm8, %v450_v9, %v457_v0  ;;  %v579_v42 = vsel %vm3199_vm7, %v4712_v50, %v578_v10  ;;  %v482_v41 = vrot.slane %v4713_v2, 4  ;;  %v4716_v9 = vld [vmem:[#allocation30_spill] sm:$0xff] }
  0x66   : > { %4711 = vst [vmem:[#allocation17_spill] sm:$0xff] %v3479_v40  ;;  %576 = vst [vmem:[#allocation2 + $0x68] sm:$0xf] %v575_v23  ;;  %v489_v26 = vor.u32 %v4714_v48, %v3327_v57  ;;  %v583_v0 = vsel %vm3199_vm7, %v4716_v9, %v582_v63  ;;  %v4717_v10 = vshll.u32 %v2908_v51, 16  ;;  %v4718_v22 = vshrl.u32 %v2908_v51, 16 }
  0x67   : > { %577 = vst.msk [vmem:[#allocation2 + $0x6c] sm:$0xf] %vm522_vm2, %v3479_v40  ;;  %v3492_v28 = vsel %vm3272_vm8, %v466_v24, %v473_v47  ;;  %580 = vst [vmem:[#allocation2 + $0x70] sm:$0xf] %v579_v42  ;;  %v3514_v63 = vrot.slane %v4720_v49, 4  ;;  %v810_v51 = vor.u32 %v3209_v15, %v3207_v44  ;;  %v4721_v24 = vld [vmem:[#allocation34_spill] sm:$0xff] }
  0x68   : > { %4715 = vst [vmem:[#allocation9_spill] sm:$0xff] %v3492_v28  ;;  %v816_v23 = vrot.slane %v4717_v10, 5  ;;  %v818_v56 = vrot.slane %v4718_v22, 4  ;;  %581 = vst.msk [vmem:[#allocation2 + $0x74] sm:$0xf] %vm522_vm2, %v3492_v28  ;;  %v3505_v57 = vsel %vm3272_vm8, %v482_v41, %v489_v26  ;;  %v4722_v47 = vld [vmem:[#allocation33_spill] sm:$0xff] }
  0x69   : > { %4719 = vst [vmem:[#allocation20_spill] sm:$0xff] %v3505_v57  ;;  %584 = vst [vmem:[#allocation2 + $0x78] sm:$0xf] %v583_v0  ;;  %v4723_v42 = vor.u32 %v4721_v24, %v4722_v47  ;;  %v4724_v41 = vld [vmem:[#allocation36_spill] sm:$0xff]  ;;  %v4726_v0 = vld [vmem:[#allocation37_spill] sm:$0xff]  ;;  %v4731_v47 = vshll.u32 %v2971_v38, 16  ;;  %901 = vrot.lane.b32.xlu1 %v3514_v63, %s2722_s20 }
  0x6a   : > { %585 = vst.msk [vmem:[#allocation2 + $0x7c] sm:$0xf] %vm522_vm2, %v3505_v57  ;;  %v3527_v26 = vsel %vm3095_vm4, %v4724_v41, %v3141_v32  ;;  %v814_v10 = vor.u32 %v4727_v60, %v4726_v0  ;;  %v4728_v22 = vld [vmem:[#allocation6_spill] sm:$0xff]  ;;  %v819_v24 = vor.u32 %v818_v56, %v816_v23  ;;  %v4732_v57 = vshrl.u32 %v2971_v38, 16  ;;  %v4733_v60 = vld [vmem:[#allocation7_spill] sm:$0xff] }
  0x6b   : > { %v806_v2 = vrot.slane %v4723_v42, 4  ;;  %v4729_v49 = vshrl.u32 %v4728_v22, 16  ;;  %v4730_v15 = vshll.u32 %v4728_v22, 16  ;;  %v825_v42 = vrot.slane %v4731_v47, 5  ;;  %899 = vrot.lane.b32.xlu0 %v3527_v26, %s2722_s20 }
  0x6c   : > { %v827_v8 = vrot.slane %v4732_v57, 4  ;;  %v3543_v32 = vrot.slane %v810_v51, 4  ;;  %v815_v56 = vrot.slane %v814_v10, 4  ;;  %v4734_v22 = vshrl.u32 %v4733_v60, 16 }
  0x6d   : > { %v821_v36 = vrot.slane %v4729_v49, 4  ;;  %v822_v9 = vrot.slane %v4730_v15, 5  ;;  %v3548_v41 = vsel %vm3095_vm4, %v806_v2, %v3207_v44  ;;  %v4735_v38 = vshll.u32 %v4733_v60, 16  ;;  %v4738_v2 = vld [vmem:[#allocation8_spill] sm:$0xff] }
  0x6e   : > { %v830_v49 = vrot.slane %v4734_v22, 4  ;;  %v3554_v15 = vrot.slane %v819_v24, 4  ;;  %v828_v47 = vor.u32 %v827_v8, %v825_v42  ;;  %905 = vrot.lane.b32.xlu1 %v3543_v32, %s2722_s20  ;;  %v4736_v44 = vshll.u32 %v3025_v16, 16 }
  0x6f   : > { %v823_v0 = vor.u32 %v822_v9, %v821_v36  ;;  %v831_v57 = vrot.slane %v4735_v38, 5  ;;  %903 = vrot.lane.b32.xlu0 %v3548_v41, %s2722_s20  ;;  %v4737_v36 = vshrl.u32 %v3025_v16, 16  ;;  %v4739_v10 = vshrl.u32 %v4738_v2, 16 }
  0x70   : > { %v834_v51 = vrot.slane %v4736_v44, 5  ;;  %v4740_v60 = vshll.u32 %v4738_v2, 16  ;;  %v3570_v8 = vsel %vm3095_vm4, %v815_v56, %v816_v23  ;;  %v4741_v40 = vshll.u32 %v3068_v33, 16 }
  0x71   : > { %v836_v9 = vrot.slane %v4737_v36, 4  ;;  %v839_v22 = vrot.slane %v4739_v10, 4  ;;  %v824_v38 = vrot.slane %v823_v0, 4  ;;  %v832_v50 = vor.u32 %v831_v57, %v830_v49  ;;  %v4743_v0 = vld [vmem:[#allocation15_spill] sm:$0xff] }
  0x72   : > { %v840_v24 = vrot.slane %v4740_v60, 5  ;;  %v843_v28 = vrot.slane %v4741_v40, 5  ;;  %v4742_v44 = vshrl.u32 %v3068_v33, 16  ;;  %909 = vrot.lane.b32.xlu1 %v3554_v15, %s2722_s20  ;;  %v3580_v16 = vrot.slane %v828_v47, 4 }
  0x73   : > { %907 = vrot.lane.b32.xlu0 %v3570_v8, %s2722_s20  ;;  %v837_v36 = vor.u32 %v836_v9, %v834_v51  ;;  %v3584_v23 = vsel %vm3095_vm4, %v824_v38, %v825_v42  ;;  %v833_v56 = vrot.slane %v832_v50, 4  ;;  %v4744_v40 = vshrl.u32 %v4743_v0, 16  ;;  %v4749_v38 = vld [vmem:[#allocation18_spill] sm:$0xff] }
  0x74   : > { %v845_v13 = vrot.slane %v4742_v44, 4  ;;  %v841_v2 = vor.u32 %v840_v24, %v839_v22  ;;  %v4745_v33 = vshll.u32 %v4743_v0, 16  ;;  %v4747_v42 = vshll.u32 %v3104_v39, 16 }
  0x75   : > { %v848_v49 = vrot.slane %v4744_v40, 4  ;;  %v3594_v47 = vrot.slane %v837_v36, 4  ;;  %v4748_v50 = vshrl.u32 %v3104_v39, 16  ;;  %v3602_v24 = vsel %vm3095_vm4, %v833_v56, %v834_v51 }
  0x76   : > { %v849_v57 = vrot.slane %v4745_v33, 5  ;;  %v846_v10 = vor.u32 %v845_v13, %v843_v28  ;;  %913 = vrot.lane.b32.xlu1 %v3580_v16, %s2722_s20  ;;  %v842_v9 = vrot.slane %v841_v2, 4  ;;  %v852_v22 = vrot.slane %v4747_v42, 5 }
  0x77   : > { %911 = vrot.lane.b32.xlu0 %v3584_v23, %s2722_s20  ;;  %4746 = vst [vmem:[#allocation10_spill] sm:$0xff] %v3594_v47  ;;  %v854_v60 = vrot.slane %v4748_v50, 4  ;;  %v4750_v44 = vshrl.u32 %v4749_v38, 16  ;;  %v4751_v40 = vshll.u32 %v4749_v38, 16  ;;  %v4752_v2 = vshll.u32 %v3135_v19, 16  ;;  %v4754_v50 = vld [vmem:[#allocation24_spill] sm:$0xff] }
  0x78   : > { %v850_v13 = vor.u32 %v849_v57, %v848_v49  ;;  %v3608_v36 = vrot.slane %v846_v10, 4  ;;  %v3616_v39 = vsel %vm3095_vm4, %v842_v9, %v843_v28  ;;  %v4753_v49 = vshrl.u32 %v3135_v19, 16 }
  0x79   : > { %v857_v0 = vrot.slane %v4750_v44, 4  ;;  %v858_v33 = vrot.slane %v4751_v40, 5  ;;  %v855_v51 = vor.u32 %v854_v60, %v852_v22  ;;  %v861_v56 = vrot.slane %v4752_v2, 5 }
  0x7a   : > { %917 = vrot.lane.b32.xlu1 %v3594_v47, %s2722_s20  ;;  %v863_v57 = vrot.slane %v4753_v49, 4  ;;  %v851_v42 = vrot.slane %v850_v13, 4  ;;  %v4755_v38 = vshrl.u32 %v4754_v50, 16  ;;  %v4756_v40 = vshll.u32 %v4754_v50, 16 }
  0x7b   : > { %915 = vrot.lane.b32.xlu0 %v3602_v24, %s2722_s20  ;;  %v859_v10 = vor.u32 %v858_v33, %v857_v0  ;;  %v3630_v28 = vrot.slane %v855_v51, 4  ;;  %v4757_v19 = vshll.u32 %v3176_v52, 16  ;;  %v4758_v13 = vshrl.u32 %v3176_v52, 16 }
  0x7c   : > { %v866_v44 = vrot.slane %v4755_v38, 4  ;;  %v867_v47 = vrot.slane %v4756_v40, 5  ;;  %v864_v9 = vor.u32 %v863_v57, %v861_v56  ;;  %v3638_v33 = vsel %vm3095_vm4, %v851_v42, %v852_v22 }
  0x7d   : > { %v870_v60 = vrot.slane %v4757_v19, 5  ;;  %v872_v0 = vrot.slane %v4758_v13, 4  ;;  %v860_v2 = vrot.slane %v859_v10, 4  ;;  %v4760_v19 = vld [vmem:[#allocation38_spill] sm:$0xff]  ;;  %vm1600_vm2 = vcmask 224448  }
  0x7e   : > { %921 = vrot.lane.b32.xlu1 %v3608_v36, %s2722_s20  ;;  %v868_v49 = vor.u32 %v867_v47, %v866_v44  ;;  %v3644_v51 = vrot.slane %v864_v9, 4  ;;  %v4759_v44 = vld [vmem:[#allocation12_spill] sm:$0xff]  ;;  %vm4024_vm6 = vmand %vm1600_vm2, %vm523_vm3  ;;  %vm1874_vm3 = vcmask 290048  }
  0x7f   : > { %919 = vrot.lane.b32.xlu0 %v3616_v39, %s2722_s20  ;;  %v873_v57 = vor.u32 %v872_v0, %v870_v60  ;;  %v3648_v50 = vsel %vm3095_vm4, %v860_v2, %v861_v56  ;;  %vm4057_vm7 = vmand %vm1874_vm3, %vm737_vm0  ;;  %vm2428_vm0 = vcmask 1040384  }
  0x80   : > { %v869_v52 = vrot.slane %v868_v49, 4 }
  0x81   : > { %v3654_v47 = vrot.slane %v873_v57, 4 }
  0x82   : > { %925 = vrot.lane.b32.xlu1 %v3630_v28, %s2722_s20  ;;  %v3658_v22 = vsel %vm3095_vm4, %v869_v52, %v870_v60 }
  0x83   : > { %923 = vrot.lane.b32.xlu0 %v3638_v33, %s2722_s20 }
  0x84   : > { %v621_v42 = vpop.permute.xlu1 %620 }
  0x85   : > { %v617_v10 = vpop.permute.xlu0 %616  ;;  %709 = vst.msk [vmem:[#allocation2 + $0x10] sm:$0xf] %vm706_vm9, %v621_v42 }
  0x86   : > { %929 = vrot.lane.b32.xlu1 %v3644_v51, %s2722_s20  ;;  %707 = vst.msk [vmem:[#allocation2 + $0x8] sm:$0xf] %vm706_vm9, %v617_v10  ;;  %v4763_v10 = vld [vmem:[#allocation11_spill] sm:$0xff] }
  0x87   : > { %927 = vrot.lane.b32.xlu0 %v3648_v50, %s2722_s20 }
  0x88   : > { %v623_v56 = vpop.permute.xlu1 %622 }
  0x89   : > { %v619_v38 = vpop.permute.xlu0 %618  ;;  %710 = vst.msk [vmem:[#allocation2 + $0x14] sm:$0xf] %vm706_vm9, %v623_v56 }
  0x8a   : > { %933 = vrot.lane.b32.xlu1 %v3654_v47, %s2722_s20  ;;  %708 = vst.msk [vmem:[#allocation2 + $0xc] sm:$0xf] %vm706_vm9, %v619_v38 }
  0x8b   : > { %931 = vrot.lane.b32.xlu0 %v3658_v22, %s2722_s20 }
  0x8c   : > { %v627_v40 = vpop.permute.xlu1 %626 }
  0x8d   : > { %v625_v9 = vpop.permute.xlu0 %624  ;;  %712 = vst.msk [vmem:[#allocation2 + $0x1c] sm:$0xf] %vm706_vm9, %v627_v40 }
  0x8e   : > { %1046 = vrot.lane.b32.xlu1 %v3296_v1, %s2723_s21  ;;  %711 = vst.msk [vmem:[#allocation2 + $0x18] sm:$0xf] %vm706_vm9, %v625_v9  ;;  %v4761_v1 = vld [vmem:[#allocation5_spill] sm:$0xff] }
  0x8f   : > { %1044 = vrot.lane.b32.xlu0 %v4759_v44, %s2723_s21  ;;  %v4764_v44 = vld [vmem:[#allocation3_spill] sm:$0xff] }
  0x90   : > { %v631_v60 = vpop.permute.xlu1 %630 }
  0x91   : > { %v629_v13 = vpop.permute.xlu0 %628  ;;  %714 = vst.msk [vmem:[#allocation2 + $0x24] sm:$0xf] %vm706_vm9, %v631_v60  ;;  %v4766_v60 = vld [vmem:[#allocation31_spill] sm:$0xff] }
  0x92   : > { %1050 = vrot.lane.b32.xlu1 %v3314_v17, %s2723_s21  ;;  %713 = vst.msk [vmem:[#allocation2 + $0x20] sm:$0xf] %vm706_vm9, %v629_v13 }
  0x93   : > { %1048 = vrot.lane.b32.xlu0 %v4760_v19, %s2723_s21 }
  0x94   : > { %v635_v0 = vpop.permute.xlu1 %634 }
  0x95   : > { %v633_v2 = vpop.permute.xlu0 %632  ;;  %716 = vst.msk [vmem:[#allocation2 + $0x2c] sm:$0xf] %vm706_vm9, %v635_v0 }
  0x96   : > { %1215 = vrot.lane.b32.xlu1 %v2780_v3, %s2724_s22  ;;  %715 = vst.msk [vmem:[#allocation2 + $0x28] sm:$0xf] %vm706_vm9, %v633_v2  ;;  %v4762_v3 = vld [vmem:[#allocation4_spill] sm:$0xff] }
  0x97   : > { %1211 = vrot.lane.b32.xlu0 %v4761_v1, %s2724_s22 }
  0x98   : > { %v639_v49 = vpop.permute.xlu1 %638 }
  0x99   : > { %v637_v57 = vpop.permute.xlu0 %636  ;;  %718 = vst.msk [vmem:[#allocation2 + $0x34] sm:$0xf] %vm706_vm9, %v639_v49  ;;  %v2684_v49 = vld [vmem:[%s2767_s18 + $0xc] sm:$0xf] }
  0x9a   : > { %1054 = vrot.lane.b32.xlu1 %v3333_v53, %s2723_s21  ;;  %717 = vst.msk [vmem:[#allocation2 + $0x30] sm:$0xf] %vm706_vm9, %v637_v57 }
  0x9b   : > { %1052 = vrot.lane.b32.xlu0 %v3300_v20, %s2723_s21 }
  0x9c   : > { %v643_v52 = vpop.permute.xlu1 %642 }
  0x9d   : > { %v641_v42 = vpop.permute.xlu0 %640  ;;  %720 = vst.msk [vmem:[#allocation2 + $0x3c] sm:$0xf] %vm706_vm9, %v643_v52 }
  0x9e   : > { %1209 = vrot.lane.b32.xlu1 %v4762_v3, %s2724_s22  ;;  %719 = vst.msk [vmem:[#allocation2 + $0x38] sm:$0xf] %vm706_vm9, %v641_v42 }
  0x9f   : > { %1058 = vrot.lane.b32.xlu0 %v3363_v61, %s2723_s21 }
  0xa0   : > { %v647_v56 = vpop.permute.xlu1 %646 }
  0xa1   : > { %v645_v38 = vpop.permute.xlu0 %644  ;;  %722 = vst.msk [vmem:[#allocation2 + $0x44] sm:$0xf] %vm706_vm9, %v647_v56  ;;  %v2660_v56 = vld [vmem:[%s4519_s1 + $0x38] sm:$0xff]  }
  0xa2   : > { %1349 = vrot.lane.b32.xlu1 %v4763_v10, %s2725_s23  ;;  %721 = vst.msk [vmem:[#allocation2 + $0x40] sm:$0xf] %vm706_vm9, %v645_v38  ;;  %v3744_v38 = vld [vmem:[%s2767_s18 + $0x24] sm:$0xf]  ;;  %2579 = vmatprep.subr.bf16.mxu0 %v2660_v56 }
  0xa3   : > { %1219 = vrot.lane.b32.xlu0 %v2790_v5, %s2724_s22  ;;  %v4765_v5 = vld [vmem:[#allocation32_spill] sm:$0xff]  ;;  %2627 = vmatprep.subr.bf16.mxu1 %v2660_v56 }
  0xa4   : > { %v651_v40 = vpop.permute.xlu1 %650  ;;  %2580 = vmatpush3.bf16.msra.mxu0 %v2660_v56  ;;  %2635 = vmatpush3.bf16.msra.mxu1 %v2660_v56  ;;  %v2663_v56 = vld [vmem:[%s4519_s1 + $0x20] sm:$0xff]  }
  0xa5   : > { %v649_v9 = vpop.permute.xlu0 %648  ;;  %724 = vst.msk [vmem:[#allocation2 + $0x4c] sm:$0xf] %vm706_vm9, %v651_v40 }
  0xa6   : > { %1223 = vrot.lane.b32.xlu1 %v2800_v7, %s2724_s22  ;;  %723 = vst.msk [vmem:[#allocation2 + $0x48] sm:$0xf] %vm706_vm9, %v649_v9  ;;  %v4767_v7 = vld [vmem:[#allocation35_spill] sm:$0xff] }
  0xa7   : > { %1213 = vrot.lane.b32.xlu0 %v4764_v44, %s2724_s22  ;;  %v3749_v44 = vld [vmem:[%s2767_s18 + $0x10] sm:$0xf] }
  0xa8   : > { %v655_v13 = vpop.permute.xlu1 %654 }
  0xa9   : > { %v653_v1 = vpop.permute.xlu0 %652  ;;  %726 = vst.msk [vmem:[#allocation2 + $0x54] sm:$0xf] %vm706_vm9, %v655_v13  ;;  %v3759_v13 = vld [vmem:[%s2767_s18 + $0x18] sm:$0xf] }
  0xaa   : > { %1353 = vrot.lane.b32.xlu1 %v4765_v5, %s2725_s23  ;;  %725 = vst.msk [vmem:[#allocation2 + $0x50] sm:$0xf] %vm706_vm9, %v653_v1 }
  0xab   : > { %1347 = vrot.lane.b32.xlu0 %v4766_v60, %s2725_s23  ;;  %v2661_v60 = vld [vmem:[%s4519_s1 + $0x30] sm:$0xff]  }
  0xac   : > { %v659_v0 = vpop.permute.xlu1 %658  ;;  %2581 = vmatprep.subr.bf16.mxu0 %v2661_v60  ;;  %2628 = vmatprep.subr.bf16.mxu1 %v2661_v60 }
  0xad   : > { %v657_v2 = vpop.permute.xlu0 %656  ;;  %728 = vst.msk [vmem:[#allocation2 + $0x5c] sm:$0xf] %vm706_vm9, %v659_v0  ;;  %2582 = vmatpush3.bf16.msra.mxu0 %v2661_v60  ;;  %2636 = vmatpush3.bf16.msra.mxu1 %v2661_v60 }
  0xae   : > { %1512 = vrot.lane.b32.xlu1 %v3314_v17, %s2726_s24  ;;  %727 = vst.msk [vmem:[#allocation2 + $0x58] sm:$0xf] %vm706_vm9, %v657_v2  ;;  %v2685_v17 = vld [vmem:[%s2767_s18 + $0x14] sm:$0xf]  ;;  %v969_v2 = vld [vmem:[#allocation2 + $0xc] sm:$0xf] }
  0xaf   : > { %1351 = vrot.lane.b32.xlu0 %v4767_v7, %s2725_s23 }
  0xb0   : > { %v663_v57 = vpop.permute.xlu1 %662 }
  0xb1   : > { %v661_v3 = vpop.permute.xlu0 %660  ;;  %730 = vst.msk [vmem:[#allocation2 + $0x64] sm:$0xf] %vm706_vm9, %v663_v57 }
  0xb2   : > { %1665 = vrot.lane.b32.xlu1 %v2684_v49, %s2727_s25  ;;  %729 = vst.msk [vmem:[#allocation2 + $0x60] sm:$0xf] %vm706_vm9, %v661_v3  ;;  %v2662_v3 = vld [vmem:[%s4519_s1 + $0x28] sm:$0xff]  }
  0xb3   : > { %1516 = vrot.lane.b32.xlu0 %v3333_v53, %s2726_s24  ;;  %2583 = vmatprep.subr.bf16.mxu0 %v2662_v3 }
  0xb4   : > { %v667_v52 = vpop.permute.xlu1 %666  ;;  %2629 = vmatprep.subr.bf16.mxu1 %v2662_v3  ;;  %2584 = vmatpush3.bf16.msra.mxu0 %v2662_v3 }
  0xb5   : > { %v665_v42 = vpop.permute.xlu0 %664  ;;  %732 = vst.msk [vmem:[#allocation2 + $0x6c] sm:$0xf] %vm706_vm9, %v667_v52  ;;  %v973_v52 = vld [vmem:[#allocation2 + $0x14] sm:$0xf]  ;;  %2637 = vmatpush3.bf16.msra.mxu1 %v2662_v3  ;;  %2585 = vmatprep.subr.bf16.mxu0 %v2663_v56 }
  0xb6   : > { %1056 = vrot.lane.b32.xlu1 %v3323_v12, %s2723_s21  ;;  %731 = vst.msk [vmem:[#allocation2 + $0x68] sm:$0xf] %vm706_vm9, %v665_v42  ;;  %2630 = vmatprep.subr.bf16.mxu1 %v2663_v56 }
  0xb7   : > { %1669 = vrot.lane.b32.xlu0 %v2685_v17, %s2727_s25  ;;  %v3780_v17 = vld [vmem:[%s2767_s18 + $0x2c] sm:$0xf] }
  0xb8   : > { %v671_v53 = vpop.permute.xlu1 %670  ;;  %2586 = vmatpush3.bf16.msra.mxu0 %v2663_v56 }
  0xb9   : > { %v669_v10 = vpop.permute.xlu0 %668  ;;  %734 = vst.msk [vmem:[#allocation2 + $0x74] sm:$0xf] %vm706_vm9, %v671_v53  ;;  %2638 = vmatpush3.bf16.msra.mxu1 %v2663_v56  ;;  %v2666_v56 = vld [vmem:[%s4519_s1 + $0x8] sm:$0xff]  }
  0xba   : > { %1066 = vrot.lane.b32.xlu1 %v3405_v59, %s2723_s21  ;;  %733 = vst.msk [vmem:[#allocation2 + $0x70] sm:$0xf] %vm706_vm9, %v669_v10 }
  0xbb   : > { %1062 = vrot.lane.b32.xlu0 %v3376_v35, %s2723_s21 }
  0xbc   : > { %v675_v40 = vpop.permute.xlu1 %674 }
  0xbd   : > { %v673_v9 = vpop.permute.xlu0 %672  ;;  %736 = vst.msk [vmem:[#allocation2 + $0x7c] sm:$0xf] %vm706_vm9, %v675_v40  ;;  %v977_v40 = vld [vmem:[#allocation2 + $0x1c] sm:$0xf] }
  0xbe   : > { %1227 = vrot.lane.b32.xlu1 %v3744_v38, %s2724_s22  ;;  %735 = vst.msk [vmem:[#allocation2 + $0x78] sm:$0xf] %vm706_vm9, %v673_v9 }
  0xbf   : > { %1217 = vrot.lane.b32.xlu0 %v3749_v44, %s2724_s22 }
  0xc0   : > { %v878_v0 = vpop.permute.xlu1 %877 }
  0xc1   : > { %v876_v49 = vpop.permute.xlu0 %875  ;;  %v970_v57 = vsel %vm3767_vm11, %v878_v0, %v969_v2  ;;  %v2664_v2 = vld [vmem:[%s4519_s1 + $0x18] sm:$0xff]  }
  0xc2   : > { %1221 = vrot.lane.b32.xlu1 %v3759_v13, %s2724_s22  ;;  %966 = vst.msk [vmem:[#allocation2 + $0x8] sm:$0xf] %vm965_vm10, %v876_v49  ;;  %971 = vst [vmem:[#allocation2 + $0xc] sm:$0xf] %v970_v57  ;;  %2587 = vmatprep.subr.bf16.mxu0 %v2664_v2 }
  0xc3   : > { %1357 = vrot.lane.b32.xlu0 %v3137_v21, %s2725_s23  ;;  %2631 = vmatprep.subr.bf16.mxu1 %v2664_v2 }
  0xc4   : > { %v882_v42 = vpop.permute.xlu1 %881  ;;  %2588 = vmatpush3.bf16.msra.mxu0 %v2664_v2  ;;  %2639 = vmatpush3.bf16.msra.mxu1 %v2664_v2  ;;  %v2668_v2 = vld [vmem:[%s4519_s1] sm:$0xff]  }
  0xc5   : > { %v880_v53 = vpop.permute.xlu0 %879  ;;  %v974_v10 = vsel %vm3767_vm11, %v882_v42, %v973_v52  ;;  %v985_v52 = vld [vmem:[#allocation2 + $0x2c] sm:$0xf] }
  0xc6   : > { %1355 = vrot.lane.b32.xlu1 %v3167_v4, %s2725_s23  ;;  %972 = vst.msk [vmem:[#allocation2 + $0x10] sm:$0xf] %vm965_vm10, %v880_v53  ;;  %975 = vst [vmem:[#allocation2 + $0x14] sm:$0xf] %v974_v10 }
  0xc7   : > { %1231 = vrot.lane.b32.xlu0 %v3780_v17, %s2724_s22 }
  0xc8   : > { %v886_v9 = vpop.permute.xlu1 %885 }
  0xc9   : > { %v884_v60 = vpop.permute.xlu0 %883  ;;  %v978_v0 = vsel %vm3767_vm11, %v886_v9, %v977_v40  ;;  %v989_v40 = vld [vmem:[#allocation2 + $0x34] sm:$0xf] }
  0xca   : > { %1510 = vrot.lane.b32.xlu1 %v4760_v19, %s2726_s24  ;;  %976 = vst.msk [vmem:[#allocation2 + $0x18] sm:$0xf] %vm965_vm10, %v884_v60  ;;  %979 = vst [vmem:[#allocation2 + $0x1c] sm:$0xf] %v978_v0  ;;  %v981_v19 = vld [vmem:[#allocation2 + $0x24] sm:$0xf] }
  0xcb   : > { %1361 = vrot.lane.b32.xlu0 %v3169_v54, %s2725_s23 }
  0xcc   : > { %v890_v49 = vpop.permute.xlu1 %889 }
  0xcd   : > { %v888_v57 = vpop.permute.xlu0 %887  ;;  %v982_v3 = vsel %vm3767_vm11, %v890_v49, %v981_v19  ;;  %v993_v19 = vld [vmem:[#allocation2 + $0x3c] sm:$0xf] }
  0xce   : > { %1514 = vrot.lane.b32.xlu1 %v3300_v20, %s2726_s24  ;;  %980 = vst.msk [vmem:[#allocation2 + $0x20] sm:$0xf] %vm965_vm10, %v888_v57  ;;  %v2665_v20 = vld [vmem:[%s4519_s1 + $0x10] sm:$0xff]   ;;  %983 = vst [vmem:[#allocation2 + $0x24] sm:$0xf] %v982_v3 }
  0xcf   : > { %1359 = vrot.lane.b32.xlu0 %v3173_v34, %s2725_s23  ;;  %2589 = vmatprep.subr.bf16.mxu0 %v2665_v20 }
  0xd0   : > { %2632 = vmatprep.subr.bf16.mxu1 %v2665_v20  ;;  %2590 = vmatpush3.bf16.msra.mxu0 %v2665_v20 }
  0xd1   : > { %v894_v42 = vpop.permute.xlu1 %893  ;;  %2640 = vmatpush3.bf16.msra.mxu1 %v2665_v20  ;;  %2591 = vmatprep.subr.bf16.mxu0 %v2666_v56 }
  0xd2   : > { %1524 = vrot.lane.b32.xlu1 %v3376_v35, %s2726_s24  ;;  %v892_v53 = vpop.permute.xlu0 %891  ;;  %v986_v10 = vsel %vm3767_vm11, %v894_v42, %v985_v52  ;;  %v2690_v35 = vld [vmem:[%s2767_s18 + $0x1c] sm:$0xf]  ;;  %2633 = vmatprep.subr.bf16.mxu1 %v2666_v56  ;;  %v1001_v42 = vld [vmem:[#allocation2 + $0x4c] sm:$0xf] }
  0xd3   : > { %1520 = vrot.lane.b32.xlu0 %v3363_v61, %s2726_s24  ;;  %984 = vst.msk [vmem:[#allocation2 + $0x28] sm:$0xf] %vm965_vm10, %v892_v53  ;;  %987 = vst [vmem:[#allocation2 + $0x2c] sm:$0xf] %v986_v10  ;;  %v2691_v61 = vld [vmem:[%s2767_s18 + $0x8] sm:$0xf] }
  0xd4   : > { %2592 = vmatpush3.bf16.msra.mxu0 %v2666_v56  ;;  %v4770_v10 = vld [vmem:[#allocation16_spill] sm:$0xff] }
  0xd5   : > { %v898_v9 = vpop.permute.xlu1 %897  ;;  %2641 = vmatpush3.bf16.msra.mxu1 %v2666_v56  ;;  %2593 = vmatprep.subr.bf16.mxu0 %v2668_v2 }
  0xd6   : > { %1673 = vrot.lane.b32.xlu1 %v2690_v35, %s2727_s25  ;;  %v896_v60 = vpop.permute.xlu0 %895  ;;  %v990_v0 = vsel %vm3767_vm11, %v898_v9, %v989_v40  ;;  %2634 = vmatprep.subr.bf16.mxu1 %v2668_v2 }
  0xd7   : > { %1663 = vrot.lane.b32.xlu0 %v2691_v61, %s2727_s25  ;;  %988 = vst.msk [vmem:[#allocation2 + $0x30] sm:$0xf] %vm965_vm10, %v896_v60  ;;  %991 = vst [vmem:[#allocation2 + $0x34] sm:$0xf] %v990_v0  ;;  %v1009_v61 = vld [vmem:[#allocation2 + $0x5c] sm:$0xf] }
  0xd8   : > { %2594 = vmatpush3.bf16.msra.mxu0 %v2668_v2  ;;  %v3866_v0 = vld [vmem:[%s2767_s18 + $0x34] sm:$0xf] }
  0xd9   : > { %2642 = vmatpush3.bf16.msra.mxu1 %v2668_v2  ;;  %v2693_v2 = vld [vmem:[%s2767_s18 + $0x20] sm:$0xf] }
  0xda   : > { %1667 = vrot.lane.b32.xlu1 %v3749_v44, %s2727_s25 }
  0xdb   : > { %1786 = vrot.lane.b32.xlu0 %v4765_v5, %s2728_s16  ;;  %v902_v49 = vpop.permute.xlu1 %901  ;;  %v997_v5 = vld [vmem:[#allocation2 + $0x44] sm:$0xf] }
  0xdc   : > { %v994_v3 = vsel %vm3767_vm11, %v902_v49, %v993_v19  ;;  %v1013_v19 = vld [vmem:[#allocation2 + $0x64] sm:$0xf] }
  0xdd   : > { %v900_v57 = vpop.permute.xlu0 %899  ;;  %995 = vst [vmem:[#allocation2 + $0x3c] sm:$0xf] %v994_v3 }
  0xde   : > { %992 = vst.msk [vmem:[#allocation2 + $0x38] sm:$0xf] %vm965_vm10, %v900_v57  ;;  %1784 = vrot.lane.b32.xlu1 %v4767_v7, %s2728_s16 }
  0xdf   : > { %1677 = vrot.lane.b32.xlu0 %v3744_v38, %s2727_s25 }
  0xe0   : > { %v906_v44 = vpop.permute.xlu1 %905 }
  0xe1   : > { %v904_v20 = vpop.permute.xlu0 %903  ;;  %v998_v52 = vsel %vm3767_vm11, %v906_v44, %v997_v5  ;;  %v3876_v5 = vld [vmem:[%s2767_s18 + $0x28] sm:$0xf]  ;;  %v1017_v44 = vld [vmem:[#allocation2 + $0x6c] sm:$0xf] }
  0xe2   : > { %996 = vst.msk [vmem:[#allocation2 + $0x40] sm:$0xf] %vm965_vm10, %v904_v20  ;;  %999 = vst [vmem:[#allocation2 + $0x44] sm:$0xf] %v998_v52  ;;  %1788 = vrot.lane.b32.xlu1 %v3167_v4, %s2728_s16  ;;  %v1005_v4 = vld [vmem:[#allocation2 + $0x54] sm:$0xf] }
  0xe3   : > { %1790 = vrot.lane.b32.xlu0 %v3137_v21, %s2728_s16 }
  0xe4   : > { %v910_v7 = vpop.permute.xlu1 %909 }
  0xe5   : > { %v908_v53 = vpop.permute.xlu0 %907  ;;  %v1002_v38 = vsel %vm3767_vm11, %v910_v7, %v1001_v42  ;;  %v3888_v7 = vld [vmem:[%s2767_s18 + $0x3c] sm:$0xf] }
  0xe6   : > { %1000 = vst.msk [vmem:[#allocation2 + $0x48] sm:$0xf] %vm965_vm10, %v908_v53  ;;  %1003 = vst [vmem:[#allocation2 + $0x4c] sm:$0xf] %v1002_v38  ;;  %1064 = vrot.lane.b32.xlu1 %v2947_v62, %s2723_s21  ;;  %v1021_v53 = vld [vmem:[#allocation2 + $0x74] sm:$0xf] }
  0xe7   : > { %1060 = vrot.lane.b32.xlu0 %v4770_v10, %s2723_s21 }
  0xe8   : > { %v914_v56 = vpop.permute.xlu1 %913 }
  0xe9   : > { %v912_v21 = vpop.permute.xlu0 %911  ;;  %v1006_v35 = vsel %vm3767_vm11, %v914_v56, %v1005_v4 }
  0xea   : > { %1004 = vst.msk [vmem:[#allocation2 + $0x50] sm:$0xf] %vm965_vm10, %v912_v21  ;;  %1007 = vst [vmem:[#allocation2 + $0x54] sm:$0xf] %v1006_v35  ;;  %1074 = vrot.lane.b32.xlu1 %v3411_v25, %s2723_s21  ;;  %v1025_v21 = vld [vmem:[#allocation2 + $0x7c] sm:$0xf] }
  0xeb   : > { %1070 = vrot.lane.b32.xlu0 %v3390_v14, %s2723_s21 }
  0xec   : > { %v918_v40 = vpop.permute.xlu1 %917 }
  0xed   : > { %v916_v9 = vpop.permute.xlu0 %915  ;;  %v1010_v60 = vsel %vm3767_vm11, %v918_v40, %v1009_v61 }
  0xee   : > { %1008 = vst.msk [vmem:[#allocation2 + $0x58] sm:$0xf] %vm965_vm10, %v916_v9  ;;  %1011 = vst [vmem:[#allocation2 + $0x5c] sm:$0xf] %v1010_v60  ;;  %1235 = vrot.lane.b32.xlu1 %v3866_v0, %s2724_s22  ;;  %v1142_v9 = vld [vmem:[#allocation2] sm:$0xf] }
  0xef   : > { %1225 = vrot.lane.b32.xlu0 %v2693_v2, %s2724_s22 }
  0xf0   : > { %v922_v49 = vpop.permute.xlu1 %921 }
  0xf1   : > { %v920_v57 = vpop.permute.xlu0 %919  ;;  %v1014_v3 = vsel %vm3767_vm11, %v922_v49, %v1013_v19 }
  0xf2   : > { %1012 = vst.msk [vmem:[#allocation2 + $0x60] sm:$0xf] %vm965_vm10, %v920_v57  ;;  %1015 = vst [vmem:[#allocation2 + $0x64] sm:$0xf] %v1014_v3  ;;  %1229 = vrot.lane.b32.xlu1 %v3876_v5, %s2724_s22  ;;  %v1147_v57 = vld [vmem:[#allocation2 + $0x8] sm:$0xf] }
  0xf3   : > { %1365 = vrot.lane.b32.xlu0 %v3178_v37, %s2725_s23 }
  0xf4   : > { %v926_v20 = vpop.permute.xlu1 %925 }
  0xf5   : > { %v924_v52 = vpop.permute.xlu0 %923  ;;  %v1018_v42 = vsel %vm3767_vm11, %v926_v20, %v1017_v44  ;;  %v1151_v20 = vld [vmem:[#allocation2 + $0x10] sm:$0xf] }
  0xf6   : > { %1016 = vst.msk [vmem:[#allocation2 + $0x68] sm:$0xf] %vm965_vm10, %v924_v52  ;;  %1019 = vst [vmem:[#allocation2 + $0x6c] sm:$0xf] %v1018_v42  ;;  %1363 = vrot.lane.b32.xlu1 %v3182_v45, %s2725_s23 }
  0xf7   : > { %1239 = vrot.lane.b32.xlu0 %v3888_v7, %s2724_s22 }
  0xf8   : > { %v930_v38 = vpop.permute.xlu1 %929 }
  0xf9   : > { %v928_v4 = vpop.permute.xlu0 %927  ;;  %v1022_v56 = vsel %vm3767_vm11, %v930_v38, %v1021_v53 }
  0xfa   : > { %1020 = vst.msk [vmem:[#allocation2 + $0x70] sm:$0xf] %vm965_vm10, %v928_v4  ;;  %1023 = vst [vmem:[#allocation2 + $0x74] sm:$0xf] %v1022_v56  ;;  %1518 = vrot.lane.b32.xlu1 %v3323_v12, %s2726_s24 }
  0xfb   : > { %1369 = vrot.lane.b32.xlu0 %v3184_v43, %s2725_s23 }
  0xfc   : > { %v934_v35 = vpop.permute.xlu1 %933 }
  0xfd   : > { %v932_v61 = vpop.permute.xlu0 %931  ;;  %v1026_v40 = vsel %vm3767_vm11, %v934_v35, %v1025_v21  ;;  %v3967_v35 = vld [vmem:[%s2767_s18 + $0x44] sm:$0xf] }
  0xfe   : > { %1024 = vst.msk [vmem:[#allocation2 + $0x78] sm:$0xf] %vm965_vm10, %v932_v61  ;;  %1027 = vst [vmem:[#allocation2 + $0x7c] sm:$0xf] %v1026_v40  ;;  %1522 = vrot.lane.b32.xlu1 %v4770_v10, %s2726_s24  ;;  %v2697_v61 = vld [vmem:[%s2767_s18 + $0x30] sm:$0xf] }
  0xff   : > { %1367 = vrot.lane.b32.xlu0 %v3190_v29, %s2725_s23 }
 0x100   : > { %v1047_v60 = vpop.permute.xlu1 %1046 }
 0x101   : > { %v1045_v19 = vpop.permute.xlu0 %1044  ;;  %1146 = vst.msk [vmem:[#allocation2 + $0x4] sm:$0xf] %vm1140_vm12, %v1047_v60  ;;  %v3976_v60 = vld [vmem:[%s2767_s18 + $0x38] sm:$0xf] }
 0x102   : > { %v1143_v1 = vsel %vm3908_vm13, %v1045_v19, %v1142_v9  ;;  %1532 = vrot.lane.b32.xlu1 %v3390_v14, %s2726_s24 }
 0x103   : > { %1144 = vst [vmem:[#allocation2] sm:$0xf] %v1143_v1  ;;  %1528 = vrot.lane.b32.xlu0 %v3405_v59, %s2726_s24 }
 0x104   : > { %v1051_v10 = vpop.permute.xlu1 %1050 }
 0x105   : > { %v1049_v49 = vpop.permute.xlu0 %1048  ;;  %1150 = vst.msk [vmem:[#allocation2 + $0xc] sm:$0xf] %vm1140_vm12, %v1051_v10  ;;  %v3987_v10 = vld [vmem:[%s2767_s18 + $0x4c] sm:$0xf] }
 0x106   : > { %v1148_v3 = vsel %vm3908_vm13, %v1049_v49, %v1147_v57  ;;  %1681 = vrot.lane.b32.xlu1 %v3780_v17, %s2727_s25  ;;  %v1155_v49 = vld [vmem:[#allocation2 + $0x18] sm:$0xf] }
 0x107   : > { %1149 = vst [vmem:[#allocation2 + $0x8] sm:$0xf] %v1148_v3  ;;  %1671 = vrot.lane.b32.xlu0 %v3759_v13, %s2727_s25 }
 0x108   : > { %v1216_v14 = vpop.permute.xlu1 %1215 }
 0x109   : > { %v1212_v44 = vpop.permute.xlu0 %1211  ;;  %1309 = vst.msk [vmem:[#allocation2 + $0xc] sm:$0xf] %vm1305_vm14, %v1216_v14 }
 0x10a   : > { %1307 = vst.msk [vmem:[#allocation2 + $0x4] sm:$0xf] %vm1305_vm14, %v1212_v44  ;;  %1675 = vrot.lane.b32.xlu1 %v2693_v2, %s2727_s25 }
 0x10b   : > { %1794 = vrot.lane.b32.xlu0 %v3169_v54, %s2728_s16 }
 0x10c   : > { %v1055_v59 = vpop.permute.xlu1 %1054 }
 0x10d   : > { %v1053_v52 = vpop.permute.xlu0 %1052  ;;  %1154 = vst.msk [vmem:[#allocation2 + $0x14] sm:$0xf] %vm1140_vm12, %v1055_v59 }
 0x10e   : > { %v1152_v13 = vsel %vm3908_vm13, %v1053_v52, %v1151_v20  ;;  %1792 = vrot.lane.b32.xlu1 %v3173_v34, %s2728_s16 }
 0x10f   : > { %1153 = vst [vmem:[#allocation2 + $0x10] sm:$0xf] %v1152_v13  ;;  %1685 = vrot.lane.b32.xlu0 %v3866_v0, %s2727_s25 }
 0x110   : > { %v1210_v17 = vpop.permute.xlu1 %1209  ;;  %v1451_v4 = vld [vmem:[#allocation2 + $0xc] sm:$0xf] }
 0x111   : > { %v1059_v2 = vpop.permute.xlu0 %1058  ;;  %1306 = vst.msk [vmem:[#allocation2] sm:$0xf] %vm1305_vm14, %v1210_v17  ;;  %v1447_v0 = vld [vmem:[#allocation2 + $0x4] sm:$0xf] }
 0x112   : > { %1158 = vst.msk [vmem:[#allocation2 + $0x1c] sm:$0xf] %vm1140_vm12, %v1059_v2  ;;  %1796 = vrot.lane.b32.xlu1 %v3182_v45, %s2728_s16 }
 0x113   : > { %1798 = vrot.lane.b32.xlu0 %v3178_v37, %s2728_s16 }
 0x114   : > { %v1350_v34 = vpop.permute.xlu1 %1349 }
 0x115   : > { %v1220_v42 = vpop.permute.xlu0 %1219  ;;  %v1448_v53 = vsel %vm3946_vm1, %v1350_v34, %v1447_v0 }
 0x116   : > { %1311 = vst.msk [vmem:[#allocation2 + $0x14] sm:$0xf] %vm1305_vm14, %v1220_v42  ;;  %1449 = vst [vmem:[#allocation2 + $0x4] sm:$0xf] %v1448_v53  ;;  %1072 = vrot.lane.b32.xlu1 %v4693_v18, %s2723_s21 }
 0x117   : > { %1068 = vrot.lane.b32.xlu0 %v2954_v11, %s2723_s21 }
 0x118   : > { %v1224_v37 = vpop.permute.xlu1 %1223 }
 0x119   : > { %v1214_v45 = vpop.permute.xlu0 %1213  ;;  %1313 = vst.msk [vmem:[#allocation2 + $0x1c] sm:$0xf] %vm1305_vm14, %v1224_v37 }
 0x11a   : > { %1308 = vst.msk [vmem:[#allocation2 + $0x8] sm:$0xf] %vm1305_vm14, %v1214_v45  ;;  %1082 = vrot.lane.b32.xlu1 %v3436_v46, %s2723_s21 }
 0x11b   : > { %1078 = vrot.lane.b32.xlu0 %v3423_v30, %s2723_s21 }
 0x11c   : > { %v1354_v38 = vpop.permute.xlu1 %1353 }
 0x11d   : > { %v1348_v56 = vpop.permute.xlu0 %1347  ;;  %v1452_v21 = vsel %vm3946_vm1, %v1354_v38, %v1451_v4  ;;  %v1455_v13 = vld [vmem:[#allocation2 + $0x14] sm:$0xf] }
 0x11e   : > { %1444 = vst.msk [vmem:[#allocation2] sm:$0xf] %vm1443_vm15, %v1348_v56  ;;  %1453 = vst [vmem:[#allocation2 + $0xc] sm:$0xf] %v1452_v21  ;;  %1243 = vrot.lane.b32.xlu1 %v3967_v35, %s2724_s22 }
 0x11f   : > { %1233 = vrot.lane.b32.xlu0 %v2697_v61, %s2724_s22 }
 0x120   : > { %v1513_v40 = vpop.permute.xlu1 %1512 }
 0x121   : > { %v1352_v9 = vpop.permute.xlu0 %1351  ;;  %1606 = vst.msk [vmem:[#allocation2 + $0x4] sm:$0xf] %vm1600_vm2, %v1513_v40 }
 0x122   : > { %1450 = vst.msk [vmem:[#allocation2 + $0x8] sm:$0xf] %vm1443_vm15, %v1352_v9  ;;  %1237 = vrot.lane.b32.xlu1 %v3976_v60, %s2724_s22  ;;  %v4065_v9 = vld [vmem:[%s2767_s18 + $0x54] sm:$0xf] }
 0x123   : > { %1373 = vrot.lane.b32.xlu0 %v3514_v63, %s2725_s23 }
 0x124   : > { %v1666_v19 = vpop.permute.xlu1 %1665 }
 0x125   : > { %v1517_v1 = vpop.permute.xlu0 %1516  ;;  %1755 = vst.msk [vmem:[#allocation2 + $0x4] sm:$0xf] %vm1753_vm5, %v1666_v19  ;;  %v1602_v34 = vld [vmem:[#allocation2] sm:$0xf] }
 0x126   : > { %1610 = vst.msk [vmem:[#allocation2 + $0xc] sm:$0xf] %vm1600_vm2, %v1517_v1  ;;  %1371 = vrot.lane.b32.xlu1 %v3527_v26, %s2725_s23  ;;  %v2701_v19 = vld [vmem:[%s2767_s18 + $0x40] sm:$0xf] }
 0x127   : > { %1247 = vrot.lane.b32.xlu0 %v3987_v10, %s2724_s22 }
 0x128   : > { %v1057_v57 = vpop.permute.xlu1 %1056 }
 0x129   : > { %v1670_v3 = vpop.permute.xlu0 %1669  ;;  %v1156_v14 = vsel %vm3908_vm13, %v1057_v57, %v1155_v49  ;;  %v1607_v37 = vld [vmem:[#allocation2 + $0x8] sm:$0xf] }
 0x12a   : > { %1757 = vst.msk [vmem:[#allocation2 + $0xc] sm:$0xf] %vm1753_vm5, %v1670_v3  ;;  %1157 = vst [vmem:[#allocation2 + $0x18] sm:$0xf] %v1156_v14  ;;  %1526 = vrot.lane.b32.xlu1 %v2947_v62, %s2726_s24  ;;  %v4074_v57 = vld [vmem:[%s2767_s18 + $0x48] sm:$0xf] }
 0x12b   : > { %1377 = vrot.lane.b32.xlu0 %v3543_v32, %s2725_s23 }
 0x12c   : > { %v1067_v44 = vpop.permute.xlu1 %1066 }
 0x12d   : > { %v1063_v59 = vpop.permute.xlu0 %1062  ;;  %1166 = vst.msk [vmem:[#allocation2 + $0x2c] sm:$0xf] %vm1140_vm12, %v1067_v44 }
 0x12e   : > { %1162 = vst.msk [vmem:[#allocation2 + $0x24] sm:$0xf] %vm1140_vm12, %v1063_v59  ;;  %1530 = vrot.lane.b32.xlu1 %v2954_v11, %s2726_s24 }
 0x12f   : > { %1375 = vrot.lane.b32.xlu0 %v3548_v41, %s2725_s23 }
 0x130   : > { %v1228_v20 = vpop.permute.xlu1 %1227 }
 0x131   : > { %v1218_v52 = vpop.permute.xlu0 %1217  ;;  %1315 = vst.msk [vmem:[#allocation2 + $0x24] sm:$0xf] %vm1305_vm14, %v1228_v20  ;;  %v1882_v14 = vld [vmem:[#allocation2 + $0xc] sm:$0xf]  ;;  %v4086_v20 = vld [vmem:[%s2767_s18 + $0x5c] sm:$0xf] }
 0x132   : > { %1310 = vst.msk [vmem:[#allocation2 + $0x10] sm:$0xf] %vm1305_vm14, %v1218_v52  ;;  %1540 = vrot.lane.b32.xlu1 %v3423_v30, %s2726_s24  ;;  %v1159_v52 = vld [vmem:[#allocation2 + $0x20] sm:$0xf] }
 0x133   : > { %1536 = vrot.lane.b32.xlu0 %v3411_v25, %s2726_s24 }
 0x134   : > { %v1222_v62 = vpop.permute.xlu1 %1221 }
 0x135   : > { %v1358_v17 = vpop.permute.xlu0 %1357  ;;  %1312 = vst.msk [vmem:[#allocation2 + $0x18] sm:$0xf] %vm1305_vm14, %v1222_v62  ;;  %v1163_v62 = vld [vmem:[#allocation2 + $0x28] sm:$0xf] }
 0x136   : > { %v1456_v11 = vsel %vm3946_vm1, %v1358_v17, %v1455_v13  ;;  %1689 = vrot.lane.b32.xlu1 %v3888_v7, %s2727_s25 }
 0x137   : > { %1457 = vst [vmem:[#allocation2 + $0x14] sm:$0xf] %v1456_v11  ;;  %1679 = vrot.lane.b32.xlu0 %v3876_v5, %s2727_s25  ;;  %v1459_v5 = vld [vmem:[#allocation2 + $0x1c] sm:$0xf] }
 0x138   : > { %v1356_v2 = vpop.permute.xlu1 %1355 }
 0x139   : > { %v1232_v30 = vpop.permute.xlu0 %1231  ;;  %1454 = vst.msk [vmem:[#allocation2 + $0x10] sm:$0xf] %vm1443_vm15, %v1356_v2 }
 0x13a   : > { %1317 = vst.msk [vmem:[#allocation2 + $0x2c] sm:$0xf] %vm1305_vm14, %v1232_v30  ;;  %1683 = vrot.lane.b32.xlu1 %v2697_v61, %s2727_s25 }
 0x13b   : > { %1802 = vrot.lane.b32.xlu0 %v3184_v43, %s2728_s16 }
 0x13c   : > { %v1511_v7 = vpop.permute.xlu1 %1510 }
 0x13d   : > { %v1362_v0 = vpop.permute.xlu0 %1361  ;;  %v1603_v42 = vsel %vm4024_vm6, %v1511_v7, %v1602_v34 }
 0x13e   : > { %v1460_v53 = vsel %vm3946_vm1, %v1362_v0, %v1459_v5  ;;  %1604 = vst [vmem:[#allocation2] sm:$0xf] %v1603_v42  ;;  %1800 = vrot.lane.b32.xlu1 %v3190_v29, %s2728_s16 }
 0x13f   : > { %1461 = vst [vmem:[#allocation2 + $0x1c] sm:$0xf] %v1460_v53  ;;  %1693 = vrot.lane.b32.xlu0 %v3967_v35, %s2727_s25  ;;  %v1878_v35 = vld [vmem:[#allocation2 + $0x4] sm:$0xf] }
 0x140   : > { %v1515_v43 = vpop.permute.xlu1 %1514  ;;  %v1463_v53 = vld [vmem:[#allocation2 + $0x24] sm:$0xf] }
 0x141   : > { %v1360_v45 = vpop.permute.xlu0 %1359  ;;  %v1608_v38 = vsel %vm4024_vm6, %v1515_v43, %v1607_v37 }
 0x142   : > { %1458 = vst.msk [vmem:[#allocation2 + $0x18] sm:$0xf] %vm1443_vm15, %v1360_v45  ;;  %1609 = vst [vmem:[#allocation2 + $0x8] sm:$0xf] %v1608_v38  ;;  %1804 = vrot.lane.b32.xlu1 %v3527_v26, %s2728_s16  ;;  %v1611_v45 = vld [vmem:[#allocation2 + $0x10] sm:$0xf] }
 0x143   : > { %1806 = vrot.lane.b32.xlu0 %v3514_v63, %s2728_s16  ;;  %v1467_v38 = vld [vmem:[#allocation2 + $0x2c] sm:$0xf] }
 0x144   : > { %v1525_v4 = vpop.permute.xlu1 %1524 }
 0x145   : > { %v1521_v29 = vpop.permute.xlu0 %1520  ;;  %1618 = vst.msk [vmem:[#allocation2 + $0x1c] sm:$0xf] %vm1600_vm2, %v1525_v4 }
 0x146   : > { %1614 = vst.msk [vmem:[#allocation2 + $0x14] sm:$0xf] %vm1600_vm2, %v1521_v29  ;;  %1080 = vrot.lane.b32.xlu1 %v4699_v27, %s2723_s21 }
 0x147   : > { %1076 = vrot.lane.b32.xlu0 %v4696_v58, %s2723_s21 }
 0x148   : > { %v1674_v56 = vpop.permute.xlu1 %1673 }
 0x149   : > { %v1664_v26 = vpop.permute.xlu0 %1663  ;;  %1759 = vst.msk [vmem:[#allocation2 + $0x14] sm:$0xf] %vm1753_vm5, %v1674_v56 }
 0x14a   : > { %1754 = vst.msk [vmem:[#allocation2] sm:$0xf] %vm1753_vm5, %v1664_v26  ;;  %1090 = vrot.lane.b32.xlu1 %v3466_v6, %s2723_s21 }
 0x14b   : > { %1086 = vrot.lane.b32.xlu0 %v3449_v55, %s2723_s21 }
 0x14c   : > { %v1668_v21 = vpop.permute.xlu1 %1667 }
 0x14d   : > { %v1787_v61 = vpop.permute.xlu0 %1786  ;;  %1756 = vst.msk [vmem:[#allocation2 + $0x8] sm:$0xf] %vm1753_vm5, %v1668_v21 }
 0x14e   : > { %v1879_v40 = vsel %vm4057_vm7, %v1787_v61, %v1878_v35  ;;  %1251 = vrot.lane.b32.xlu1 %v4065_v9, %s2724_s22  ;;  %v4779_v35 = vld [vmem:[#allocation22_spill] sm:$0xff] }
 0x14f   : > { %1880 = vst [vmem:[#allocation2 + $0x4] sm:$0xf] %v1879_v40  ;;  %1241 = vrot.lane.b32.xlu0 %v2701_v19, %s2724_s22 }
 0x150   : > { %v1785_v1 = vpop.permute.xlu1 %1784 }
 0x151   : > { %v1678_v49 = vpop.permute.xlu0 %1677  ;;  %1875 = vst.msk [vmem:[#allocation2] sm:$0xf] %vm1874_vm3, %v1785_v1 }
 0x152   : > { %1761 = vst.msk [vmem:[#allocation2 + $0x1c] sm:$0xf] %vm1753_vm5, %v1678_v49  ;;  %1245 = vrot.lane.b32.xlu1 %v4074_v57, %s2724_s22 }
 0x153   : > { %1381 = vrot.lane.b32.xlu0 %v3554_v15, %s2725_s23 }
 0x154   : > { %v1789_v3 = vpop.permute.xlu1 %1788 }
 0x155   : > { %v1791_v44 = vpop.permute.xlu0 %1790  ;;  %1881 = vst.msk [vmem:[#allocation2 + $0x8] sm:$0xf] %vm1874_vm3, %v1789_v3  ;;  %v4153_v3 = vld [vmem:[%s2767_s18 + $0x64] sm:$0xf] }
 0x156   : > { %v1883_v59 = vsel %vm4057_vm7, %v1791_v44, %v1882_v14  ;;  %1379 = vrot.lane.b32.xlu1 %v3570_v8, %s2725_s23  ;;  %v2705_v14 = vld [vmem:[%s2767_s18 + $0x50] sm:$0xf] }
 0x157   : > { %1884 = vst [vmem:[#allocation2 + $0xc] sm:$0xf] %v1883_v59  ;;  %1255 = vrot.lane.b32.xlu0 %v4086_v20, %s2724_s22 }
 0x158   : > { %v1065_v13 = vpop.permute.xlu1 %1064  ;;  %v2667_v11 = vld [vmem:[#allocation2] sm:$0xff]  }
 0x159   : > { %v1061_v17 = vpop.permute.xlu0 %1060  ;;  %v1164_v2 = vsel %vm3908_vm13, %v1065_v13, %v1163_v62  ;;  %2595 = vmatprep.mubr.bf16.mxu0 %v2667_v11  ;;  %v4782_v62 = vld [vmem:[#allocation10_spill] sm:$0xff] }
 0x15a   : > { %v1160_v30 = vsel %vm3908_vm13, %v1061_v17, %v1159_v52  ;;  %1165 = vst [vmem:[#allocation2 + $0x28] sm:$0xf] %v1164_v2  ;;  %1534 = vrot.lane.b32.xlu1 %v4693_v18, %s2726_s24  ;;  %v4162_v52 = vld [vmem:[%s2767_s18 + $0x58] sm:$0xf]  ;;  %v1890_v17 = vld [vmem:[#allocation2 + $0x1c] sm:$0xf] }
 0x15b   : > { %1161 = vst [vmem:[#allocation2 + $0x20] sm:$0xf] %v1160_v30  ;;  %1385 = vrot.lane.b32.xlu0 %v3580_v16, %s2725_s23  ;;  %v4174_v30 = vld [vmem:[%s2767_s18 + $0x6c] sm:$0xf] }
 0x15c   : > { %v1075_v7 = vpop.permute.xlu1 %1074 }
 0x15d   : > { %v1071_v34 = vpop.permute.xlu0 %1070  ;;  %1174 = vst.msk [vmem:[#allocation2 + $0x3c] sm:$0xf] %vm1140_vm12, %v1075_v7  ;;  %v1167_v7 = vld [vmem:[#allocation2 + $0x30] sm:$0xf] }
 0x15e   : > { %1170 = vst.msk [vmem:[#allocation2 + $0x34] sm:$0xf] %vm1140_vm12, %v1071_v34  ;;  %v2669_v5 = vld [vmem:[#allocation2 + $0x8] sm:$0xff]   ;;  %1538 = vrot.lane.b32.xlu1 %v4696_v58, %s2726_s24  ;;  %v1171_v34 = vld [vmem:[#allocation2 + $0x38] sm:$0xf] }
 0x15f   : > { %1383 = vrot.lane.b32.xlu0 %v3584_v23, %s2725_s23  ;;  %2596 = vmatmul.mubr.bf16.vlgmr.msra.gmra.mxu0 %v2669_v5 }
 0x160   : > { %v1236_v0 = vpop.permute.xlu1 %1235 }
 0x161   : > { %v1226_v18 = vpop.permute.xlu0 %1225  ;;  %1319 = vst.msk [vmem:[#allocation2 + $0x34] sm:$0xf] %vm1305_vm14, %v1236_v0 }
 0x162   : > { %1314 = vst.msk [vmem:[#allocation2 + $0x20] sm:$0xf] %vm1305_vm14, %v1226_v18  ;;  %1548 = vrot.lane.b32.xlu1 %v3449_v55, %s2726_s24 }
 0x163   : > { %1544 = vrot.lane.b32.xlu0 %v3436_v46, %s2726_s24 }
 0x164   : > { %v1230_v42 = vpop.permute.xlu1 %1229 }
 0x165   : > { %v1366_v43 = vpop.permute.xlu0 %1365  ;;  %1316 = vst.msk [vmem:[#allocation2 + $0x28] sm:$0xf] %vm1305_vm14, %v1230_v42 }
 0x166   : > { %v1464_v58 = vsel %vm3946_vm1, %v1366_v43, %v1463_v53  ;;  %1697 = vrot.lane.b32.xlu1 %v3987_v10, %s2727_s25 }
 0x167   : > { %1465 = vst [vmem:[#allocation2 + $0x24] sm:$0xf] %v1464_v58  ;;  %1687 = vrot.lane.b32.xlu0 %v3976_v60, %s2727_s25 }
 0x168   : > { %v1364_v37 = vpop.permute.xlu1 %1363 }
 0x169   : > { %v1240_v55 = vpop.permute.xlu0 %1239  ;;  %1462 = vst.msk [vmem:[#allocation2 + $0x20] sm:$0xf] %vm1443_vm15, %v1364_v37 }
 0x16a   : > { %1321 = vst.msk [vmem:[#allocation2 + $0x3c] sm:$0xf] %vm1305_vm14, %v1240_v55  ;;  %1691 = vrot.lane.b32.xlu1 %v2701_v19, %s2727_s25  ;;  %v1886_v19 = vld [vmem:[#allocation2 + $0x14] sm:$0xf] }
 0x16b   : > { %1810 = vrot.lane.b32.xlu0 %v3543_v32, %s2728_s16  ;;  %v1615_v32 = vld [vmem:[#allocation2 + $0x18] sm:$0xf] }
 0x16c   : > { %v1519_v46 = vpop.permute.xlu1 %1518 }
 0x16d   : > { %v1370_v4 = vpop.permute.xlu0 %1369  ;;  %v1612_v10 = vsel %vm4024_vm6, %v1519_v46, %v1611_v45  ;;  %v1471_v45 = vld [vmem:[#allocation2 + $0x34] sm:$0xf] }
 0x16e   : > { %v1468_v60 = vsel %vm3946_vm1, %v1370_v4, %v1467_v38  ;;  %1613 = vst [vmem:[#allocation2 + $0x10] sm:$0xf] %v1612_v10  ;;  %1808 = vrot.lane.b32.xlu1 %v3548_v41, %s2728_s16 }
 0x16f   : > { %1469 = vst [vmem:[#allocation2 + $0x2c] sm:$0xf] %v1468_v60  ;;  %1701 = vrot.lane.b32.xlu0 %v4065_v9, %s2727_s25 }
 0x170   : > { %v1523_v29 = vpop.permute.xlu1 %1522 }
 0x171   : > { %v1368_v56 = vpop.permute.xlu0 %1367  ;;  %v1616_v26 = vsel %vm4024_vm6, %v1523_v29, %v1615_v32  ;;  %v1619_v29 = vld [vmem:[#allocation2 + $0x20] sm:$0xf]  ;;  %v1475_v32 = vld [vmem:[#allocation2 + $0x3c] sm:$0xf] }
 0x172   : > { %1466 = vst.msk [vmem:[#allocation2 + $0x28] sm:$0xf] %vm1443_vm15, %v1368_v56  ;;  %1617 = vst [vmem:[#allocation2 + $0x18] sm:$0xf] %v1616_v26  ;;  %1812 = vrot.lane.b32.xlu1 %v3570_v8, %s2728_s16  ;;  %v4781_v8 = vld [vmem:[#allocation17_spill] sm:$0xff] }
 0x173   : > { %1814 = vrot.lane.b32.xlu0 %v3554_v15, %s2728_s16  ;;  %v4780_v15 = vld [vmem:[#allocation9_spill] sm:$0xff] }
 0x174   : > { %v1533_v21 = vpop.permute.xlu1 %1532 }
 0x175   : > { %v1529_v41 = vpop.permute.xlu0 %1528  ;;  %1626 = vst.msk [vmem:[#allocation2 + $0x2c] sm:$0xf] %vm1600_vm2, %v1533_v21 }
 0x176   : > { %1622 = vst.msk [vmem:[#allocation2 + $0x24] sm:$0xf] %vm1600_vm2, %v1529_v41  ;;  %1088 = vrot.lane.b32.xlu1 %v4705_v31, %s2723_s21 }
 0x177   : > { %1084 = vrot.lane.b32.xlu0 %v4779_v35, %s2723_s21 }
 0x178   : > { %v1682_v61 = vpop.permute.xlu1 %1681 }
 0x179   : > { %v1672_v40 = vpop.permute.xlu0 %1671  ;;  %1763 = vst.msk [vmem:[#allocation2 + $0x24] sm:$0xf] %vm1753_vm5, %v1682_v61  ;;  %v4783_v61 = vld [vmem:[#allocation28_spill] sm:$0xff] }
 0x17a   : > { %1758 = vst.msk [vmem:[#allocation2 + $0x10] sm:$0xf] %vm1753_vm5, %v1672_v40  ;;  %1098 = vrot.lane.b32.xlu1 %v4780_v15, %s2723_s21  ;;  %v4784_v40 = vld [vmem:[#allocation25_spill] sm:$0xff] }
 0x17b   : > { %1094 = vrot.lane.b32.xlu0 %v4781_v8, %s2723_s21 }
 0x17c   : > { %v1676_v9 = vpop.permute.xlu1 %1675 }
 0x17d   : > { %v1795_v1 = vpop.permute.xlu0 %1794  ;;  %1760 = vst.msk [vmem:[#allocation2 + $0x18] sm:$0xf] %vm1753_vm5, %v1676_v9 }
 0x17e   : > { %v1887_v49 = vsel %vm4057_vm7, %v1795_v1, %v1886_v19  ;;  %1259 = vrot.lane.b32.xlu1 %v4153_v3, %s2724_s22  ;;  %v4785_v19 = vld [vmem:[#allocation20_spill] sm:$0xff] }
 0x17f   : > { %1888 = vst [vmem:[#allocation2 + $0x14] sm:$0xf] %v1887_v49  ;;  %1249 = vrot.lane.b32.xlu0 %v2705_v14, %s2724_s22 }
 0x180   : > { %v1793_v44 = vpop.permute.xlu1 %1792  ;;  %v1894_v49 = vld [vmem:[#allocation2 + $0x24] sm:$0xf] }
 0x181   : > { %v1686_v59 = vpop.permute.xlu0 %1685  ;;  %1885 = vst.msk [vmem:[#allocation2 + $0x10] sm:$0xf] %vm1874_vm3, %v1793_v44  ;;  %v2709_v44 = vld [vmem:[%s2767_s18 + $0x74] sm:$0xf] }
 0x182   : > { %1765 = vst.msk [vmem:[#allocation2 + $0x2c] sm:$0xf] %vm1753_vm5, %v1686_v59  ;;  %1253 = vrot.lane.b32.xlu1 %v4162_v52, %s2724_s22 }
 0x183   : > { %1389 = vrot.lane.b32.xlu0 %v4782_v62, %s2725_s23 }
 0x184   : > { %v1797_v13 = vpop.permute.xlu1 %1796 }
 0x185   : > { %v1799_v11 = vpop.permute.xlu0 %1798  ;;  %1889 = vst.msk [vmem:[#allocation2 + $0x18] sm:$0xf] %vm1874_vm3, %v1797_v13  ;;  %v4249_v13 = vld [vmem:[%s2767_s18 + $0x68] sm:$0xf] }
 0x186   : > { %v1891_v2 = vsel %vm4057_vm7, %v1799_v11, %v1890_v17  ;;  %1387 = vrot.lane.b32.xlu1 %v3602_v24, %s2725_s23 }
 0x187   : > { %1892 = vst [vmem:[#allocation2 + $0x1c] sm:$0xf] %v1891_v2  ;;  %1263 = vrot.lane.b32.xlu0 %v4174_v30, %s2724_s22 }
 0x188   : > { %v1073_v5 = vpop.permute.xlu1 %1072  ;;  %v2670_v18 = vld [vmem:[#allocation2 + $0x10] sm:$0xff]  }
 0x189   : > { %v1069_v0 = vpop.permute.xlu0 %1068  ;;  %v1172_v42 = vsel %vm3908_vm13, %v1073_v5, %v1171_v34  ;;  %2599 = vmatprep.mubr.bf16.mxu0 %v2670_v18  ;;  %v1898_v11 = vld [vmem:[#allocation2 + $0x2c] sm:$0xf]  ;;  %v1175_v34 = vld [vmem:[#allocation2 + $0x40] sm:$0xf]  ;;  %v1179_v5 = vld [vmem:[#allocation2 + $0x48] sm:$0xf] }
 0x18a   : > { %v1168_v53 = vsel %vm3908_vm13, %v1069_v0, %v1167_v7  ;;  %1173 = vst [vmem:[#allocation2 + $0x38] sm:$0xf] %v1172_v42  ;;  %1542 = vrot.lane.b32.xlu1 %v4699_v27, %s2726_s24 }
 0x18b   : > { %1169 = vst [vmem:[#allocation2 + $0x30] sm:$0xf] %v1168_v53  ;;  %1393 = vrot.lane.b32.xlu0 %v3608_v36, %s2725_s23 }
 0x18c   : > { %v1083_v43 = vpop.permute.xlu1 %1082 }
 0x18d   : > { %v1079_v58 = vpop.permute.xlu0 %1078  ;;  %1182 = vst.msk [vmem:[#allocation2 + $0x4c] sm:$0xf] %vm1140_vm12, %v1083_v43 }
 0x18e   : > { %1178 = vst.msk [vmem:[#allocation2 + $0x44] sm:$0xf] %vm1140_vm12, %v1079_v58  ;;  %v2671_v37 = vld [vmem:[#allocation2 + $0x18] sm:$0xff]   ;;  %1546 = vrot.lane.b32.xlu1 %v4779_v35, %s2726_s24 }
 0x18f   : > { %1391 = vrot.lane.b32.xlu0 %v3616_v39, %s2725_s23  ;;  %2600 = vmatmul.mubr.bf16.gmra.mxu0 %v2671_v37 }
 0x190   : > { %v1244_v55 = vpop.permute.xlu1 %1243 }
 0x191   : > { %v1234_v27 = vpop.permute.xlu0 %1233  ;;  %1323 = vst.msk [vmem:[#allocation2 + $0x44] sm:$0xf] %vm1305_vm14, %v1244_v55 }
 0x192   : > { %1318 = vst.msk [vmem:[#allocation2 + $0x30] sm:$0xf] %vm1305_vm14, %v1234_v27  ;;  %1556 = vrot.lane.b32.xlu1 %v4781_v8, %s2726_s24 }
 0x193   : > { %1552 = vrot.lane.b32.xlu0 %v3466_v6, %s2726_s24 }
 0x194   : > { %v1238_v46 = vpop.permute.xlu1 %1237 }
 0x195   : > { %v1374_v38 = vpop.permute.xlu0 %1373  ;;  %1320 = vst.msk [vmem:[#allocation2 + $0x38] sm:$0xf] %vm1305_vm14, %v1238_v46 }
 0x196   : > { %v1472_v4 = vsel %vm3946_vm1, %v1374_v38, %v1471_v45  ;;  %1705 = vrot.lane.b32.xlu1 %v4086_v20, %s2727_s25 }
 0x197   : > { %1473 = vst [vmem:[#allocation2 + $0x34] sm:$0xf] %v1472_v4  ;;  %1695 = vrot.lane.b32.xlu0 %v4074_v57, %s2727_s25 }
 0x198   : > { %v1372_v10 = vpop.permute.xlu1 %1371  ;;  %v1479_v45 = vld [vmem:[#allocation2 + $0x44] sm:$0xf] }
 0x199   : > { %v1248_v60 = vpop.permute.xlu0 %1247  ;;  %1470 = vst.msk [vmem:[#allocation2 + $0x30] sm:$0xf] %vm1443_vm15, %v1372_v10 }
 0x19a   : > { %1325 = vst.msk [vmem:[#allocation2 + $0x4c] sm:$0xf] %vm1305_vm14, %v1248_v60  ;;  %1699 = vrot.lane.b32.xlu1 %v2705_v14, %s2727_s25 }
 0x19b   : > { %1818 = vrot.lane.b32.xlu0 %v3580_v16, %s2728_s16  ;;  %v1623_v16 = vld [vmem:[#allocation2 + $0x28] sm:$0xf] }
 0x19c   : > { %v1527_v6 = vpop.permute.xlu1 %1526 }
 0x19d   : > { %v1378_v56 = vpop.permute.xlu0 %1377  ;;  %v1620_v20 = vsel %vm4024_vm6, %v1527_v6, %v1619_v29 }
 0x19e   : > { %v1476_v57 = vsel %vm3946_vm1, %v1378_v56, %v1475_v32  ;;  %1621 = vst [vmem:[#allocation2 + $0x20] sm:$0xf] %v1620_v20  ;;  %1816 = vrot.lane.b32.xlu1 %v3584_v23, %s2728_s16  ;;  %v4295_v32 = vld [vmem:[%s2767_s18 + $0x7c] sm:$0xf] }
 0x19f   : > { %1477 = vst [vmem:[#allocation2 + $0x3c] sm:$0xf] %v1476_v57  ;;  %1709 = vrot.lane.b32.xlu0 %v4153_v3, %s2727_s25  ;;  %v1037_v20 = vshrl.u32 %v4295_v32, 16 }
 0x1a0   : > { %v1531_v26 = vpop.permute.xlu1 %1530  ;;  %v1627_v60 = vld [vmem:[#allocation2 + $0x30] sm:$0xf] }
 0x1a1   : > { %v1376_v21 = vpop.permute.xlu0 %1375  ;;  %v1624_v41 = vsel %vm4024_vm6, %v1531_v26, %v1623_v16  ;;  %v1483_v6 = vld [vmem:[#allocation2 + $0x4c] sm:$0xf] }
 0x1a2   : > { %1474 = vst.msk [vmem:[#allocation2 + $0x38] sm:$0xf] %vm1443_vm15, %v1376_v21  ;;  %1625 = vst [vmem:[#allocation2 + $0x28] sm:$0xf] %v1624_v41  ;;  %1820 = vrot.lane.b32.xlu1 %v3602_v24, %s2728_s16  ;;  %v2708_v24 = vld [vmem:[%s2767_s18 + $0x60] sm:$0xf] }
 0x1a3   : > { %1822 = vrot.lane.b32.xlu0 %v4782_v62, %s2728_s16  ;;  %v2711_v41 = vld [vmem:[%s2767_s18 + $0x70] sm:$0xf] }
 0x1a4   : > { %v1541_v23 = vpop.permute.xlu1 %1540 }
 0x1a5   : > { %v1537_v35 = vpop.permute.xlu0 %1536  ;;  %1634 = vst.msk [vmem:[#allocation2 + $0x3c] sm:$0xf] %vm1600_vm2, %v1541_v23  ;;  %v1039_v23 = vrot.slane %v1037_v20, 7 }
 0x1a6   : > { %1630 = vst.msk [vmem:[#allocation2 + $0x34] sm:$0xf] %vm1600_vm2, %v1537_v35  ;;  %1096 = vrot.lane.b32.xlu1 %v4783_v61, %s2723_s21  ;;  %v1040_v35 = vshll.u32 %v4295_v32, 16 }
 0x1a7   : > { %1092 = vrot.lane.b32.xlu0 %v4784_v40, %s2723_s21 }
 0x1a8   : > { %v1690_v8 = vpop.permute.xlu1 %1689 }
 0x1a9   : > { %v1680_v9 = vpop.permute.xlu0 %1679  ;;  %1767 = vst.msk [vmem:[#allocation2 + $0x34] sm:$0xf] %vm1753_vm5, %v1690_v8  ;;  %v1631_v26 = vld [vmem:[#allocation2 + $0x38] sm:$0xf] }
 0x1aa   : > { %1762 = vst.msk [vmem:[#allocation2 + $0x20] sm:$0xf] %vm1753_vm5, %v1680_v9  ;;  %1257 = vrot.lane.b32.xlu1 %v2708_v24, %s2724_s22 }
 0x1ab   : > { %1102 = vrot.lane.b32.xlu0 %v4785_v19, %s2723_s21 }
 0x1ac   : > { %v1684_v1 = vpop.permute.xlu1 %1683 }
 0x1ad   : > { %v1803_v3 = vpop.permute.xlu0 %1802  ;;  %1764 = vst.msk [vmem:[#allocation2 + $0x28] sm:$0xf] %vm1753_vm5, %v1684_v1 }
 0x1ae   : > { %v1895_v14 = vsel %vm4057_vm7, %v1803_v3, %v1894_v49  ;;  %1397 = vrot.lane.b32.xlu1 %v3630_v28, %s2725_s23 }
 0x1af   : > { %1896 = vst [vmem:[#allocation2 + $0x24] sm:$0xf] %v1895_v14  ;;  %1267 = vrot.lane.b32.xlu0 %v2709_v44, %s2724_s22 }
 0x1b0   : > { %v1801_v59 = vpop.permute.xlu1 %1800 }
 0x1b1   : > { %v1694_v62 = vpop.permute.xlu0 %1693  ;;  %1893 = vst.msk [vmem:[#allocation2 + $0x20] sm:$0xf] %vm1874_vm3, %v1801_v59 }
 0x1b2   : > { %1769 = vst.msk [vmem:[#allocation2 + $0x3c] sm:$0xf] %vm1753_vm5, %v1694_v62  ;;  %1395 = vrot.lane.b32.xlu1 %v3638_v33, %s2725_s23 }
 0x1b3   : > { %1261 = vrot.lane.b32.xlu0 %v4249_v13, %s2724_s22 }
 0x1b4   : > { %v1805_v17 = vpop.permute.xlu1 %1804 }
 0x1b5   : > { %v1807_v2 = vpop.permute.xlu0 %1806  ;;  %1897 = vst.msk [vmem:[#allocation2 + $0x28] sm:$0xf] %vm1874_vm3, %v1805_v17 }
 0x1b6   : > { %v1899_v7 = vsel %vm4057_vm7, %v1807_v2, %v1898_v11  ;;  %1550 = vrot.lane.b32.xlu1 %v4705_v31, %s2726_s24 }
 0x1b7   : > { %1900 = vst [vmem:[#allocation2 + $0x2c] sm:$0xf] %v1899_v7  ;;  %1401 = vrot.lane.b32.xlu0 %v3644_v51, %s2725_s23 }
 0x1b8   : > { %v1081_v0 = vpop.permute.xlu1 %1080  ;;  %v2672_v42 = vld [vmem:[#allocation2 + $0x20] sm:$0xff]  }
 0x1b9   : > { %v1077_v18 = vpop.permute.xlu0 %1076  ;;  %v1180_v53 = vsel %vm3908_vm13, %v1081_v0, %v1179_v5  ;;  %2603 = vmatprep.mubr.bf16.mxu0 %v2672_v42  ;;  %v1906_v2 = vld [vmem:[#allocation2 + $0x3c] sm:$0xf]  ;;  %v1183_v5 = vld [vmem:[#allocation2 + $0x50] sm:$0xf]  ;;  %v1187_v0 = vld [vmem:[#allocation2 + $0x58] sm:$0xf] }
 0x1ba   : > { %v1176_v43 = vsel %vm3908_vm13, %v1077_v18, %v1175_v34  ;;  %1181 = vst [vmem:[#allocation2 + $0x48] sm:$0xf] %v1180_v53  ;;  %1554 = vrot.lane.b32.xlu1 %v4784_v40, %s2726_s24 }
 0x1bb   : > { %1177 = vst [vmem:[#allocation2 + $0x40] sm:$0xf] %v1176_v43  ;;  %1399 = vrot.lane.b32.xlu0 %v3648_v50, %s2725_s23 }
 0x1bc   : > { %v1091_v31 = vpop.permute.xlu1 %1090 }
 0x1bd   : > { %v1087_v58 = vpop.permute.xlu0 %1086  ;;  %1190 = vst.msk [vmem:[#allocation2 + $0x5c] sm:$0xf] %vm1140_vm12, %v1091_v31  ;;  %v1342_v31 = vrot.slane %v1040_v35, 5 }
 0x1be   : > { %1186 = vst.msk [vmem:[#allocation2 + $0x54] sm:$0xf] %vm1140_vm12, %v1087_v58  ;;  %v2673_v37 = vld [vmem:[#allocation2 + $0x28] sm:$0xff]   ;;  %1564 = vrot.lane.b32.xlu1 %v4785_v19, %s2726_s24  ;;  %v1344_v58 = vrot.slane %v1037_v20, 4 }
 0x1bf   : > { %1560 = vrot.lane.b32.xlu0 %v4780_v15, %s2726_s24  ;;  %2604 = vmatmul.mubr.bf16.gmra.mxu0 %v2673_v37 }
 0x1c0   : > { %v1252_v55 = vpop.permute.xlu1 %1251 }
 0x1c1   : > { %v1242_v27 = vpop.permute.xlu0 %1241  ;;  %1327 = vst.msk [vmem:[#allocation2 + $0x54] sm:$0xf] %vm1305_vm14, %v1252_v55 }
 0x1c2   : > { %1322 = vst.msk [vmem:[#allocation2 + $0x40] sm:$0xf] %vm1305_vm14, %v1242_v27  ;;  %1713 = vrot.lane.b32.xlu1 %v4174_v30, %s2727_s25 }
 0x1c3   : > { %1703 = vrot.lane.b32.xlu0 %v4162_v52, %s2727_s25  ;;  %v4292_v52 = vld [vmem:[%s2767_s18 + $0x78] sm:$0xf]  ;;  %s2525_s18 = sshll.u32 %s2755_s13, 5 }
 0x1c4   : > { %v1246_v46 = vpop.permute.xlu1 %1245  ;;  %p174_p4 = scmp.lt.s32.totalorder %s2525_s18, 63 }
 0x1c5   : > { %v1382_v38 = vpop.permute.xlu0 %1381  ;;  %1324 = vst.msk [vmem:[#allocation2 + $0x48] sm:$0xf] %vm1305_vm14, %v1246_v46  ;;  %v1345_v46 = vor.u32 %v1344_v58, %v1342_v31 }
 0x1c6   : > { %v1480_v15 = vsel %vm3946_vm1, %v1382_v38, %v1479_v45  ;;  %1707 = vrot.lane.b32.xlu1 %v2708_v24, %s2727_s25  ;;  %v1042_v24 = vor.u32 %v1040_v35, %v1039_v23  ;;  %s4789_s18 = smov (!%p174_p4, %s2525_s18), 63 }
 0x1c7   : > { %1481 = vst [vmem:[#allocation2 + $0x44] sm:$0xf] %v1480_v15  ;;  %1826 = vrot.lane.b32.xlu0 %v3608_v36, %s2728_s16  ;;  %s2526_s13 = sshll.u32 %s4789_s18, 3 }
 0x1c8   : > { %v1380_v30 = vpop.permute.xlu1 %1379 }
 0x1c9   : > { %v1256_v4 = vpop.permute.xlu0 %1255  ;;  %1478 = vst.msk [vmem:[#allocation2 + $0x40] sm:$0xf] %vm1443_vm15, %v1380_v30 }
 0x1ca   : > { %1329 = vst.msk [vmem:[#allocation2 + $0x5c] sm:$0xf] %vm1305_vm14, %v1256_v4  ;;  %1824 = vrot.lane.b32.xlu1 %v3616_v39, %s2728_s16  ;;  %v1029_v39 = vshrl.u32 %v4292_v52, 16 }
 0x1cb   : > { %1717 = vrot.lane.b32.xlu0 %v2709_v44, %s2727_s25  ;;  %v1902_v44 = vld [vmem:[#allocation2 + $0x34] sm:$0xf] }
 0x1cc   : > { %v1535_v10 = vpop.permute.xlu1 %1534  ;;  %v1338_v45 = vrot.slane %v1029_v39, 4 }
 0x1cd   : > { %v1386_v29 = vpop.permute.xlu0 %1385  ;;  %v1628_v36 = vsel %vm4024_vm6, %v1535_v10, %v1627_v60  ;;  %v1487_v10 = vld [vmem:[#allocation2 + $0x54] sm:$0xf] }
 0x1ce   : > { %v1484_v56 = vsel %vm3946_vm1, %v1386_v29, %v1483_v6  ;;  %1629 = vst [vmem:[#allocation2 + $0x30] sm:$0xf] %v1628_v36  ;;  %1828 = vrot.lane.b32.xlu1 %v3638_v33, %s2728_s16  ;;  %v4786_v33 = vld [vmem:[#allocation30_spill] sm:$0xff] }
 0x1cf   : > { %1485 = vst [vmem:[#allocation2 + $0x4c] sm:$0xf] %v1484_v56  ;;  %1830 = vrot.lane.b32.xlu0 %v3630_v28, %s2728_s16  ;;  %v1031_v28 = vrot.slane %v1029_v39, 7 }
 0x1d0   : > { %v1539_v57 = vpop.permute.xlu1 %1538  ;;  %v1635_v20 = vld [vmem:[#allocation2 + $0x40] sm:$0xf] }
 0x1d1   : > { %v1384_v16 = vpop.permute.xlu0 %1383  ;;  %v1632_v21 = vsel %vm4024_vm6, %v1539_v57, %v1631_v26  ;;  %v1035_v9 = vrot.slane %v1031_v28, 4  ;;  %v1491_v57 = vld [vmem:[#allocation2 + $0x5c] sm:$0xf] }
 0x1d2   : > { %1482 = vst.msk [vmem:[#allocation2 + $0x48] sm:$0xf] %vm1443_vm15, %v1384_v16  ;;  %1633 = vst [vmem:[#allocation2 + $0x38] sm:$0xf] %v1632_v21  ;;  %1265 = vrot.lane.b32.xlu1 %v2711_v41, %s2724_s22 }
 0x1d3   : > { %1100 = vrot.lane.b32.xlu0 %v4786_v33, %s2723_s21  ;;  %v1043_v3 = vsel %vm3272_vm8, %v1035_v9, %v1042_v24 }
 0x1d4   : > { %v1549_v40 = vpop.permute.xlu1 %1548 }
 0x1d5   : > { %v1545_v8 = vpop.permute.xlu0 %1544  ;;  %1642 = vst.msk [vmem:[#allocation2 + $0x4c] sm:$0xf] %vm1600_vm2, %v1549_v40 }
 0x1d6   : > { %1638 = vst.msk [vmem:[#allocation2 + $0x44] sm:$0xf] %vm1600_vm2, %v1545_v8  ;;  %1403 = vrot.lane.b32.xlu1 %v3658_v22, %s2725_s23 }
 0x1d7   : > { %1405 = vrot.lane.b32.xlu0 %v3654_v47, %s2725_s23 }
 0x1d8   : > { %v1698_v19 = vpop.permute.xlu1 %1697 }
 0x1d9   : > { %v1688_v1 = vpop.permute.xlu0 %1687  ;;  %1771 = vst.msk [vmem:[#allocation2 + $0x44] sm:$0xf] %vm1753_vm5, %v1698_v19 }
 0x1da   : > { %1766 = vst.msk [vmem:[#allocation2 + $0x30] sm:$0xf] %vm1753_vm5, %v1688_v1  ;;  %1562 = vrot.lane.b32.xlu1 %v4786_v33, %s2726_s24 }
 0x1db   : > { %1558 = vrot.lane.b32.xlu0 %v4783_v61, %s2726_s24 }
 0x1dc   : > { %v1692_v14 = vpop.permute.xlu1 %1691 }
 0x1dd   : > { %v1811_v59 = vpop.permute.xlu0 %1810  ;;  %1768 = vst.msk [vmem:[#allocation2 + $0x38] sm:$0xf] %vm1753_vm5, %v1692_v14 }
 0x1de   : > { %v1903_v62 = vsel %vm4057_vm7, %v1811_v59, %v1902_v44  ;;  %1106 = vrot.lane.b32.xlu1 %v1043_v3, %s2723_s21 }
 0x1df   : > { %1904 = vst [vmem:[#allocation2 + $0x34] sm:$0xf] %v1903_v62  ;;  %1568 = vrot.lane.b32.xlu0 %v1043_v3, %s2726_s24  ;;  %v1191_v62 = vld [vmem:[#allocation2 + $0x60] sm:$0xf] }
 0x1e0   : > { %v1809_v17 = vpop.permute.xlu1 %1808  ;;  %v1910_v9 = vld [vmem:[#allocation2 + $0x44] sm:$0xf] }
 0x1e1   : > { %v1702_v11 = vpop.permute.xlu0 %1701  ;;  %1901 = vst.msk [vmem:[#allocation2 + $0x30] sm:$0xf] %vm1874_vm3, %v1809_v17  ;;  %v1195_v17 = vld [vmem:[#allocation2 + $0x68] sm:$0xf] }
 0x1e2   : > { %1773 = vst.msk [vmem:[#allocation2 + $0x4c] sm:$0xf] %vm1753_vm5, %v1702_v11  ;;  %1721 = vrot.lane.b32.xlu1 %v4295_v32, %s2727_s25 }
 0x1e3   : > { %1711 = vrot.lane.b32.xlu0 %v4249_v13, %s2727_s25 }
 0x1e4   : > { %v1813_v61 = vpop.permute.xlu1 %1812 }
 0x1e5   : > { %v1815_v7 = vpop.permute.xlu0 %1814  ;;  %1905 = vst.msk [vmem:[#allocation2 + $0x38] sm:$0xf] %vm1874_vm3, %v1813_v61 }
 0x1e6   : > { %v1907_v34 = vsel %vm4057_vm7, %v1815_v7, %v1906_v2  ;;  %1271 = vrot.lane.b32.xlu1 %v4295_v32, %s2724_s22 }
 0x1e7   : > { %1908 = vst [vmem:[#allocation2 + $0x3c] sm:$0xf] %v1907_v34  ;;  %1834 = vrot.lane.b32.xlu0 %v3644_v51, %s2728_s16  ;;  %v1032_v51 = vshll.u32 %v4292_v52, 16 }
 0x1e8   : > { %v1089_v18 = vpop.permute.xlu1 %1088  ;;  %v2674_v13 = vld [vmem:[#allocation2 + $0x30] sm:$0xff]  }
 0x1e9   : > { %v1085_v42 = vpop.permute.xlu0 %1084  ;;  %v1188_v53 = vsel %vm3908_vm13, %v1089_v18, %v1187_v0  ;;  %2607 = vmatprep.mubr.bf16.mxu0 %v2674_v13  ;;  %v1339_v38 = vrot.slane %v1032_v51, 5  ;;  %v1914_v14 = vld [vmem:[#allocation2 + $0x4c] sm:$0xf] }
 0x1ea   : > { %v1184_v43 = vsel %vm3908_vm13, %v1085_v42, %v1183_v5  ;;  %1189 = vst [vmem:[#allocation2 + $0x58] sm:$0xf] %v1188_v53  ;;  %1832 = vrot.lane.b32.xlu1 %v3648_v50, %s2728_s16  ;;  %v1034_v50 = vor.u32 %v1032_v51, %v1031_v28 }
 0x1eb   : > { %1185 = vst [vmem:[#allocation2 + $0x50] sm:$0xf] %v1184_v43  ;;  %1715 = vrot.lane.b32.xlu0 %v2711_v41, %s2727_s25  ;;  %v1340_v4 = vor.u32 %v1339_v38, %v1338_v45  ;;  %v1639_v41 = vld [vmem:[#allocation2 + $0x48] sm:$0xf] }
 0x1ec   : > { %v1099_v37 = vpop.permute.xlu1 %1098 }
 0x1ed   : > { %v1095_v55 = vpop.permute.xlu0 %1094  ;;  %1198 = vst.msk [vmem:[#allocation2 + $0x6c] sm:$0xf] %vm1140_vm12, %v1099_v37  ;;  %v1341_v29 = vrot.slane %v1340_v4, 4 }
 0x1ee   : > { %1194 = vst.msk [vmem:[#allocation2 + $0x64] sm:$0xf] %vm1140_vm12, %v1095_v55  ;;  %v2675_v27 = vld [vmem:[#allocation2 + $0x38] sm:$0xff]   ;;  %1836 = vrot.lane.b32.xlu1 %v3658_v22, %s2728_s16  ;;  %v1346_v22 = vrot.slane %v1345_v46, 4 }
 0x1ef   : > { %1838 = vrot.lane.b32.xlu0 %v3654_v47, %s2728_s16  ;;  %2608 = vmatmul.mubr.bf16.gmra.mxu0 %v2675_v27  ;;  %v1343_v56 = vsel %vm3095_vm4, %v1341_v29, %v1342_v31 }
 0x1f0   : > { %v1260_v15 = vpop.permute.xlu1 %1259 }
 0x1f1   : > { %v1250_v30 = vpop.permute.xlu0 %1249  ;;  %1331 = vst.msk [vmem:[#allocation2 + $0x64] sm:$0xf] %vm1305_vm14, %v1260_v15 }
 0x1f2   : > { %1326 = vst.msk [vmem:[#allocation2 + $0x50] sm:$0xf] %vm1305_vm14, %v1250_v30  ;;  %1104 = vrot.lane.b32.xlu1 %v1034_v50, %s2723_s21 }
 0x1f3   : > { %1566 = vrot.lane.b32.xlu0 %v1034_v50, %s2726_s24 }
 0x1f4   : > { %v1254_v47 = vpop.permute.xlu1 %1253 }
 0x1f5   : > { %v1390_v60 = vpop.permute.xlu0 %1389  ;;  %1328 = vst.msk [vmem:[#allocation2 + $0x58] sm:$0xf] %vm1305_vm14, %v1254_v47 }
 0x1f6   : > { %v1488_v6 = vsel %vm3946_vm1, %v1390_v60, %v1487_v10  ;;  %1842 = vrot.lane.b32.xlu1 %v1346_v22, %s2728_s16 }
 0x1f7   : > { %1489 = vst [vmem:[#allocation2 + $0x54] sm:$0xf] %v1488_v6  ;;  %1719 = vrot.lane.b32.xlu0 %v4292_v52, %s2727_s25 }
 0x1f8   : > { %v1388_v32 = vpop.permute.xlu1 %1387  ;;  %v1495_v53 = vld [vmem:[#allocation2 + $0x64] sm:$0xf] }
 0x1f9   : > { %v1264_v36 = vpop.permute.xlu0 %1263  ;;  %1486 = vst.msk [vmem:[#allocation2 + $0x50] sm:$0xf] %vm1443_vm15, %v1388_v32 }
 0x1fa   : > { %1333 = vst.msk [vmem:[#allocation2 + $0x6c] sm:$0xf] %vm1305_vm14, %v1264_v36  ;;  %1409 = vrot.lane.b32.xlu1 %v1346_v22, %s2725_s23 }
 0x1fb   : > { %1269 = vrot.lane.b32.xlu0 %v4292_v52, %s2724_s22  ;;  %s4413_s22 = scalar_lea.vmem %s4520_s2, %s2526_s13 }
 0x1fc   : > { %v1543_v39 = vpop.permute.xlu1 %1542 }
 0x1fd   : > { %v1394_v26 = vpop.permute.xlu0 %1393  ;;  %v1636_v16 = vsel %vm4024_vm6, %v1543_v39, %v1635_v20 }
 0x1fe   : > { %v1492_v21 = vsel %vm3946_vm1, %v1394_v26, %v1491_v57  ;;  %1637 = vst [vmem:[#allocation2 + $0x40] sm:$0xf] %v1636_v16  ;;  %1407 = vrot.lane.b32.xlu1 %v1343_v56, %s2725_s23  ;;  %s2527_s23 = sshll.u32 %s2761_s14, 1 }
 0x1ff   : > { %1493 = vst [vmem:[#allocation2 + $0x5c] sm:$0xf] %v1492_v21  ;;  %1840 = vrot.lane.b32.xlu0 %v1343_v56, %s2728_s16  ;;  %s182_s26 = scalar_lea.vmem %s4521_s3, %s2527_s23 }
 0x200   : > { %v1547_v52 = vpop.permute.xlu1 %1546  ;;  %v1643_v4 = vld [vmem:[#allocation2 + $0x50] sm:$0xf] }
 0x201   : > { %v1392_v48 = vpop.permute.xlu0 %1391  ;;  %v1640_v33 = vsel %vm4024_vm6, %v1547_v52, %v1639_v41  ;;  %v1499_v47 = vld [vmem:[#allocation2 + $0x6c] sm:$0xf] }
 0x202   : > { %1490 = vst.msk [vmem:[#allocation2 + $0x58] sm:$0xf] %vm1443_vm15, %v1392_v48  ;;  %1641 = vst [vmem:[#allocation2 + $0x48] sm:$0xf] %v1640_v33 }
 0x204   : > { %v1557_v28 = vpop.permute.xlu1 %1556 }
 0x205   : > { %v1553_v23 = vpop.permute.xlu0 %1552  ;;  %1650 = vst.msk [vmem:[#allocation2 + $0x5c] sm:$0xf] %vm1600_vm2, %v1557_v28 }
 0x206   : > { %1646 = vst.msk [vmem:[#allocation2 + $0x54] sm:$0xf] %vm1600_vm2, %v1553_v23 }
 0x208   : > { %v1706_v35 = vpop.permute.xlu1 %1705 }
 0x209   : > { %v1696_v40 = vpop.permute.xlu0 %1695  ;;  %1775 = vst.msk [vmem:[#allocation2 + $0x54] sm:$0xf] %vm1753_vm5, %v1706_v35  ;;  %v1647_v39 = vld [vmem:[#allocation2 + $0x58] sm:$0xf] }
 0x20a   : > { %1770 = vst.msk [vmem:[#allocation2 + $0x40] sm:$0xf] %vm1753_vm5, %v1696_v40 }
 0x20c   : > { %v1700_v8 = vpop.permute.xlu1 %1699 }
 0x20d   : > { %v1819_v24 = vpop.permute.xlu0 %1818  ;;  %1772 = vst.msk [vmem:[#allocation2 + $0x48] sm:$0xf] %vm1753_vm5, %v1700_v8 }
 0x20e   : > { %v1911_v19 = vsel %vm4057_vm7, %v1819_v24, %v1910_v9 }
 0x20f   : > { %1912 = vst [vmem:[#allocation2 + $0x44] sm:$0xf] %v1911_v19 }
 0x210   : > { %v1817_v1 = vpop.permute.xlu1 %1816  ;;  %v1918_v33 = vld [vmem:[#allocation2 + $0x54] sm:$0xf] }
 0x211   : > { %v1710_v49 = vpop.permute.xlu0 %1709  ;;  %1909 = vst.msk [vmem:[#allocation2 + $0x40] sm:$0xf] %vm1874_vm3, %v1817_v1 }
 0x212   : > { %1777 = vst.msk [vmem:[#allocation2 + $0x5c] sm:$0xf] %vm1753_vm5, %v1710_v49  ;;  %v1199_v49 = vld [vmem:[#allocation2 + $0x70] sm:$0xf] }
 0x214   : > { %v1821_v3 = vpop.permute.xlu1 %1820 }
 0x215   : > { %v1823_v44 = vpop.permute.xlu0 %1822  ;;  %1913 = vst.msk [vmem:[#allocation2 + $0x48] sm:$0xf] %vm1874_vm3, %v1821_v3 }
 0x216   : > { %v1915_v59 = vsel %vm4057_vm7, %v1823_v44, %v1914_v14 }
 0x217   : > { %1916 = vst [vmem:[#allocation2 + $0x4c] sm:$0xf] %v1915_v59 }
 0x218   : > { %v1097_v11 = vpop.permute.xlu1 %1096  ;;  %v2676_v2 = vld [vmem:[#allocation2 + $0x40] sm:$0xff]  }
 0x219   : > { %v1093_v61 = vpop.permute.xlu0 %1092  ;;  %v1196_v7 = vsel %vm3908_vm13, %v1097_v11, %v1195_v17  ;;  %2611 = vmatprep.mubr.bf16.mxu1 %v2676_v2  ;;  %v1922_v9 = vld [vmem:[#allocation2 + $0x5c] sm:$0xf] }
 0x21a   : > { %v1192_v34 = vsel %vm3908_vm13, %v1093_v61, %v1191_v62  ;;  %1197 = vst [vmem:[#allocation2 + $0x68] sm:$0xf] %v1196_v7 }
 0x21b   : > { %1193 = vst [vmem:[#allocation2 + $0x60] sm:$0xf] %v1192_v34 }
 0x21c   : > { %v1258_v5 = vpop.permute.xlu1 %1257 }
 0x21d   : > { %v1103_v0 = vpop.permute.xlu0 %1102  ;;  %1330 = vst.msk [vmem:[#allocation2 + $0x60] sm:$0xf] %vm1305_vm14, %v1258_v5 }
 0x21e   : > { %1202 = vst.msk [vmem:[#allocation2 + $0x74] sm:$0xf] %vm1140_vm12, %v1103_v0  ;;  %v2677_v18 = vld [vmem:[#allocation2 + $0x48] sm:$0xff]  }
 0x21f   : > { %2612 = vmatmul.mubr.bf16.vlgmr.msra.gmra.mxu1 %v2677_v18  ;;  %v2597_v42 = vpop.f32.mrf.mxu0 }
 0x220   : > { %v1398_v13 = vpop.permute.xlu1 %1397  ;;  %2292 = vst [vmem:[%s4413_s22 + $0x10] sm:$0xff] %v2597_v42  ;;  %v2361_v38 = vmul.f32 %v2597_v42, %v2597_v42 }
 0x221   : > { %v1268_v43 = vpop.permute.xlu0 %1267  ;;  %v1496_v51 = vsel %vm3946_vm1, %v1398_v13, %v1495_v53  ;;  %v2163_v31 = vpop.f32.mrf.mxu0 }
 0x222   : > { %1335 = vst.msk [vmem:[#allocation2 + $0x74] sm:$0xf] %vm1305_vm14, %v1268_v43  ;;  %1497 = vst [vmem:[#allocation2 + $0x64] sm:$0xf] %v1496_v51  ;;  %v2359_v50 = vmul.f32 %v2163_v31, %v2163_v31 }
 0x223   : > { %2290 = vst [vmem:[%s4413_s22] sm:$0xff] %v2163_v31  ;;  %v2598_v58 = vpop.f32.mrf.mxu0 }
 0x224   : > { %v1396_v37 = vpop.permute.xlu1 %1395  ;;  %2293 = vst [vmem:[%s4413_s22 + $0x18] sm:$0xff] %v2598_v58  ;;  %v2362_v29 = vmul.f32 %v2598_v58, %v2598_v58 }
 0x225   : > { %v1262_v55 = vpop.permute.xlu0 %1261  ;;  %1494 = vst.msk [vmem:[#allocation2 + $0x60] sm:$0xf] %vm1443_vm15, %v1396_v37  ;;  %v2166_v27 = vpop.f32.mrf.mxu0 }
 0x226   : > { %1332 = vst.msk [vmem:[#allocation2 + $0x68] sm:$0xf] %vm1305_vm14, %v1262_v55  ;;  %2291 = vst [vmem:[%s4413_s22 + $0x8] sm:$0xff] %v2166_v27  ;;  %v2322_v46 = vadd.f32 %v2166_v27, %v2163_v31  ;;  %v2360_v45 = vmul.f32 %v2166_v27, %v2166_v27 }
 0x228   : > { %v2323_v15 = vadd.f32 %v2597_v42, %v2322_v46  ;;  %v2391_v30 = vadd.f32 %v2360_v45, %v2359_v50  ;;  %v1551_v22 = vpop.permute.xlu1 %1550 }
 0x229   : > { %v1402_v10 = vpop.permute.xlu0 %1401  ;;  %v1644_v60 = vsel %vm4024_vm6, %v1551_v22, %v1643_v4  ;;  %v1503_v62 = vld [vmem:[#allocation2 + $0x74] sm:$0xf] }
 0x22a   : > { %v1500_v6 = vsel %vm3946_vm1, %v1402_v10, %v1499_v47  ;;  %v2392_v32 = vadd.f32 %v2391_v30, %v2361_v38  ;;  %1645 = vst [vmem:[#allocation2 + $0x50] sm:$0xf] %v1644_v60  ;;  %v4428_v36 = vadd.f32 %v2598_v58, %v2323_v15 }
 0x22b   : > { %1501 = vst [vmem:[#allocation2 + $0x6c] sm:$0xf] %v1500_v6 }
 0x22c   : > { %v1555_v56 = vpop.permute.xlu1 %1554  ;;  %v4430_v57 = vadd.f32 %v2392_v32, %v2362_v29  ;;  %v1651_v34 = vld [vmem:[#allocation2 + $0x60] sm:$0xf] }
 0x22d   : > { %v1400_v20 = vpop.permute.xlu0 %1399  ;;  %v1648_v26 = vsel %vm4024_vm6, %v1555_v56, %v1647_v39 }
 0x22e   : > { %1498 = vst.msk [vmem:[#allocation2 + $0x68] sm:$0xf] %vm1443_vm15, %v1400_v20  ;;  %1649 = vst [vmem:[#allocation2 + $0x58] sm:$0xf] %v1648_v26 }
 0x230   : > { %v1565_v16 = vpop.permute.xlu1 %1564 }
 0x231   : > { %v1561_v21 = vpop.permute.xlu0 %1560  ;;  %1658 = vst.msk [vmem:[#allocation2 + $0x6c] sm:$0xf] %vm1600_vm2, %v1565_v16  ;;  %v1203_v16 = vld [vmem:[#allocation2 + $0x78] sm:$0xf] }
 0x232   : > { %1654 = vst.msk [vmem:[#allocation2 + $0x64] sm:$0xf] %vm1600_vm2, %v1561_v21 }
 0x234   : > { %v1714_v52 = vpop.permute.xlu1 %1713 }
 0x235   : > { %v1704_v41 = vpop.permute.xlu0 %1703  ;;  %1779 = vst.msk [vmem:[#allocation2 + $0x64] sm:$0xf] %vm1753_vm5, %v1714_v52  ;;  %v1655_v7 = vld [vmem:[#allocation2 + $0x68] sm:$0xf] }
 0x236   : > { %1774 = vst.msk [vmem:[#allocation2 + $0x50] sm:$0xf] %vm1753_vm5, %v1704_v41 }
 0x238   : > { %v1708_v48 = vpop.permute.xlu1 %1707 }
 0x239   : > { %v1827_v28 = vpop.permute.xlu0 %1826  ;;  %1776 = vst.msk [vmem:[#allocation2 + $0x58] sm:$0xf] %vm1753_vm5, %v1708_v48 }
 0x23a   : > { %v1919_v23 = vsel %vm4057_vm7, %v1827_v28, %v1918_v33 }
 0x23b   : > { %1920 = vst [vmem:[#allocation2 + $0x54] sm:$0xf] %v1919_v23 }
 0x23c   : > { %v1825_v35 = vpop.permute.xlu1 %1824  ;;  %v1926_v4 = vld [vmem:[#allocation2 + $0x64] sm:$0xf] }
 0x23d   : > { %v1718_v40 = vpop.permute.xlu0 %1717  ;;  %1917 = vst.msk [vmem:[#allocation2 + $0x50] sm:$0xf] %vm1874_vm3, %v1825_v35 }
 0x23e   : > { %1781 = vst.msk [vmem:[#allocation2 + $0x6c] sm:$0xf] %vm1753_vm5, %v1718_v40 }
 0x240   : > { %v1829_v8 = vpop.permute.xlu1 %1828 }
 0x241   : > { %v1831_v24 = vpop.permute.xlu0 %1830  ;;  %1921 = vst.msk [vmem:[#allocation2 + $0x58] sm:$0xf] %vm1874_vm3, %v1829_v8 }
 0x242   : > { %v1923_v19 = vsel %vm4057_vm7, %v1831_v24, %v1922_v9 }
 0x243   : > { %1924 = vst [vmem:[#allocation2 + $0x5c] sm:$0xf] %v1923_v19 }
 0x244   : > { %v1266_v1 = vpop.permute.xlu1 %1265  ;;  %v2678_v14 = vld [vmem:[#allocation2 + $0x50] sm:$0xff]  }
 0x245   : > { %v1101_v3 = vpop.permute.xlu0 %1100  ;;  %2615 = vmatprep.mubr.bf16.mxu1 %v2678_v14  ;;  %v1930_v20 = vld [vmem:[#allocation2 + $0x6c] sm:$0xf] }
 0x246   : > { %v1200_v44 = vsel %vm3908_vm13, %v1101_v3, %v1199_v49 }
 0x247   : > { %1201 = vst [vmem:[#allocation2 + $0x70] sm:$0xf] %v1200_v44 }
 0x248   : > { %1334 = vst.msk [vmem:[#allocation2 + $0x70] sm:$0xf] %vm1305_vm14, %v1266_v1  ;;  %v1404_v59 = vpop.permute.xlu1 %1403 }
 0x249   : > { %v1406_v17 = vpop.permute.xlu0 %1405  ;;  %1502 = vst.msk [vmem:[#allocation2 + $0x70] sm:$0xf] %vm1443_vm15, %v1404_v59 }
 0x24a   : > { %v1504_v11 = vsel %vm3946_vm1, %v1406_v17, %v1503_v62  ;;  %v2679_v61 = vld [vmem:[#allocation2 + $0x58] sm:$0xff]  }
 0x24b   : > { %1505 = vst [vmem:[#allocation2 + $0x74] sm:$0xf] %v1504_v11  ;;  %2616 = vmatmul.mubr.bf16.gmra.mxu1 %v2679_v61 }
 0x24c   : > { %v1563_v2 = vpop.permute.xlu1 %1562 }
 0x24d   : > { %v1559_v5 = vpop.permute.xlu0 %1558  ;;  %v1656_v0 = vsel %vm4024_vm6, %v1563_v2, %v1655_v7 }
 0x24e   : > { %v1652_v18 = vsel %vm4024_vm6, %v1559_v5, %v1651_v34  ;;  %1657 = vst [vmem:[#allocation2 + $0x68] sm:$0xf] %v1656_v0 }
 0x24f   : > { %1653 = vst [vmem:[#allocation2 + $0x60] sm:$0xf] %v1652_v18  ;;  %v2601_v42 = vpop.f32.mrf.mxu0 }
 0x250   : > { %v1107_v13 = vpop.permute.xlu1 %1106  ;;  %2296 = vst [vmem:[%s4413_s22 + $0x30] sm:$0xff] %v2601_v42  ;;  %v2365_v38 = vmul.f32 %v2601_v42, %v2601_v42  ;;  %v1659_v52 = vld [vmem:[#allocation2 + $0x70] sm:$0xf] }
 0x251   : > { %v1569_v53 = vpop.permute.xlu0 %1568  ;;  %1206 = vst.msk [vmem:[#allocation2 + $0x7c] sm:$0xf] %vm1140_vm12, %v1107_v13  ;;  %v2179_v43 = vpop.f32.mrf.mxu0 }
 0x252   : > { %1662 = vst.msk [vmem:[#allocation2 + $0x74] sm:$0xf] %vm1600_vm2, %v1569_v53  ;;  %2294 = vst [vmem:[%s4413_s22 + $0x20] sm:$0xff] %v2179_v43  ;;  %v2325_v51 = vadd.f32 %v4428_v36, %v2179_v43  ;;  %v2363_v31 = vmul.f32 %v2179_v43, %v2179_v43 }
 0x253   : > { %v2602_v58 = vpop.f32.mrf.mxu0 }
 0x254   : > { %v2394_v37 = vadd.f32 %v4430_v57, %v2363_v31  ;;  %v1722_v55 = vpop.permute.xlu1 %1721  ;;  %2297 = vst [vmem:[%s4413_s22 + $0x38] sm:$0xff] %v2602_v58  ;;  %v2366_v60 = vmul.f32 %v2602_v58, %v2602_v58 }
 0x255   : > { %v1712_v27 = vpop.permute.xlu0 %1711  ;;  %1783 = vst.msk [vmem:[#allocation2 + $0x74] sm:$0xf] %vm1753_vm5, %v1722_v55  ;;  %v2182_v50 = vpop.f32.mrf.mxu0 }
 0x256   : > { %1778 = vst.msk [vmem:[#allocation2 + $0x60] sm:$0xf] %vm1753_vm5, %v1712_v27  ;;  %2295 = vst [vmem:[%s4413_s22 + $0x28] sm:$0xff] %v2182_v50  ;;  %v2326_v46 = vadd.f32 %v2325_v51, %v2182_v50  ;;  %v2364_v45 = vmul.f32 %v2182_v50, %v2182_v50 }
 0x258   : > { %v2327_v15 = vadd.f32 %v2601_v42, %v2326_v46  ;;  %v2395_v30 = vadd.f32 %v2394_v37, %v2364_v45  ;;  %v1272_v22 = vpop.permute.xlu1 %1271 }
 0x259   : > { %v1835_v47 = vpop.permute.xlu0 %1834  ;;  %1337 = vst.msk [vmem:[#allocation2 + $0x7c] sm:$0xf] %vm1305_vm14, %v1272_v22 }
 0x25a   : > { %v1927_v10 = vsel %vm4057_vm7, %v1835_v47, %v1926_v4  ;;  %v2396_v6 = vadd.f32 %v2395_v30, %v2365_v38  ;;  %v2328_v29 = vadd.f32 %v2602_v58, %v2327_v15 }
 0x25b   : > { %1928 = vst [vmem:[#allocation2 + $0x64] sm:$0xf] %v1927_v10 }
 0x25c   : > { %v1833_v32 = vpop.permute.xlu1 %1832  ;;  %v2397_v56 = vadd.f32 %v2396_v6, %v2366_v60  ;;  %v1934_v35 = vld [vmem:[#allocation2 + $0x74] sm:$0xf] }
 0x25d   : > { %v1716_v36 = vpop.permute.xlu0 %1715  ;;  %1925 = vst.msk [vmem:[#allocation2 + $0x60] sm:$0xf] %vm1874_vm3, %v1833_v32 }
 0x25e   : > { %1780 = vst.msk [vmem:[#allocation2 + $0x68] sm:$0xf] %vm1753_vm5, %v1716_v36 }
 0x260   : > { %v1837_v39 = vpop.permute.xlu1 %1836  ;;  %v1507_v12 = vld [vmem:[#allocation2 + $0x7c] sm:$0xf] }
 0x261   : > { %v1839_v57 = vpop.permute.xlu0 %1838  ;;  %1929 = vst.msk [vmem:[#allocation2 + $0x68] sm:$0xf] %vm1874_vm3, %v1837_v39 }
 0x262   : > { %v1931_v26 = vsel %vm4057_vm7, %v1839_v57, %v1930_v20 }
 0x263   : > { %1932 = vst [vmem:[#allocation2 + $0x6c] sm:$0xf] %v1931_v26 }
 0x264   : > { %v1105_v21 = vpop.permute.xlu1 %1104  ;;  %v2680_v48 = vld [vmem:[#allocation2 + $0x60] sm:$0xff]  }
 0x265   : > { %v1567_v41 = vpop.permute.xlu0 %1566  ;;  %v1204_v33 = vsel %vm3908_vm13, %v1105_v21, %v1203_v16  ;;  %2619 = vmatprep.mubr.bf16.mxu1 %v2680_v48 }
 0x266   : > { %v1660_v28 = vsel %vm4024_vm6, %v1567_v41, %v1659_v52  ;;  %1205 = vst [vmem:[#allocation2 + $0x78] sm:$0xf] %v1204_v33 }
 0x267   : > { %1661 = vst [vmem:[#allocation2 + $0x70] sm:$0xf] %v1660_v28 }
 0x268   : > { %v1843_v23 = vpop.permute.xlu1 %1842 }
 0x269   : > { %v1720_v40 = vpop.permute.xlu0 %1719  ;;  %v1935_v8 = vsel %vm4057_vm7, %v1843_v23, %v1934_v35 }
 0x26a   : > { %1782 = vst.msk [vmem:[#allocation2 + $0x70] sm:$0xf] %vm1753_vm5, %v1720_v40  ;;  %v2681_v9 = vld [vmem:[#allocation2 + $0x68] sm:$0xff]   ;;  %1936 = vst [vmem:[#allocation2 + $0x74] sm:$0xf] %v1935_v8 }
 0x26b   : > { %2620 = vmatmul.mubr.bf16.gmra.mxu1 %v2681_v9 }
 0x26c   : > { %v1410_v24 = vpop.permute.xlu1 %1409 }
 0x26d   : > { %v1270_v25 = vpop.permute.xlu0 %1269  ;;  %v1508_v19 = vsel %vm3946_vm1, %v1410_v24, %v1507_v12 }
 0x26e   : > { %1336 = vst.msk [vmem:[#allocation2 + $0x78] sm:$0xf] %vm1305_vm14, %v1270_v25  ;;  %1509 = vst [vmem:[#allocation2 + $0x7c] sm:$0xf] %v1508_v19 }
 0x270   : > { %v1408_v1 = vpop.permute.xlu1 %1407 }
 0x271   : > { %v1841_v63 = vpop.permute.xlu0 %1840  ;;  %1506 = vst.msk [vmem:[#allocation2 + $0x78] sm:$0xf] %vm1443_vm15, %v1408_v1 }
 0x272   : > { %1933 = vst.msk [vmem:[#allocation2 + $0x70] sm:$0xf] %vm1874_vm3, %v1841_v63 }
 0x278   : > { %v2683_v3 = vld [vmem:[#allocation2 + $0x78] sm:$0xff]  }
 0x279   : > { %v2682_v49 = vld [vmem:[#allocation2 + $0x70] sm:$0xff]  }
 0x27a   : > { %2623 = vmatprep.mubr.bf16.mxu1 %v2682_v49 }
 0x27b   : > { %2624 = vmatmul.mubr.bf16.gmra.mxu1 %v2683_v3 }
 0x27f   : > { %v2605_v14 = vpop.f32.mrf.mxu0 }
 0x280   : > { %2300 = vst [vmem:[%s4413_s22 + $0x50] sm:$0xff] %v2605_v14  ;;  %v2369_v7 = vmul.f32 %v2605_v14, %v2605_v14 }
 0x281   : > { %v2195_v44 = vpop.f32.mrf.mxu0 }
 0x282   : > { %2298 = vst [vmem:[%s4413_s22 + $0x40] sm:$0xff] %v2195_v44  ;;  %v2329_v54 = vadd.f32 %v2328_v29, %v2195_v44  ;;  %v2367_v59 = vmul.f32 %v2195_v44, %v2195_v44 }
 0x283   : > { %v2606_v62 = vpop.f32.mrf.mxu0 }
 0x284   : > { %v2398_v17 = vadd.f32 %v2397_v56, %v2367_v59  ;;  %2301 = vst [vmem:[%s4413_s22 + $0x58] sm:$0xff] %v2606_v62  ;;  %v2370_v0 = vmul.f32 %v2606_v62, %v2606_v62 }
 0x285   : > { %v2198_v11 = vpop.f32.mrf.mxu0 }
 0x286   : > { %2299 = vst [vmem:[%s4413_s22 + $0x48] sm:$0xff] %v2198_v11  ;;  %v2330_v61 = vadd.f32 %v2329_v54, %v2198_v11  ;;  %v2368_v2 = vmul.f32 %v2198_v11, %v2198_v11 }
 0x288   : > { %v2331_v34 = vadd.f32 %v2605_v14, %v2330_v61  ;;  %v2399_v5 = vadd.f32 %v2398_v17, %v2368_v2 }
 0x28a   : > { %v2400_v18 = vadd.f32 %v2399_v5, %v2369_v7  ;;  %v2332_v42 = vadd.f32 %v2606_v62, %v2331_v34 }
 0x28c   : > { %v2401_v13 = vadd.f32 %v2400_v18, %v2370_v0 }
 0x2af   : > { %v2609_v53 = vpop.f32.mrf.mxu0 }
 0x2b0   : > { %2304 = vst [vmem:[%s4413_s22 + $0x70] sm:$0xff] %v2609_v53  ;;  %v2373_v46 = vmul.f32 %v2609_v53, %v2609_v53 }
 0x2b1   : > { %v2211_v43 = vpop.f32.mrf.mxu0 }
 0x2b2   : > { %2302 = vst [vmem:[%s4413_s22 + $0x60] sm:$0xff] %v2211_v43  ;;  %v2333_v51 = vadd.f32 %v2332_v42, %v2211_v43  ;;  %v2371_v31 = vmul.f32 %v2211_v43, %v2211_v43 }
 0x2b3   : > { %v2610_v58 = vpop.f32.mrf.mxu0 }
 0x2b4   : > { %v2402_v37 = vadd.f32 %v2401_v13, %v2371_v31  ;;  %2305 = vst [vmem:[%s4413_s22 + $0x78] sm:$0xff] %v2610_v58  ;;  %v2374_v15 = vmul.f32 %v2610_v58, %v2610_v58 }
 0x2b5   : > { %v2214_v55 = vpop.f32.mrf.mxu0 }
 0x2b6   : > { %2303 = vst [vmem:[%s4413_s22 + $0x68] sm:$0xff] %v2214_v55  ;;  %v2334_v27 = vadd.f32 %v2333_v51, %v2214_v55  ;;  %v2372_v50 = vmul.f32 %v2214_v55, %v2214_v55 }
 0x2b8   : > { %v2335_v45 = vadd.f32 %v2609_v53, %v2334_v27  ;;  %v2403_v38 = vadd.f32 %v2402_v37, %v2372_v50 }
 0x2ba   : > { %v2404_v30 = vadd.f32 %v2403_v38, %v2373_v46  ;;  %v2336_v22 = vadd.f32 %v2610_v58, %v2335_v45 }
 0x2bc   : > { %v2405_v4 = vadd.f32 %v2404_v30, %v2374_v15 }
 0x2df   : > { %v2613_v47 = vpop.f32.mrf.mxu1 }
 0x2e0   : > { %2308 = vst [vmem:[%s4413_s22 + $0x90] sm:$0xff] %v2613_v47  ;;  %v2377_v20 = vmul.f32 %v2613_v47, %v2613_v47 }
 0x2e1   : > { %v2227_v10 = vpop.f32.mrf.mxu1 }
 0x2e2   : > { %2306 = vst [vmem:[%s4413_s22 + $0x80] sm:$0xff] %v2227_v10  ;;  %v2337_v60 = vadd.f32 %v2336_v22, %v2227_v10  ;;  %v2375_v6 = vmul.f32 %v2227_v10, %v2227_v10 }
 0x2e3   : > { %v2614_v29 = vpop.f32.mrf.mxu1 }
 0x2e4   : > { %v2406_v32 = vadd.f32 %v2405_v4, %v2375_v6  ;;  %2309 = vst [vmem:[%s4413_s22 + $0x98] sm:$0xff] %v2614_v29  ;;  %v2378_v16 = vmul.f32 %v2614_v29, %v2614_v29 }
 0x2e5   : > { %v2230_v36 = vpop.f32.mrf.mxu1 }
 0x2e6   : > { %2307 = vst [vmem:[%s4413_s22 + $0x88] sm:$0xff] %v2230_v36  ;;  %v2338_v56 = vadd.f32 %v2337_v60, %v2230_v36  ;;  %v2376_v39 = vmul.f32 %v2230_v36, %v2230_v36 }
 0x2e8   : > { %v2339_v57 = vadd.f32 %v2613_v47, %v2338_v56  ;;  %v2407_v26 = vadd.f32 %v2406_v32, %v2376_v39 }
 0x2ea   : > { %v2408_v21 = vadd.f32 %v2407_v26, %v2377_v20  ;;  %v2340_v52 = vadd.f32 %v2614_v29, %v2339_v57 }
 0x2ec   : > { %v2409_v41 = vadd.f32 %v2408_v21, %v2378_v16 }
 0x30b   : > { %v2617_v48 = vpop.f32.mrf.mxu1 }
 0x30c   : > { %2312 = vst [vmem:[%s4413_s22 + $0xb0] sm:$0xff] %v2617_v48  ;;  %v2381_v1 = vmul.f32 %v2617_v48, %v2617_v48 }
 0x30d   : > { %v2243_v33 = vpop.f32.mrf.mxu1 }
 0x30e   : > { %2310 = vst [vmem:[%s4413_s22 + $0xa0] sm:$0xff] %v2243_v33  ;;  %v2379_v35 = vmul.f32 %v2243_v33, %v2243_v33  ;;  %v2341_v40 = vadd.f32 %v2340_v52, %v2243_v33 }
 0x30f   : > { %v2618_v28 = vpop.f32.mrf.mxu1 }
 0x310   : > { %2313 = vst [vmem:[%s4413_s22 + $0xb8] sm:$0xff] %v2618_v28  ;;  %v2410_v9 = vadd.f32 %v2409_v41, %v2379_v35  ;;  %v2382_v44 = vmul.f32 %v2618_v28, %v2618_v28 }
 0x311   : > { %v2246_v23 = vpop.f32.mrf.mxu1 }
 0x312   : > { %2311 = vst [vmem:[%s4413_s22 + $0xa8] sm:$0xff] %v2246_v23  ;;  %v2380_v8 = vmul.f32 %v2246_v23, %v2246_v23  ;;  %v2342_v12 = vadd.f32 %v2341_v40, %v2246_v23 }
 0x314   : > { %v2411_v25 = vadd.f32 %v2410_v9, %v2380_v8  ;;  %v2343_v63 = vadd.f32 %v2617_v48, %v2342_v12 }
 0x316   : > { %v2412_v3 = vadd.f32 %v2411_v25, %v2381_v1  ;;  %v2344_v54 = vadd.f32 %v2618_v28, %v2343_v63 }
 0x318   : > { %v2413_v17 = vadd.f32 %v2412_v3, %v2382_v44 }
 0x32b   : > { %v2621_v24 = vpop.f32.mrf.mxu1 }
 0x32c   : > { %2316 = vst [vmem:[%s4413_s22 + $0xd0] sm:$0xff] %v2621_v24  ;;  %v2385_v34 = vmul.f32 %v2621_v24, %v2621_v24 }
 0x32d   : > { %v2259_v19 = vpop.f32.mrf.mxu1 }
 0x32e   : > { %2314 = vst [vmem:[%s4413_s22 + $0xc0] sm:$0xff] %v2259_v19  ;;  %v2383_v59 = vmul.f32 %v2259_v19, %v2259_v19  ;;  %v2345_v62 = vadd.f32 %v2344_v54, %v2259_v19 }
 0x32f   : > { %v2622_v49 = vpop.f32.mrf.mxu1 }
 0x330   : > { %2317 = vst [vmem:[%s4413_s22 + $0xd8] sm:$0xff] %v2622_v49  ;;  %v2414_v61 = vadd.f32 %v2413_v17, %v2383_v59  ;;  %v2386_v13 = vmul.f32 %v2622_v49, %v2622_v49 }
 0x331   : > { %v2262_v14 = vpop.f32.mrf.mxu1 }
 0x332   : > { %2315 = vst [vmem:[%s4413_s22 + $0xc8] sm:$0xff] %v2262_v14  ;;  %v2384_v11 = vmul.f32 %v2262_v14, %v2262_v14  ;;  %v2346_v2 = vadd.f32 %v2345_v62, %v2262_v14 }
 0x334   : > { %v2415_v7 = vadd.f32 %v2414_v61, %v2384_v11  ;;  %v2347_v5 = vadd.f32 %v2621_v24, %v2346_v2 }
 0x336   : > { %v2416_v18 = vadd.f32 %v2415_v7, %v2385_v34  ;;  %v2348_v53 = vadd.f32 %v2622_v49, %v2347_v5 }
 0x338   : > { %v2417_v58 = vadd.f32 %v2416_v18, %v2386_v13 }
 0x33b   : > { %v2625_v0 = vpop.f32.mrf.mxu1 }
 0x33c   : > { %2320 = vst [vmem:[%s4413_s22 + $0xf0] sm:$0xff] %v2625_v0  ;;  %v2389_v46 = vmul.f32 %v2625_v0, %v2625_v0 }
 0x33d   : > { %v2275_v42 = vpop.f32.mrf.mxu1 }
 0x33e   : > { %2318 = vst [vmem:[%s4413_s22 + $0xe0] sm:$0xff] %v2275_v42  ;;  %v2387_v43 = vmul.f32 %v2275_v42, %v2275_v42  ;;  %v2349_v31 = vadd.f32 %v2348_v53, %v2275_v42 }
 0x33f   : > { %v2626_v51 = vpop.f32.mrf.mxu1 }
 0x340   : > { %2321 = vst [vmem:[%s4413_s22 + $0xf8] sm:$0xff] %v2626_v51  ;;  %v2418_v55 = vadd.f32 %v2417_v58, %v2387_v43  ;;  %v2390_v15 = vmul.f32 %v2626_v51, %v2626_v51 }
 0x341   : > { %v2278_v37 = vpop.f32.mrf.mxu1 }
 0x342   : > { %2319 = vst [vmem:[%s4413_s22 + $0xe8] sm:$0xff] %v2278_v37  ;;  %v2350_v27 = vadd.f32 %v2349_v31, %v2278_v37  ;;  %v2388_v50 = vmul.f32 %v2278_v37, %v2278_v37 }
 0x344   : > { %v2351_v45 = vadd.f32 %v2625_v0, %v2350_v27  ;;  %v2419_v38 = vadd.f32 %v2418_v55, %v2388_v50 }
 0x346   : > { %v2352_v30 = vadd.f32 %v2626_v51, %v2351_v45  ;;  %v2420_v22 = vadd.f32 %v2419_v38, %v2389_v46 }
 0x348   : > { %v2353_v4 = vrot.slane %v2352_v30, 4  ;;  %v2421_v47 = vadd.f32 %v2420_v22, %v2390_v15 }
 0x34a   : > { %v2354_v10 = vadd.f32 %v2353_v4, %v2352_v30  ;;  %v2422_v60 = vrot.slane %v2421_v47, 4 }
 0x34c   : > { %v2355_v6 = vrot.slane %v2354_v10, 2  ;;  %v2423_v29 = vadd.f32 %v2422_v60, %v2421_v47 }
 0x34e   : > { %v2356_v32 = vadd.f32 %v2355_v6, %v2354_v10  ;;  %v2424_v36 = vrot.slane %v2423_v29, 2 }
 0x350   : > { %v2357_v56 = vrot.slane %v2356_v32, 1  ;;  %v2425_v39 = vadd.f32 %v2424_v36, %v2423_v29 }
 0x352   : > { %v2426_v20 = vrot.slane %v2425_v39, 1  ;;  %v2358_v57 = vadd.f32 %v2357_v56, %v2356_v32 }
 0x354   : > { %v2427_v26 = vadd.f32 %v2426_v20, %v2425_v39 }
 0x356   : > { %v2429_v16 = vsel %vm2428_vm0, %v2358_v57, %v2427_v26 }
 0x357   : > { %2430 = vst [vmem:[%s182_s26] sm:$0x3] %v2429_v16 }
 0x358 PF: > { %s14_s12 = sadd.s32 1, %s2718_s12  }
 0x359   : > { %p11_p5 = scmp.ge.s32.totalorder %s14_s12, 4  }
 0x35b   :  { %13 = sbr.rel (!%p11_p5) target bundleno = 1 (0x1), region = 71 }

</bundles_post_ra>
